<compile_context>
chip_gen: v7x
topology: tpu7x:2x2x1
jax: 0.10.0
libtpu: 0.0.40
codegen_flags: <defaults>
</compile_context>

<pallas_src>
import math
import functools

import jax
import jax.numpy as jnp
from jax import lax
from jax.experimental import pallas as pl
from jax.experimental.pallas import tpu as pltpu


# ----------------------------------------------------------------------------
# In-kernel helpers
# ----------------------------------------------------------------------------
def _layernorm(x, gamma, beta, eps=1e-5):
    mean = jnp.mean(x, axis=-1, keepdims=True)
    var = jnp.mean(jnp.square(x - mean), axis=-1, keepdims=True)
    return (x - mean) * lax.rsqrt(var + eps) * gamma + beta


# ----------------------------------------------------------------------------
# Fused encoder kernel: PE + num_layers * (MHA + LN1 + FFN + LN2)
# ----------------------------------------------------------------------------
def _encoder_kernel(x_ref, pe_ref,
                    wqkv_ref, bqkv_ref, pw_ref, pb_ref,
                    g1_ref, b1_ref, w1_ref, bb1_ref, w2_ref, bb2_ref,
                    g2_ref, b2_ref,
                    out_ref, *, num_heads, head_dim, num_layers):
    Bblk, S, D = out_ref.shape
    M = Bblk * S                       # rows of every linear layer
    qkv_width = 3 * head_dim           # per-head [q|k|v] block width
    scale = 1.0 / math.sqrt(head_dim)

    # Positional encoding (duplicated-sin table, faithful), then flatten the
    # (Bblk, S) rows into one lane-dense (M, D) slab (S is a multiple of 8,
    # so this reshape is a free leading-dim collapse).
    x0 = (x_ref[...] + pe_ref[...][None, :, :]).reshape(M, D)

    # Weights resident in VMEM across the unrolled shared-weight layer loop.
    wqkv, bqkv = wqkv_ref[...], bqkv_ref[...]
    pw, pb = pw_ref[...], pb_ref[...]
    g1, b1 = g1_ref[...], b1_ref[...]
    w1, bb1 = w1_ref[...], bb1_ref[...]
    w2, bb2 = w2_ref[...], bb2_ref[...]
    g2, b2 = g2_ref[...], b2_ref[...]

    def one_layer(_, x):               # x: (M, D) f32
        xb = x.astype(jnp.bfloat16)

        # ---- fused QKV projection: one (M, D) x (D, 3D) MXU matmul ----
        qkv = jnp.dot(xb, wqkv, preferred_element_type=jnp.float32) + bqkv  # (M, 3D)

        # Head split: PyTorch's reshape(B,S,H,3*hd).permute(0,2,1,3) makes
        # per-head blocks of 3*head_dim consecutive output features. Gather
        # them into one head-batched (G, S, 3*hd) tensor, g = b*H + h
        # (b-major so the final raw reshape reproduces the missing permute).
        # Cheap layout shuffle on a tiny tensor relative to the matmuls.
        qkv_g = jnp.concatenate(
            [qkv[b * S:(b + 1) * S,
                 h * qkv_width:(h + 1) * qkv_width][None]
             for b in range(Bblk) for h in range(num_heads)],
            axis=0).astype(jnp.bfloat16)                    # (G, S, 3*hd)

        q = qkv_g[:, :, 0:head_dim]
        k = qkv_g[:, :, head_dim:2 * head_dim]
        v = qkv_g[:, :, 2 * head_dim:3 * head_dim]

        # ---- scaled dot-product attention, batched over G = Bblk*H ----
        # (mask=None, exactly as the reference EncoderLayer calls it)
        scores = jnp.einsum("gqd,gkd->gqk", q, k,
                            preferred_element_type=jnp.float32) * scale   # (G,S,S)
        m = jnp.max(scores, axis=-1, keepdims=True)
        e = jnp.exp(scores - m)
        attn = e * pl.reciprocal(jnp.sum(e, axis=-1, keepdims=True), approx=True)

        vals = jnp.einsum("gqk,gkd->gqd", attn.astype(jnp.bfloat16), v,
                          preferred_element_type=jnp.float32)             # (G,S,hd)
        vals = vals.astype(jnp.bfloat16)

        # PyTorch's raw (B,H,S,hd)->(B,S,H*hd) reshape ("missing permute").
        # With S == num_heads the flat order makes a lane-concat of
        # per-position slices exactly the lane-dense (M, D) slab.
        if S == num_heads:
            vals_flat = jnp.concatenate(
                [vals[:, s, :] for s in range(S)], axis=-1)               # (M, D)
        else:
            # TODO(synk): general-shape raw reshape (not exercised at demo
            # shapes); relies on Mosaic general reshape support.
            vals_flat = vals.reshape(M, D)

        # Output projection (still the full (M, D) slab).
        attn_out = jnp.dot(vals_flat, pw,
                           preferred_element_type=jnp.float32) + pb       # (M, D)

        # dropout1 == identity; add & LayerNorm 1
        x1 = _layernorm(attn_out + x, g1, b1)

        # ---- position-wise feed forward ----
        h1 = jnp.dot(x1.astype(jnp.bfloat16), w1,
                     preferred_element_type=jnp.float32) + bb1
        h1 = jnp.maximum(h1, 0.0)
        ff = jnp.dot(h1.astype(jnp.bfloat16), w2,
                     preferred_element_type=jnp.float32) + bb2

        # dropout2 == identity; add & LayerNorm 2
        return _layernorm(ff + x1, g2, b2)

    # Shared-weight layer loop, fully inside the kernel.
    x_final = lax.fori_loop(0, num_layers, one_layer, x0, unroll=True)
    out_ref[...] = x_final.reshape(Bblk, S, D)


# ----------------------------------------------------------------------------
# Host-side wrapper
# ----------------------------------------------------------------------------
def positional_encoding_table(S, D):
    """Reproduces PositionalEncoding.positional_encoding (sin for both)."""
    even_i = jnp.arange(0, D, 2, dtype=jnp.float32)
    even_denominator = jnp.power(10000.0, even_i / D)
    positions = jnp.arange(S, dtype=jnp.float32).reshape(S, 1)
    even_pe = jnp.sin(positions / even_denominator)
    odd_pe = jnp.sin(positions / even_denominator)       # (sic) same as even
    stacked = jnp.stack([even_pe, odd_pe], axis=2)        # (S, D/2, 2)
    return jnp.reshape(stacked, (S, D))                   # interleave


def _rep(shape):
    """BlockSpec for a weight replicated across the batch grid (DMA'd once)."""
    zeros = (0,) * len(shape)
    return pl.BlockSpec(shape, lambda b, _z=zeros: _z)


def _pick_block_batch(B, S):
    """Largest divisor of B with Bblk*S ~>= 256, keeping >=2 grid steps (v7x)."""
    def largest_divisor(n, cap):
        for d in range(max(1, min(cap, n)), 0, -1):
            if n % d == 0:
                return d
        return 1
    target = max(1, 256 // max(S, 1))
    bblk = largest_divisor(B, target)
    if B // bblk < 2 and B >= 2:          # keep both v7x TensorCores busy
        bblk = largest_divisor(B, B // 2)
    return bblk


def encoder_forward(x_embed, params, *, num_layers, num_heads, block_batch=None):
    """Encoder.forward: PE + num_layers * shared EncoderLayer, one pallas_call."""
    B, S, D = x_embed.shape
    head_dim = D // num_heads
    bblk = block_batch if block_batch is not None else _pick_block_batch(B, S)
    assert B % bblk == 0
    pe = positional_encoding_table(S, D)

    kern = functools.partial(_encoder_kernel, num_heads=num_heads,
                             head_dim=head_dim, num_layers=num_layers)

    in_arrays = (x_embed, pe,
                 params["wqkv"], params["bqkv"],
                 params["proj_w"], params["proj_b"],
                 params["g1"], params["b1"],
                 params["w1"], params["bb1"], params["w2"], params["bb2"],
                 params["g2"], params["b2"])

    in_specs = [pl.BlockSpec((bblk, S, D), lambda b: (b, 0, 0))]
    in_specs += [_rep(a.shape) for a in in_arrays[1:]]

    return pl.pallas_call(
        kern,
        out_shape=jax.ShapeDtypeStruct((B, S, D), jnp.float32),
        grid=(B // bblk,),
        in_specs=in_specs,
        out_specs=pl.BlockSpec((bblk, S, D), lambda b: (b, 0, 0)),
        compiler_params=pltpu.CompilerParams(
            dimension_semantics=("parallel",),
            vmem_limit_bytes=32 * 1024 * 1024),
    )(*in_arrays)


def init_params(key, d_model, ffn_hidden, num_heads):
    del num_heads  # layout is the natural PyTorch one; no per-head blocks
    ks = jax.random.split(key, 8)
    s = 0.02

    def w(k, shape):
        return s * jax.random.normal(k, shape, jnp.float32)

    return {
        # qkv Linear(d_model, 3*d_model) stored as x @ W (torch weight.T),
        # natural feature order: per-head [q|k|v] blocks of 3*head_dim.
        "wqkv": w(ks[0], (d_model, 3 * d_model)).astype(jnp.bfloat16),
        "bqkv": w(ks[1], (1, 3 * d_model)),
        "proj_w": w(ks[2], (d_model, d_model)).astype(jnp.bfloat16),
        "proj_b": w(ks[3], (1, d_model)),
        "g1": jnp.ones((1, d_model), jnp.float32),
        "b1": jnp.zeros((1, d_model), jnp.float32),
        "w1": w(ks[4], (d_model, ffn_hidden)).astype(jnp.bfloat16),
        "bb1": w(ks[5], (1, ffn_hidden)),
        "w2": w(ks[6], (ffn_hidden, d_model)).astype(jnp.bfloat16),
        "bb2": w(ks[7], (1, d_model)),
        "g2": jnp.ones((1, d_model), jnp.float32),
        "b2": jnp.zeros((1, d_model), jnp.float32),
    }


if __name__ == "__main__":
    # Small shapes consistent with the module: d_model=128, ffn_hidden=256,
    # num_heads=8, num_layers_encoder=2. Batch/seq kept small (B=4 so the
    # batch-blocked grid has 2 steps of 2 sequences each).
    B, S, D = 4, 8, 128
    FFN_HIDDEN = 256
    NUM_HEADS = 8
    NUM_LAYERS = 2

    key = jax.random.PRNGKey(0)
    k_x, k_p = jax.random.split(key)
    # TODO(synk): stand-in for the BERT-tiny token embeddings (B, S, D)
    x_embed = jax.random.normal(k_x, (B, S, D), jnp.float32)
    params = init_params(k_p, D, FFN_HIDDEN, NUM_HEADS)

    out = encoder_forward(x_embed, params,
                          num_layers=NUM_LAYERS, num_heads=NUM_HEADS)
    out = jax.block_until_ready(out)
    assert out.shape == (B, S, D)
    assert bool(jnp.all(jnp.isfinite(out)))
    print("KERNEL_OK")
</pallas_src>

<mosaic_0001>
module attributes {stable_mosaic.version = 11 : i64} {
  func.func @_encoder_kernel(%arg0: i32, %arg1: memref<2x8x128xf32, #tpu.memory_space<vmem>>, %arg2: memref<8x128xf32, #tpu.memory_space<vmem>>, %arg3: memref<128x384xbf16, #tpu.memory_space<vmem>>, %arg4: memref<1x384xf32, #tpu.memory_space<vmem>>, %arg5: memref<128x128xbf16, #tpu.memory_space<vmem>>, %arg6: memref<1x128xf32, #tpu.memory_space<vmem>>, %arg7: memref<1x128xf32, #tpu.memory_space<vmem>>, %arg8: memref<1x128xf32, #tpu.memory_space<vmem>>, %arg9: memref<128x256xbf16, #tpu.memory_space<vmem>>, %arg10: memref<1x256xf32, #tpu.memory_space<vmem>>, %arg11: memref<256x128xbf16, #tpu.memory_space<vmem>>, %arg12: memref<1x128xf32, #tpu.memory_space<vmem>>, %arg13: memref<1x128xf32, #tpu.memory_space<vmem>>, %arg14: memref<1x128xf32, #tpu.memory_space<vmem>>, %arg15: memref<2x8x128xf32, #tpu.memory_space<vmem>>) attributes {dimension_semantics = [#tpu.dimension_semantics<parallel>], iteration_bounds = array<i64: 2>, scalar_prefetch = 0 : i64, scratch_operands = 0 : i64, tpu.core_type = #tpu.core_type<tc>, window_params = [{transform_indices = @transform_0, window_bounds = array<i64: 2, 8, 128>}, {pipeline_mode = #tpu.pipeline_mode<synchronous>, transform_indices = @transform_1, window_bounds = array<i64: 8, 128>}, {pipeline_mode = #tpu.pipeline_mode<synchronous>, transform_indices = @transform_2, window_bounds = array<i64: 128, 384>}, {pipeline_mode = #tpu.pipeline_mode<synchronous>, transform_indices = @transform_3, window_bounds = array<i64: 1, 384>}, {pipeline_mode = #tpu.pipeline_mode<synchronous>, transform_indices = @transform_4, window_bounds = array<i64: 128, 128>}, {pipeline_mode = #tpu.pipeline_mode<synchronous>, transform_indices = @transform_5, window_bounds = array<i64: 1, 128>}, {pipeline_mode = #tpu.pipeline_mode<synchronous>, transform_indices = @transform_6, window_bounds = array<i64: 1, 128>}, {pipeline_mode = #tpu.pipeline_mode<synchronous>, transform_indices = @transform_7, window_bounds = array<i64: 1, 128>}, {pipeline_mode = #tpu.pipeline_mode<synchronous>, transform_indices = @transform_8, window_bounds = array<i64: 128, 256>}, {pipeline_mode = #tpu.pipeline_mode<synchronous>, transform_indices = @transform_9, window_bounds = array<i64: 1, 256>}, {pipeline_mode = #tpu.pipeline_mode<synchronous>, transform_indices = @transform_10, window_bounds = array<i64: 256, 128>}, {pipeline_mode = #tpu.pipeline_mode<synchronous>, transform_indices = @transform_11, window_bounds = array<i64: 1, 128>}, {pipeline_mode = #tpu.pipeline_mode<synchronous>, transform_indices = @transform_12, window_bounds = array<i64: 1, 128>}, {pipeline_mode = #tpu.pipeline_mode<synchronous>, transform_indices = @transform_13, window_bounds = array<i64: 1, 128>}, {transform_indices = @transform_14, window_bounds = array<i64: 2, 8, 128>}]} {
    %c0 = arith.constant 0 : index
    %c0_0 = arith.constant 0 : index
    %c0_1 = arith.constant 0 : index
    %0 = vector.load %arg1[%c0, %c0_0, %c0_1] : memref<2x8x128xf32, #tpu.memory_space<vmem>>, vector<2x8x128xf32>
    %c0_2 = arith.constant 0 : index
    %c0_3 = arith.constant 0 : index
    %1 = vector.load %arg2[%c0_2, %c0_3] : memref<8x128xf32, #tpu.memory_space<vmem>>, vector<8x128xf32>
    %2 = vector.shape_cast %1 : vector<8x128xf32> to vector<1x8x128xf32>
    %3 = vector.broadcast %2 : vector<1x8x128xf32> to vector<2x8x128xf32>
    %4 = arith.addf %0, %3 : vector<2x8x128xf32>
    %5 = vector.shape_cast %4 : vector<2x8x128xf32> to vector<16x128xf32>
    %c0_4 = arith.constant 0 : index
    %c0_5 = arith.constant 0 : index
    %6 = vector.load %arg3[%c0_4, %c0_5] : memref<128x384xbf16, #tpu.memory_space<vmem>>, vector<128x384xbf16>
    %c0_6 = arith.constant 0 : index
    %c0_7 = arith.constant 0 : index
    %7 = vector.load %arg4[%c0_6, %c0_7] : memref<1x384xf32, #tpu.memory_space<vmem>>, vector<1x384xf32>
    %c0_8 = arith.constant 0 : index
    %c0_9 = arith.constant 0 : index
    %8 = vector.load %arg5[%c0_8, %c0_9] : memref<128x128xbf16, #tpu.memory_space<vmem>>, vector<128x128xbf16>
    %c0_10 = arith.constant 0 : index
    %c0_11 = arith.constant 0 : index
    %9 = vector.load %arg6[%c0_10, %c0_11] : memref<1x128xf32, #tpu.memory_space<vmem>>, vector<1x128xf32>
    %c0_12 = arith.constant 0 : index
    %c0_13 = arith.constant 0 : index
    %10 = vector.load %arg7[%c0_12, %c0_13] : memref<1x128xf32, #tpu.memory_space<vmem>>, vector<1x128xf32>
    %c0_14 = arith.constant 0 : index
    %c0_15 = arith.constant 0 : index
    %11 = vector.load %arg8[%c0_14, %c0_15] : memref<1x128xf32, #tpu.memory_space<vmem>>, vector<1x128xf32>
    %c0_16 = arith.constant 0 : index
    %c0_17 = arith.constant 0 : index
    %12 = vector.load %arg9[%c0_16, %c0_17] : memref<128x256xbf16, #tpu.memory_space<vmem>>, vector<128x256xbf16>
    %c0_18 = arith.constant 0 : index
    %c0_19 = arith.constant 0 : index
    %13 = vector.load %arg10[%c0_18, %c0_19] : memref<1x256xf32, #tpu.memory_space<vmem>>, vector<1x256xf32>
    %c0_20 = arith.constant 0 : index
    %c0_21 = arith.constant 0 : index
    %14 = vector.load %arg11[%c0_20, %c0_21] : memref<256x128xbf16, #tpu.memory_space<vmem>>, vector<256x128xbf16>
    %c0_22 = arith.constant 0 : index
    %c0_23 = arith.constant 0 : index
    %15 = vector.load %arg12[%c0_22, %c0_23] : memref<1x128xf32, #tpu.memory_space<vmem>>, vector<1x128xf32>
    %c0_24 = arith.constant 0 : index
    %c0_25 = arith.constant 0 : index
    %16 = vector.load %arg13[%c0_24, %c0_25] : memref<1x128xf32, #tpu.memory_space<vmem>>, vector<1x128xf32>
    %c0_26 = arith.constant 0 : index
    %c0_27 = arith.constant 0 : index
    %17 = vector.load %arg14[%c0_26, %c0_27] : memref<1x128xf32, #tpu.memory_space<vmem>>, vector<1x128xf32>
    %c0_i32 = arith.constant 0 : i32
    %18 = arith.truncf %5 : vector<16x128xf32> to vector<16x128xbf16>
    %cst = arith.constant dense<0.000000e+00> : vector<16x384xf32>
    %19 = tpu.matmul %18, %6, %cst {dimension_numbers = #tpu.dot_dimension_numbers<[1], [0], [0], [1], [0, 0, 1, 1], [], []>} : vector<16x128xbf16>, vector<128x384xbf16>, vector<16x384xf32> -> vector<16x384xf32>
    %20 = vector.broadcast %7 : vector<1x384xf32> to vector<16x384xf32>
    %21 = arith.addf %19, %20 : vector<16x384xf32>
    %22 = vector.extract_strided_slice %21 {offsets = [0, 0], sizes = [8, 48], strides = [1, 1]} : vector<16x384xf32> to vector<8x48xf32>
    %23 = vector.shape_cast %22 : vector<8x48xf32> to vector<1x8x48xf32>
    %24 = vector.extract_strided_slice %21 {offsets = [0, 48], sizes = [8, 48], strides = [1, 1]} : vector<16x384xf32> to vector<8x48xf32>
    %25 = vector.shape_cast %24 : vector<8x48xf32> to vector<1x8x48xf32>
    %26 = vector.extract_strided_slice %21 {offsets = [0, 96], sizes = [8, 48], strides = [1, 1]} : vector<16x384xf32> to vector<8x48xf32>
    %27 = vector.shape_cast %26 : vector<8x48xf32> to vector<1x8x48xf32>
    %28 = vector.extract_strided_slice %21 {offsets = [0, 144], sizes = [8, 48], strides = [1, 1]} : vector<16x384xf32> to vector<8x48xf32>
    %29 = vector.shape_cast %28 : vector<8x48xf32> to vector<1x8x48xf32>
    %30 = vector.extract_strided_slice %21 {offsets = [0, 192], sizes = [8, 48], strides = [1, 1]} : vector<16x384xf32> to vector<8x48xf32>
    %31 = vector.shape_cast %30 : vector<8x48xf32> to vector<1x8x48xf32>
    %32 = vector.extract_strided_slice %21 {offsets = [0, 240], sizes = [8, 48], strides = [1, 1]} : vector<16x384xf32> to vector<8x48xf32>
    %33 = vector.shape_cast %32 : vector<8x48xf32> to vector<1x8x48xf32>
    %34 = vector.extract_strided_slice %21 {offsets = [0, 288], sizes = [8, 48], strides = [1, 1]} : vector<16x384xf32> to vector<8x48xf32>
    %35 = vector.shape_cast %34 : vector<8x48xf32> to vector<1x8x48xf32>
    %36 = vector.extract_strided_slice %21 {offsets = [0, 336], sizes = [8, 48], strides = [1, 1]} : vector<16x384xf32> to vector<8x48xf32>
    %37 = vector.shape_cast %36 : vector<8x48xf32> to vector<1x8x48xf32>
    %38 = vector.extract_strided_slice %21 {offsets = [8, 0], sizes = [8, 48], strides = [1, 1]} : vector<16x384xf32> to vector<8x48xf32>
    %39 = vector.shape_cast %38 : vector<8x48xf32> to vector<1x8x48xf32>
    %40 = vector.extract_strided_slice %21 {offsets = [8, 48], sizes = [8, 48], strides = [1, 1]} : vector<16x384xf32> to vector<8x48xf32>
    %41 = vector.shape_cast %40 : vector<8x48xf32> to vector<1x8x48xf32>
    %42 = vector.extract_strided_slice %21 {offsets = [8, 96], sizes = [8, 48], strides = [1, 1]} : vector<16x384xf32> to vector<8x48xf32>
    %43 = vector.shape_cast %42 : vector<8x48xf32> to vector<1x8x48xf32>
    %44 = vector.extract_strided_slice %21 {offsets = [8, 144], sizes = [8, 48], strides = [1, 1]} : vector<16x384xf32> to vector<8x48xf32>
    %45 = vector.shape_cast %44 : vector<8x48xf32> to vector<1x8x48xf32>
    %46 = vector.extract_strided_slice %21 {offsets = [8, 192], sizes = [8, 48], strides = [1, 1]} : vector<16x384xf32> to vector<8x48xf32>
    %47 = vector.shape_cast %46 : vector<8x48xf32> to vector<1x8x48xf32>
    %48 = vector.extract_strided_slice %21 {offsets = [8, 240], sizes = [8, 48], strides = [1, 1]} : vector<16x384xf32> to vector<8x48xf32>
    %49 = vector.shape_cast %48 : vector<8x48xf32> to vector<1x8x48xf32>
    %50 = vector.extract_strided_slice %21 {offsets = [8, 288], sizes = [8, 48], strides = [1, 1]} : vector<16x384xf32> to vector<8x48xf32>
    %51 = vector.shape_cast %50 : vector<8x48xf32> to vector<1x8x48xf32>
    %52 = vector.extract_strided_slice %21 {offsets = [8, 336], sizes = [8, 48], strides = [1, 1]} : vector<16x384xf32> to vector<8x48xf32>
    %53 = vector.shape_cast %52 : vector<8x48xf32> to vector<1x8x48xf32>
    %54 = tpu.concatenate %23, %25, %27, %29, %31, %33, %35, %37, %39, %41, %43, %45, %47, %49, %51, %53 in 0 : vector<1x8x48xf32>, vector<1x8x48xf32>, vector<1x8x48xf32>, vector<1x8x48xf32>, vector<1x8x48xf32>, vector<1x8x48xf32>, vector<1x8x48xf32>, vector<1x8x48xf32>, vector<1x8x48xf32>, vector<1x8x48xf32>, vector<1x8x48xf32>, vector<1x8x48xf32>, vector<1x8x48xf32>, vector<1x8x48xf32>, vector<1x8x48xf32>, vector<1x8x48xf32> -> vector<16x8x48xf32>
    %55 = arith.truncf %54 : vector<16x8x48xf32> to vector<16x8x48xbf16>
    %56 = vector.extract_strided_slice %55 {offsets = [0, 0, 0], sizes = [16, 8, 16], strides = [1, 1, 1]} : vector<16x8x48xbf16> to vector<16x8x16xbf16>
    %57 = vector.extract_strided_slice %55 {offsets = [0, 0, 16], sizes = [16, 8, 16], strides = [1, 1, 1]} : vector<16x8x48xbf16> to vector<16x8x16xbf16>
    %58 = vector.extract_strided_slice %55 {offsets = [0, 0, 32], sizes = [16, 8, 16], strides = [1, 1, 1]} : vector<16x8x48xbf16> to vector<16x8x16xbf16>
    "tpu.trace_start"() <{level = 10 : i32, message = "gqd,gkd->gqk"}> : () -> ()
    %cst_28 = arith.constant dense<0.000000e+00> : vector<16x8x8xf32>
    %59 = tpu.matmul %56, %57, %cst_28 {dimension_numbers = #tpu.dot_dimension_numbers<[2], [2], [1], [1], [0, 0, 0, 1, 1, 1], [0], [0]>} : vector<16x8x16xbf16>, vector<16x8x16xbf16>, vector<16x8x8xf32> -> vector<16x8x8xf32>
    "tpu.trace_stop"() : () -> ()
    %cst_29 = arith.constant 2.500000e-01 : f32
    %60 = vector.broadcast %cst_29 : f32 to vector<16x8x8xf32>
    %61 = arith.mulf %59, %60 : vector<16x8x8xf32>
    %cst_30 = arith.constant dense<0xFF800000> : vector<16x8xf32>
    %62 = vector.multi_reduction <maximumf>, %61, %cst_30 [2] : vector<16x8x8xf32> to vector<16x8xf32>
    %63 = vector.shape_cast %62 : vector<16x8xf32> to vector<16x8x1xf32>
    %64 = vector.broadcast %63 : vector<16x8x1xf32> to vector<16x8x8xf32>
    %65 = arith.subf %61, %64 : vector<16x8x8xf32>
    %66 = math.exp %65 : vector<16x8x8xf32>
    %cst_31 = arith.constant dense<0.000000e+00> : vector<16x8xf32>
    %67 = vector.multi_reduction <add>, %66, %cst_31 [2] : vector<16x8x8xf32> to vector<16x8xf32>
    %68 = vector.shape_cast %67 : vector<16x8xf32> to vector<16x8x1xf32>
    %69 = tpu.reciprocal %68 {approx = true} : vector<16x8x1xf32> -> vector<16x8x1xf32>
    %70 = vector.broadcast %69 : vector<16x8x1xf32> to vector<16x8x8xf32>
    %71 = arith.mulf %66, %70 : vector<16x8x8xf32>
    %72 = arith.truncf %71 : vector<16x8x8xf32> to vector<16x8x8xbf16>
    "tpu.trace_start"() <{level = 10 : i32, message = "gqk,gkd->gqd"}> : () -> ()
    %cst_32 = arith.constant dense<0.000000e+00> : vector<16x8x16xf32>
    %73 = tpu.matmul %72, %58, %cst_32 {dimension_numbers = #tpu.dot_dimension_numbers<[2], [1], [1], [2], [0, 0, 0, 1, 1, 2], [0], [0]>} : vector<16x8x8xbf16>, vector<16x8x16xbf16>, vector<16x8x16xf32> -> vector<16x8x16xf32>
    "tpu.trace_stop"() : () -> ()
    %74 = arith.truncf %73 : vector<16x8x16xf32> to vector<16x8x16xbf16>
    %75 = vector.extract_strided_slice %74 {offsets = [0, 0, 0], sizes = [16, 1, 16], strides = [1, 1, 1]} : vector<16x8x16xbf16> to vector<16x1x16xbf16>
    %76 = vector.shape_cast %75 : vector<16x1x16xbf16> to vector<16x16xbf16>
    %77 = vector.extract_strided_slice %74 {offsets = [0, 1, 0], sizes = [16, 1, 16], strides = [1, 1, 1]} : vector<16x8x16xbf16> to vector<16x1x16xbf16>
    %78 = vector.shape_cast %77 : vector<16x1x16xbf16> to vector<16x16xbf16>
    %79 = vector.extract_strided_slice %74 {offsets = [0, 2, 0], sizes = [16, 1, 16], strides = [1, 1, 1]} : vector<16x8x16xbf16> to vector<16x1x16xbf16>
    %80 = vector.shape_cast %79 : vector<16x1x16xbf16> to vector<16x16xbf16>
    %81 = vector.extract_strided_slice %74 {offsets = [0, 3, 0], sizes = [16, 1, 16], strides = [1, 1, 1]} : vector<16x8x16xbf16> to vector<16x1x16xbf16>
    %82 = vector.shape_cast %81 : vector<16x1x16xbf16> to vector<16x16xbf16>
    %83 = vector.extract_strided_slice %74 {offsets = [0, 4, 0], sizes = [16, 1, 16], strides = [1, 1, 1]} : vector<16x8x16xbf16> to vector<16x1x16xbf16>
    %84 = vector.shape_cast %83 : vector<16x1x16xbf16> to vector<16x16xbf16>
    %85 = vector.extract_strided_slice %74 {offsets = [0, 5, 0], sizes = [16, 1, 16], strides = [1, 1, 1]} : vector<16x8x16xbf16> to vector<16x1x16xbf16>
    %86 = vector.shape_cast %85 : vector<16x1x16xbf16> to vector<16x16xbf16>
    %87 = vector.extract_strided_slice %74 {offsets = [0, 6, 0], sizes = [16, 1, 16], strides = [1, 1, 1]} : vector<16x8x16xbf16> to vector<16x1x16xbf16>
    %88 = vector.shape_cast %87 : vector<16x1x16xbf16> to vector<16x16xbf16>
    %89 = vector.extract_strided_slice %74 {offsets = [0, 7, 0], sizes = [16, 1, 16], strides = [1, 1, 1]} : vector<16x8x16xbf16> to vector<16x1x16xbf16>
    %90 = vector.shape_cast %89 : vector<16x1x16xbf16> to vector<16x16xbf16>
    %91 = tpu.concatenate %76, %78, %80, %82, %84, %86, %88, %90 in 1 : vector<16x16xbf16>, vector<16x16xbf16>, vector<16x16xbf16>, vector<16x16xbf16>, vector<16x16xbf16>, vector<16x16xbf16>, vector<16x16xbf16>, vector<16x16xbf16> -> vector<16x128xbf16>
    %cst_33 = arith.constant dense<0.000000e+00> : vector<16x128xf32>
    %92 = tpu.matmul %91, %8, %cst_33 {dimension_numbers = #tpu.dot_dimension_numbers<[1], [0], [0], [1], [0, 0, 1, 1], [], []>} : vector<16x128xbf16>, vector<128x128xbf16>, vector<16x128xf32> -> vector<16x128xf32>
    %93 = vector.broadcast %9 : vector<1x128xf32> to vector<16x128xf32>
    %94 = arith.addf %92, %93 : vector<16x128xf32>
    %95 = arith.addf %94, %5 : vector<16x128xf32>
    %cst_34 = arith.constant dense<0.000000e+00> : vector<16xf32>
    %96 = vector.multi_reduction <add>, %95, %cst_34 [1] : vector<16x128xf32> to vector<16xf32>
    %97 = vector.shape_cast %96 : vector<16xf32> to vector<16x1xf32>
    %cst_35 = arith.constant 1.280000e+02 : f32
    %98 = vector.broadcast %cst_35 : f32 to vector<16x1xf32>
    %99 = arith.divf %97, %98 : vector<16x1xf32>
    %100 = vector.broadcast %99 : vector<16x1xf32> to vector<16x128xf32>
    %101 = arith.subf %95, %100 : vector<16x128xf32>
    %102 = arith.mulf %101, %101 : vector<16x128xf32>
    %cst_36 = arith.constant dense<0.000000e+00> : vector<16xf32>
    %103 = vector.multi_reduction <add>, %102, %cst_36 [1] : vector<16x128xf32> to vector<16xf32>
    %104 = vector.shape_cast %103 : vector<16xf32> to vector<16x1xf32>
    %cst_37 = arith.constant 1.280000e+02 : f32
    %105 = vector.broadcast %cst_37 : f32 to vector<16x1xf32>
    %106 = arith.divf %104, %105 : vector<16x1xf32>
    %107 = vector.broadcast %99 : vector<16x1xf32> to vector<16x128xf32>
    %108 = arith.subf %95, %107 : vector<16x128xf32>
    %cst_38 = arith.constant 9.99999974E-6 : f32
    %109 = vector.broadcast %cst_38 : f32 to vector<16x1xf32>
    %110 = arith.addf %106, %109 : vector<16x1xf32>
    %111 = math.rsqrt %110 : vector<16x1xf32>
    %112 = vector.broadcast %111 : vector<16x1xf32> to vector<16x128xf32>
    %113 = arith.mulf %108, %112 : vector<16x128xf32>
    %114 = vector.broadcast %10 : vector<1x128xf32> to vector<16x128xf32>
    %115 = arith.mulf %113, %114 : vector<16x128xf32>
    %116 = vector.broadcast %11 : vector<1x128xf32> to vector<16x128xf32>
    %117 = arith.addf %115, %116 : vector<16x128xf32>
    %118 = arith.truncf %117 : vector<16x128xf32> to vector<16x128xbf16>
    %cst_39 = arith.constant dense<0.000000e+00> : vector<16x256xf32>
    %119 = tpu.matmul %118, %12, %cst_39 {dimension_numbers = #tpu.dot_dimension_numbers<[1], [0], [0], [1], [0, 0, 1, 1], [], []>} : vector<16x128xbf16>, vector<128x256xbf16>, vector<16x256xf32> -> vector<16x256xf32>
    %120 = vector.broadcast %13 : vector<1x256xf32> to vector<16x256xf32>
    %121 = arith.addf %119, %120 : vector<16x256xf32>
    %cst_40 = arith.constant 0.000000e+00 : f32
    %122 = vector.broadcast %cst_40 : f32 to vector<16x256xf32>
    %123 = arith.maximumf %121, %122 : vector<16x256xf32>
    %124 = arith.truncf %123 : vector<16x256xf32> to vector<16x256xbf16>
    %cst_41 = arith.constant dense<0.000000e+00> : vector<16x128xf32>
    %125 = tpu.matmul %124, %14, %cst_41 {dimension_numbers = #tpu.dot_dimension_numbers<[1], [0], [0], [1], [0, 0, 1, 1], [], []>} : vector<16x256xbf16>, vector<256x128xbf16>, vector<16x128xf32> -> vector<16x128xf32>
    %126 = vector.broadcast %15 : vector<1x128xf32> to vector<16x128xf32>
    %127 = arith.addf %125, %126 : vector<16x128xf32>
    %128 = arith.addf %127, %117 : vector<16x128xf32>
    %cst_42 = arith.constant dense<0.000000e+00> : vector<16xf32>
    %129 = vector.multi_reduction <add>, %128, %cst_42 [1] : vector<16x128xf32> to vector<16xf32>
    %130 = vector.shape_cast %129 : vector<16xf32> to vector<16x1xf32>
    %cst_43 = arith.constant 1.280000e+02 : f32
    %131 = vector.broadcast %cst_43 : f32 to vector<16x1xf32>
    %132 = arith.divf %130, %131 : vector<16x1xf32>
    %133 = vector.broadcast %132 : vector<16x1xf32> to vector<16x128xf32>
    %134 = arith.subf %128, %133 : vector<16x128xf32>
    %135 = arith.mulf %134, %134 : vector<16x128xf32>
    %cst_44 = arith.constant dense<0.000000e+00> : vector<16xf32>
    %136 = vector.multi_reduction <add>, %135, %cst_44 [1] : vector<16x128xf32> to vector<16xf32>
    %137 = vector.shape_cast %136 : vector<16xf32> to vector<16x1xf32>
    %cst_45 = arith.constant 1.280000e+02 : f32
    %138 = vector.broadcast %cst_45 : f32 to vector<16x1xf32>
    %139 = arith.divf %137, %138 : vector<16x1xf32>
    %140 = vector.broadcast %132 : vector<16x1xf32> to vector<16x128xf32>
    %141 = arith.subf %128, %140 : vector<16x128xf32>
    %cst_46 = arith.constant 9.99999974E-6 : f32
    %142 = vector.broadcast %cst_46 : f32 to vector<16x1xf32>
    %143 = arith.addf %139, %142 : vector<16x1xf32>
    %144 = math.rsqrt %143 : vector<16x1xf32>
    %145 = vector.broadcast %144 : vector<16x1xf32> to vector<16x128xf32>
    %146 = arith.mulf %141, %145 : vector<16x128xf32>
    %147 = vector.broadcast %16 : vector<1x128xf32> to vector<16x128xf32>
    %148 = arith.mulf %146, %147 : vector<16x128xf32>
    %149 = vector.broadcast %17 : vector<1x128xf32> to vector<16x128xf32>
    %150 = arith.addf %148, %149 : vector<16x128xf32>
    %c1_i32 = arith.constant 1 : i32
    %151 = arith.truncf %150 : vector<16x128xf32> to vector<16x128xbf16>
    %cst_47 = arith.constant dense<0.000000e+00> : vector<16x384xf32>
    %152 = tpu.matmul %151, %6, %cst_47 {dimension_numbers = #tpu.dot_dimension_numbers<[1], [0], [0], [1], [0, 0, 1, 1], [], []>} : vector<16x128xbf16>, vector<128x384xbf16>, vector<16x384xf32> -> vector<16x384xf32>
    %153 = vector.broadcast %7 : vector<1x384xf32> to vector<16x384xf32>
    %154 = arith.addf %152, %153 : vector<16x384xf32>
    %155 = vector.extract_strided_slice %154 {offsets = [0, 0], sizes = [8, 48], strides = [1, 1]} : vector<16x384xf32> to vector<8x48xf32>
    %156 = vector.shape_cast %155 : vector<8x48xf32> to vector<1x8x48xf32>
    %157 = vector.extract_strided_slice %154 {offsets = [0, 48], sizes = [8, 48], strides = [1, 1]} : vector<16x384xf32> to vector<8x48xf32>
    %158 = vector.shape_cast %157 : vector<8x48xf32> to vector<1x8x48xf32>
    %159 = vector.extract_strided_slice %154 {offsets = [0, 96], sizes = [8, 48], strides = [1, 1]} : vector<16x384xf32> to vector<8x48xf32>
    %160 = vector.shape_cast %159 : vector<8x48xf32> to vector<1x8x48xf32>
    %161 = vector.extract_strided_slice %154 {offsets = [0, 144], sizes = [8, 48], strides = [1, 1]} : vector<16x384xf32> to vector<8x48xf32>
    %162 = vector.shape_cast %161 : vector<8x48xf32> to vector<1x8x48xf32>
    %163 = vector.extract_strided_slice %154 {offsets = [0, 192], sizes = [8, 48], strides = [1, 1]} : vector<16x384xf32> to vector<8x48xf32>
    %164 = vector.shape_cast %163 : vector<8x48xf32> to vector<1x8x48xf32>
    %165 = vector.extract_strided_slice %154 {offsets = [0, 240], sizes = [8, 48], strides = [1, 1]} : vector<16x384xf32> to vector<8x48xf32>
    %166 = vector.shape_cast %165 : vector<8x48xf32> to vector<1x8x48xf32>
    %167 = vector.extract_strided_slice %154 {offsets = [0, 288], sizes = [8, 48], strides = [1, 1]} : vector<16x384xf32> to vector<8x48xf32>
    %168 = vector.shape_cast %167 : vector<8x48xf32> to vector<1x8x48xf32>
    %169 = vector.extract_strided_slice %154 {offsets = [0, 336], sizes = [8, 48], strides = [1, 1]} : vector<16x384xf32> to vector<8x48xf32>
    %170 = vector.shape_cast %169 : vector<8x48xf32> to vector<1x8x48xf32>
    %171 = vector.extract_strided_slice %154 {offsets = [8, 0], sizes = [8, 48], strides = [1, 1]} : vector<16x384xf32> to vector<8x48xf32>
    %172 = vector.shape_cast %171 : vector<8x48xf32> to vector<1x8x48xf32>
    %173 = vector.extract_strided_slice %154 {offsets = [8, 48], sizes = [8, 48], strides = [1, 1]} : vector<16x384xf32> to vector<8x48xf32>
    %174 = vector.shape_cast %173 : vector<8x48xf32> to vector<1x8x48xf32>
    %175 = vector.extract_strided_slice %154 {offsets = [8, 96], sizes = [8, 48], strides = [1, 1]} : vector<16x384xf32> to vector<8x48xf32>
    %176 = vector.shape_cast %175 : vector<8x48xf32> to vector<1x8x48xf32>
    %177 = vector.extract_strided_slice %154 {offsets = [8, 144], sizes = [8, 48], strides = [1, 1]} : vector<16x384xf32> to vector<8x48xf32>
    %178 = vector.shape_cast %177 : vector<8x48xf32> to vector<1x8x48xf32>
    %179 = vector.extract_strided_slice %154 {offsets = [8, 192], sizes = [8, 48], strides = [1, 1]} : vector<16x384xf32> to vector<8x48xf32>
    %180 = vector.shape_cast %179 : vector<8x48xf32> to vector<1x8x48xf32>
    %181 = vector.extract_strided_slice %154 {offsets = [8, 240], sizes = [8, 48], strides = [1, 1]} : vector<16x384xf32> to vector<8x48xf32>
    %182 = vector.shape_cast %181 : vector<8x48xf32> to vector<1x8x48xf32>
    %183 = vector.extract_strided_slice %154 {offsets = [8, 288], sizes = [8, 48], strides = [1, 1]} : vector<16x384xf32> to vector<8x48xf32>
    %184 = vector.shape_cast %183 : vector<8x48xf32> to vector<1x8x48xf32>
    %185 = vector.extract_strided_slice %154 {offsets = [8, 336], sizes = [8, 48], strides = [1, 1]} : vector<16x384xf32> to vector<8x48xf32>
    %186 = vector.shape_cast %185 : vector<8x48xf32> to vector<1x8x48xf32>
    %187 = tpu.concatenate %156, %158, %160, %162, %164, %166, %168, %170, %172, %174, %176, %178, %180, %182, %184, %186 in 0 : vector<1x8x48xf32>, vector<1x8x48xf32>, vector<1x8x48xf32>, vector<1x8x48xf32>, vector<1x8x48xf32>, vector<1x8x48xf32>, vector<1x8x48xf32>, vector<1x8x48xf32>, vector<1x8x48xf32>, vector<1x8x48xf32>, vector<1x8x48xf32>, vector<1x8x48xf32>, vector<1x8x48xf32>, vector<1x8x48xf32>, vector<1x8x48xf32>, vector<1x8x48xf32> -> vector<16x8x48xf32>
    %188 = arith.truncf %187 : vector<16x8x48xf32> to vector<16x8x48xbf16>
    %189 = vector.extract_strided_slice %188 {offsets = [0, 0, 0], sizes = [16, 8, 16], strides = [1, 1, 1]} : vector<16x8x48xbf16> to vector<16x8x16xbf16>
    %190 = vector.extract_strided_slice %188 {offsets = [0, 0, 16], sizes = [16, 8, 16], strides = [1, 1, 1]} : vector<16x8x48xbf16> to vector<16x8x16xbf16>
    %191 = vector.extract_strided_slice %188 {offsets = [0, 0, 32], sizes = [16, 8, 16], strides = [1, 1, 1]} : vector<16x8x48xbf16> to vector<16x8x16xbf16>
    "tpu.trace_start"() <{level = 10 : i32, message = "gqd,gkd->gqk"}> : () -> ()
    %cst_48 = arith.constant dense<0.000000e+00> : vector<16x8x8xf32>
    %192 = tpu.matmul %189, %190, %cst_48 {dimension_numbers = #tpu.dot_dimension_numbers<[2], [2], [1], [1], [0, 0, 0, 1, 1, 1], [0], [0]>} : vector<16x8x16xbf16>, vector<16x8x16xbf16>, vector<16x8x8xf32> -> vector<16x8x8xf32>
    "tpu.trace_stop"() : () -> ()
    %cst_49 = arith.constant 2.500000e-01 : f32
    %193 = vector.broadcast %cst_49 : f32 to vector<16x8x8xf32>
    %194 = arith.mulf %192, %193 : vector<16x8x8xf32>
    %cst_50 = arith.constant dense<0xFF800000> : vector<16x8xf32>
    %195 = vector.multi_reduction <maximumf>, %194, %cst_50 [2] : vector<16x8x8xf32> to vector<16x8xf32>
    %196 = vector.shape_cast %195 : vector<16x8xf32> to vector<16x8x1xf32>
    %197 = vector.broadcast %196 : vector<16x8x1xf32> to vector<16x8x8xf32>
    %198 = arith.subf %194, %197 : vector<16x8x8xf32>
    %199 = math.exp %198 : vector<16x8x8xf32>
    %cst_51 = arith.constant dense<0.000000e+00> : vector<16x8xf32>
    %200 = vector.multi_reduction <add>, %199, %cst_51 [2] : vector<16x8x8xf32> to vector<16x8xf32>
    %201 = vector.shape_cast %200 : vector<16x8xf32> to vector<16x8x1xf32>
    %202 = tpu.reciprocal %201 {approx = true} : vector<16x8x1xf32> -> vector<16x8x1xf32>
    %203 = vector.broadcast %202 : vector<16x8x1xf32> to vector<16x8x8xf32>
    %204 = arith.mulf %199, %203 : vector<16x8x8xf32>
    %205 = arith.truncf %204 : vector<16x8x8xf32> to vector<16x8x8xbf16>
    "tpu.trace_start"() <{level = 10 : i32, message = "gqk,gkd->gqd"}> : () -> ()
    %cst_52 = arith.constant dense<0.000000e+00> : vector<16x8x16xf32>
    %206 = tpu.matmul %205, %191, %cst_52 {dimension_numbers = #tpu.dot_dimension_numbers<[2], [1], [1], [2], [0, 0, 0, 1, 1, 2], [0], [0]>} : vector<16x8x8xbf16>, vector<16x8x16xbf16>, vector<16x8x16xf32> -> vector<16x8x16xf32>
    "tpu.trace_stop"() : () -> ()
    %207 = arith.truncf %206 : vector<16x8x16xf32> to vector<16x8x16xbf16>
    %208 = vector.extract_strided_slice %207 {offsets = [0, 0, 0], sizes = [16, 1, 16], strides = [1, 1, 1]} : vector<16x8x16xbf16> to vector<16x1x16xbf16>
    %209 = vector.shape_cast %208 : vector<16x1x16xbf16> to vector<16x16xbf16>
    %210 = vector.extract_strided_slice %207 {offsets = [0, 1, 0], sizes = [16, 1, 16], strides = [1, 1, 1]} : vector<16x8x16xbf16> to vector<16x1x16xbf16>
    %211 = vector.shape_cast %210 : vector<16x1x16xbf16> to vector<16x16xbf16>
    %212 = vector.extract_strided_slice %207 {offsets = [0, 2, 0], sizes = [16, 1, 16], strides = [1, 1, 1]} : vector<16x8x16xbf16> to vector<16x1x16xbf16>
    %213 = vector.shape_cast %212 : vector<16x1x16xbf16> to vector<16x16xbf16>
    %214 = vector.extract_strided_slice %207 {offsets = [0, 3, 0], sizes = [16, 1, 16], strides = [1, 1, 1]} : vector<16x8x16xbf16> to vector<16x1x16xbf16>
    %215 = vector.shape_cast %214 : vector<16x1x16xbf16> to vector<16x16xbf16>
    %216 = vector.extract_strided_slice %207 {offsets = [0, 4, 0], sizes = [16, 1, 16], strides = [1, 1, 1]} : vector<16x8x16xbf16> to vector<16x1x16xbf16>
    %217 = vector.shape_cast %216 : vector<16x1x16xbf16> to vector<16x16xbf16>
    %218 = vector.extract_strided_slice %207 {offsets = [0, 5, 0], sizes = [16, 1, 16], strides = [1, 1, 1]} : vector<16x8x16xbf16> to vector<16x1x16xbf16>
    %219 = vector.shape_cast %218 : vector<16x1x16xbf16> to vector<16x16xbf16>
    %220 = vector.extract_strided_slice %207 {offsets = [0, 6, 0], sizes = [16, 1, 16], strides = [1, 1, 1]} : vector<16x8x16xbf16> to vector<16x1x16xbf16>
    %221 = vector.shape_cast %220 : vector<16x1x16xbf16> to vector<16x16xbf16>
    %222 = vector.extract_strided_slice %207 {offsets = [0, 7, 0], sizes = [16, 1, 16], strides = [1, 1, 1]} : vector<16x8x16xbf16> to vector<16x1x16xbf16>
    %223 = vector.shape_cast %222 : vector<16x1x16xbf16> to vector<16x16xbf16>
    %224 = tpu.concatenate %209, %211, %213, %215, %217, %219, %221, %223 in 1 : vector<16x16xbf16>, vector<16x16xbf16>, vector<16x16xbf16>, vector<16x16xbf16>, vector<16x16xbf16>, vector<16x16xbf16>, vector<16x16xbf16>, vector<16x16xbf16> -> vector<16x128xbf16>
    %cst_53 = arith.constant dense<0.000000e+00> : vector<16x128xf32>
    %225 = tpu.matmul %224, %8, %cst_53 {dimension_numbers = #tpu.dot_dimension_numbers<[1], [0], [0], [1], [0, 0, 1, 1], [], []>} : vector<16x128xbf16>, vector<128x128xbf16>, vector<16x128xf32> -> vector<16x128xf32>
    %226 = vector.broadcast %9 : vector<1x128xf32> to vector<16x128xf32>
    %227 = arith.addf %225, %226 : vector<16x128xf32>
    %228 = arith.addf %227, %150 : vector<16x128xf32>
    %cst_54 = arith.constant dense<0.000000e+00> : vector<16xf32>
    %229 = vector.multi_reduction <add>, %228, %cst_54 [1] : vector<16x128xf32> to vector<16xf32>
    %230 = vector.shape_cast %229 : vector<16xf32> to vector<16x1xf32>
    %cst_55 = arith.constant 1.280000e+02 : f32
    %231 = vector.broadcast %cst_55 : f32 to vector<16x1xf32>
    %232 = arith.divf %230, %231 : vector<16x1xf32>
    %233 = vector.broadcast %232 : vector<16x1xf32> to vector<16x128xf32>
    %234 = arith.subf %228, %233 : vector<16x128xf32>
    %235 = arith.mulf %234, %234 : vector<16x128xf32>
    %cst_56 = arith.constant dense<0.000000e+00> : vector<16xf32>
    %236 = vector.multi_reduction <add>, %235, %cst_56 [1] : vector<16x128xf32> to vector<16xf32>
    %237 = vector.shape_cast %236 : vector<16xf32> to vector<16x1xf32>
    %cst_57 = arith.constant 1.280000e+02 : f32
    %238 = vector.broadcast %cst_57 : f32 to vector<16x1xf32>
    %239 = arith.divf %237, %238 : vector<16x1xf32>
    %240 = vector.broadcast %232 : vector<16x1xf32> to vector<16x128xf32>
    %241 = arith.subf %228, %240 : vector<16x128xf32>
    %cst_58 = arith.constant 9.99999974E-6 : f32
    %242 = vector.broadcast %cst_58 : f32 to vector<16x1xf32>
    %243 = arith.addf %239, %242 : vector<16x1xf32>
    %244 = math.rsqrt %243 : vector<16x1xf32>
    %245 = vector.broadcast %244 : vector<16x1xf32> to vector<16x128xf32>
    %246 = arith.mulf %241, %245 : vector<16x128xf32>
    %247 = vector.broadcast %10 : vector<1x128xf32> to vector<16x128xf32>
    %248 = arith.mulf %246, %247 : vector<16x128xf32>
    %249 = vector.broadcast %11 : vector<1x128xf32> to vector<16x128xf32>
    %250 = arith.addf %248, %249 : vector<16x128xf32>
    %251 = arith.truncf %250 : vector<16x128xf32> to vector<16x128xbf16>
    %cst_59 = arith.constant dense<0.000000e+00> : vector<16x256xf32>
    %252 = tpu.matmul %251, %12, %cst_59 {dimension_numbers = #tpu.dot_dimension_numbers<[1], [0], [0], [1], [0, 0, 1, 1], [], []>} : vector<16x128xbf16>, vector<128x256xbf16>, vector<16x256xf32> -> vector<16x256xf32>
    %253 = vector.broadcast %13 : vector<1x256xf32> to vector<16x256xf32>
    %254 = arith.addf %252, %253 : vector<16x256xf32>
    %cst_60 = arith.constant 0.000000e+00 : f32
    %255 = vector.broadcast %cst_60 : f32 to vector<16x256xf32>
    %256 = arith.maximumf %254, %255 : vector<16x256xf32>
    %257 = arith.truncf %256 : vector<16x256xf32> to vector<16x256xbf16>
    %cst_61 = arith.constant dense<0.000000e+00> : vector<16x128xf32>
    %258 = tpu.matmul %257, %14, %cst_61 {dimension_numbers = #tpu.dot_dimension_numbers<[1], [0], [0], [1], [0, 0, 1, 1], [], []>} : vector<16x256xbf16>, vector<256x128xbf16>, vector<16x128xf32> -> vector<16x128xf32>
    %259 = vector.broadcast %15 : vector<1x128xf32> to vector<16x128xf32>
    %260 = arith.addf %258, %259 : vector<16x128xf32>
    %261 = arith.addf %260, %250 : vector<16x128xf32>
    %cst_62 = arith.constant dense<0.000000e+00> : vector<16xf32>
    %262 = vector.multi_reduction <add>, %261, %cst_62 [1] : vector<16x128xf32> to vector<16xf32>
    %263 = vector.shape_cast %262 : vector<16xf32> to vector<16x1xf32>
    %cst_63 = arith.constant 1.280000e+02 : f32
    %264 = vector.broadcast %cst_63 : f32 to vector<16x1xf32>
    %265 = arith.divf %263, %264 : vector<16x1xf32>
    %266 = vector.broadcast %265 : vector<16x1xf32> to vector<16x128xf32>
    %267 = arith.subf %261, %266 : vector<16x128xf32>
    %268 = arith.mulf %267, %267 : vector<16x128xf32>
    %cst_64 = arith.constant dense<0.000000e+00> : vector<16xf32>
    %269 = vector.multi_reduction <add>, %268, %cst_64 [1] : vector<16x128xf32> to vector<16xf32>
    %270 = vector.shape_cast %269 : vector<16xf32> to vector<16x1xf32>
    %cst_65 = arith.constant 1.280000e+02 : f32
    %271 = vector.broadcast %cst_65 : f32 to vector<16x1xf32>
    %272 = arith.divf %270, %271 : vector<16x1xf32>
    %273 = vector.broadcast %265 : vector<16x1xf32> to vector<16x128xf32>
    %274 = arith.subf %261, %273 : vector<16x128xf32>
    %cst_66 = arith.constant 9.99999974E-6 : f32
    %275 = vector.broadcast %cst_66 : f32 to vector<16x1xf32>
    %276 = arith.addf %272, %275 : vector<16x1xf32>
    %277 = math.rsqrt %276 : vector<16x1xf32>
    %278 = vector.broadcast %277 : vector<16x1xf32> to vector<16x128xf32>
    %279 = arith.mulf %274, %278 : vector<16x128xf32>
    %280 = vector.broadcast %16 : vector<1x128xf32> to vector<16x128xf32>
    %281 = arith.mulf %279, %280 : vector<16x128xf32>
    %282 = vector.broadcast %17 : vector<1x128xf32> to vector<16x128xf32>
    %283 = arith.addf %281, %282 : vector<16x128xf32>
    %284 = vector.shape_cast %283 : vector<16x128xf32> to vector<2x8x128xf32>
    %c0_67 = arith.constant 0 : index
    %c0_68 = arith.constant 0 : index
    %c0_69 = arith.constant 0 : index
    %285 = vector.load %arg15[%c0_67, %c0_68, %c0_69] : memref<2x8x128xf32, #tpu.memory_space<vmem>>, vector<2x8x128xf32>
    tpu.vector_store %arg15[%c0_67, %c0_68, %c0_69], %284 {strides = array<i32>} : memref<2x8x128xf32, #tpu.memory_space<vmem>>, vector<2x8x128xf32>,
    return
  }
  func.func @transform_0(%arg0: i32) -> (i32, i32, i32) {
    %c0_i32 = arith.constant 0 : i32
    %c0_i32_0 = arith.constant 0 : i32
    %c0_i32_1 = arith.constant 0 : i32
    return %arg0, %c0_i32, %c0_i32_0 : i32, i32, i32
  }
  func.func @transform_1(%arg0: i32) -> (i32, i32) {
    %c0_i32 = arith.constant 0 : i32
    %c0_i32_0 = arith.constant 0 : i32
    %c0_i32_1 = arith.constant 0 : i32
    return %c0_i32, %c0_i32_0 : i32, i32
  }
  func.func @transform_2(%arg0: i32) -> (i32, i32) {
    %c0_i32 = arith.constant 0 : i32
    %c0_i32_0 = arith.constant 0 : i32
    %c0_i32_1 = arith.constant 0 : i32
    return %c0_i32, %c0_i32_0 : i32, i32
  }
  func.func @transform_3(%arg0: i32) -> (i32, i32) {
    %c0_i32 = arith.constant 0 : i32
    %c0_i32_0 = arith.constant 0 : i32
    %c0_i32_1 = arith.constant 0 : i32
    return %c0_i32, %c0_i32_0 : i32, i32
  }
  func.func @transform_4(%arg0: i32) -> (i32, i32) {
    %c0_i32 = arith.constant 0 : i32
    %c0_i32_0 = arith.constant 0 : i32
    %c0_i32_1 = arith.constant 0 : i32
    return %c0_i32, %c0_i32_0 : i32, i32
  }
  func.func @transform_5(%arg0: i32) -> (i32, i32) {
    %c0_i32 = arith.constant 0 : i32
    %c0_i32_0 = arith.constant 0 : i32
    %c0_i32_1 = arith.constant 0 : i32
    return %c0_i32, %c0_i32_0 : i32, i32
  }
  func.func @transform_6(%arg0: i32) -> (i32, i32) {
    %c0_i32 = arith.constant 0 : i32
    %c0_i32_0 = arith.constant 0 : i32
    %c0_i32_1 = arith.constant 0 : i32
    return %c0_i32, %c0_i32_0 : i32, i32
  }
  func.func @transform_7(%arg0: i32) -> (i32, i32) {
    %c0_i32 = arith.constant 0 : i32
    %c0_i32_0 = arith.constant 0 : i32
    %c0_i32_1 = arith.constant 0 : i32
    return %c0_i32, %c0_i32_0 : i32, i32
  }
  func.func @transform_8(%arg0: i32) -> (i32, i32) {
    %c0_i32 = arith.constant 0 : i32
    %c0_i32_0 = arith.constant 0 : i32
    %c0_i32_1 = arith.constant 0 : i32
    return %c0_i32, %c0_i32_0 : i32, i32
  }
  func.func @transform_9(%arg0: i32) -> (i32, i32) {
    %c0_i32 = arith.constant 0 : i32
    %c0_i32_0 = arith.constant 0 : i32
    %c0_i32_1 = arith.constant 0 : i32
    return %c0_i32, %c0_i32_0 : i32, i32
  }
  func.func @transform_10(%arg0: i32) -> (i32, i32) {
    %c0_i32 = arith.constant 0 : i32
    %c0_i32_0 = arith.constant 0 : i32
    %c0_i32_1 = arith.constant 0 : i32
    return %c0_i32, %c0_i32_0 : i32, i32
  }
  func.func @transform_11(%arg0: i32) -> (i32, i32) {
    %c0_i32 = arith.constant 0 : i32
    %c0_i32_0 = arith.constant 0 : i32
    %c0_i32_1 = arith.constant 0 : i32
    return %c0_i32, %c0_i32_0 : i32, i32
  }
  func.func @transform_12(%arg0: i32) -> (i32, i32) {
    %c0_i32 = arith.constant 0 : i32
    %c0_i32_0 = arith.constant 0 : i32
    %c0_i32_1 = arith.constant 0 : i32
    return %c0_i32, %c0_i32_0 : i32, i32
  }
  func.func @transform_13(%arg0: i32) -> (i32, i32) {
    %c0_i32 = arith.constant 0 : i32
    %c0_i32_0 = arith.constant 0 : i32
    %c0_i32_1 = arith.constant 0 : i32
    return %c0_i32, %c0_i32_0 : i32, i32
  }
  func.func @transform_14(%arg0: i32) -> (i32, i32, i32) {
    %c0_i32 = arith.constant 0 : i32
    %c0_i32_0 = arith.constant 0 : i32
    %c0_i32_1 = arith.constant 0 : i32
    return %arg0, %c0_i32, %c0_i32_0 : i32, i32, i32
  }
}

</mosaic_0001>

<bundles_post_ra>
// kernel: tpu_custom_call.1
= control target key start
LH: loop header
LB: loop body
LE: loop exit
PB: predicated region body
PF: predicated region fallthrough
CT: control target
= control target key end

     0   :  { %s9572_s0 = inlined_call_operand.hbm [shape: f32[4,8,128], index: 0, kind: input, shape index: {}]   ;;  %s9573_s1 = inlined_call_operand.hbm [shape: f32[8,128], index: 1, kind: input, shape index: {}]   ;;  %s9574_s2 = inlined_call_operand.hbm [shape: bf16[128,384], index: 2, kind: input, shape index: {}]   ;;  %s9575_s3 = inlined_call_operand.vmem [shape: f32[1,384], index: 3, kind: input, shape index: {}]   ;;  %s9576_s4 = inlined_call_operand.hbm [shape: bf16[128,128], index: 4, kind: input, shape index: {}]   ;;  %s9577_s5 = inlined_call_operand.vmem [shape: f32[1,128], index: 5, kind: input, shape index: {}]   ;;  %s9578_s6 = inlined_call_operand.vmem [shape: f32[1,128], index: 6, kind: input, shape index: {}]   ;;  %s9579_s7 = inlined_call_operand.vmem [shape: f32[1,128], index: 7, kind: input, shape index: {}]   ;;  %s9580_s8 = inlined_call_operand.hbm [shape: bf16[128,256], index: 8, kind: input, shape index: {}]   ;;  %s9581_s9 = inlined_call_operand.vmem [shape: f32[1,256], index: 9, kind: input, shape index: {}]   ;;  %s9582_s10 = inlined_call_operand.hbm [shape: bf16[256,128], index: 10, kind: input, shape index: {}]   ;;  %s9583_s11 = inlined_call_operand.vmem [shape: f32[1,128], index: 11, kind: input, shape index: {}]   ;;  %s9584_s12 = inlined_call_operand.vmem [shape: f32[1,128], index: 12, kind: input, shape index: {}]   ;;  %s9585_s13 = inlined_call_operand.vmem [shape: f32[1,128], index: 13, kind: input, shape index: {}]   ;;  %s9586_s14 = inlined_call_operand.hbm [shape: f32[4,8,128], index: 14, kind: output, shape index: {}]  }
   0x1   :  { %9605 = sst [smem:[#allocation19_spill]] %s9572_s0 }
   0x2   :  { %9606 = sst [smem:[#allocation20_spill]] %s9573_s1 }
   0x3   :  { %9607 = sst [smem:[#allocation21_spill]] %s9574_s2 }
   0x4   :  { %9608 = sst [smem:[#allocation22_spill]] %s9575_s3 }
   0x5   :  { %9609 = sst [smem:[#allocation23_spill]] %s9576_s4 }
   0x6   :  { %9610 = sst [smem:[#allocation24_spill]] %s9583_s11 }
   0x7   :  { %9611 = sst [smem:[#allocation25_spill]] %s9584_s12 }
   0x8   :  { %9612 = sst [smem:[#allocation26_spill]] %s9585_s13 }
   0x9   :  { %9613 = sst [smem:[#allocation27_spill]] %s9586_s14 }
   0xa   :  { %19 = vsyncpa [#allocation3], 0 }
   0xb   :  { %21 = vsyncpa [#allocation3 + $0x1], 0 }
   0xc   :  { %22 = vsyncpa [#allocation6], 0 }
   0xd   :  { %23 = vsyncpa [#allocation9], 0 }
   0xe   :  { %24 = vsyncpa [#allocation12], 0 }
   0xf   :  { %25 = vsyncpa [#allocation4], 0 }
  0x10   :  { %27 = vsyncpa [#allocation4 + $0x1], 0  ;;  %s7707_s29 = smov 0   ;;  %s7709_s30 = smov 0  }
  0x11   :  { %s7711_s15 = smov 0   ;;  %s7713_s16 = smov 0  }
  0x12 LB: > { %s7607_s17 = smov [#allocation5]   ;;  %s7728_s19 = sadd.s32 4294967295, %s7605_s16   ;;  %s7605_s16 = sphi %s7713_s16, %s9666_s16   ;;  %s7601_s15 = sphi %s7711_s15, %s9665_s15   ;;  %s7597_s30 = sphi %s7709_s30, %s9664_s30   ;;  %s7593_s29 = sphi %s7707_s29, %s9663_s29  }
  0x13   : > { %s376_s18 = sshll.u32 %s7607_s17, 4  ;;  %p6077_p0 = scmp.ge.s32.totalorder %s7605_s16, 1  ;;  %s377_s18 = int_to_ptr.vmem [resolvable:$true] %s376_s18 }
  0x14   : > { %p9589_p1 = scmp.eq.s32.totalorder %s7728_s19, 0  ;;  %p363_p2 = scmp.lt.s32.totalorder %s7605_s16, 3 }
  0x15   : > { %s7608_s21 = smov [#allocation8]   ;;  %s7609_s24 = smov [#allocation7]  }
  0x16   : > { %p7733_p3 = pnand %p6077_p0, %p363_p2  ;;  %s402_s22 = sshll.u32 %s7608_s21, 4  ;;  %s7740_s22 = int_to_ptr.vmem [resolvable:$true] %s402_s22 }
  0x17   : > { %s386_s25 = sshll.u32 %s7609_s24, 4  ;;  %s9616_s1 = sld [smem:[#allocation20_spill]]  ;;  %s7748_s25 = int_to_ptr.vmem [resolvable:$true] %s386_s25 }
  0x18   : > { %s9614_s20 = scalar_select %p7733_p3, 1, 0 }
  0x19   : > { %p6932_p5 = pneg %p7733_p3 }
  0x1b   : > { %p7744_p6 = pnand %p6932_p5, %p9589_p1 }
  0x1d   : > { %s7357_s28 = scalar_lea.hbm %s9616_s1, 128  ;;  %p7758_p8 = pneg %p7744_p6 }
  0x1e   : > { %p7358_p7 = scmp.ne.s32.totalorder %s9616_s1, %s7357_s28  ;;  %p7364_p11 = scmp.lt.u32.totalorder %s7357_s28, %s9616_s1 }
  0x20   : > { %p7360_p9 = pnand %p7758_p8, %p7358_p7 }
  0x22   : > { %p7361_p10 = pneg %p7360_p9 }
  0x24   : > { %p7366_p12 = pnand %p7364_p11, %p7361_p10 }
  0x26   : > { %7369 = shalt.err (!%p7366_p12)
}
  0x27   : > { %s7370_s26 = scalar_lea.vmem %s377_s18, 128  ;;  %p7378_p5 = scmp.lt.s32.totalorder %s377_s18, %s377_s18 }
  0x28   : > { %p7371_p13 = scmp.ne.s32.totalorder %s377_s18, %s7370_s26  ;;  %p7379_p4 = scmp.lt.s32.totalorder %s7370_s26, %s7370_s26 }
  0x2a   : > { %p7373_p0 = pnand %p7371_p13, %p7758_p8  ;;  %p7380_p1 = por %p7379_p4, %p7378_p5 }
  0x2c   : > { %p7374_p2 = pneg %p7373_p0 }
  0x2e   : > { %p7381_p3 = pnand %p7380_p1, %p7374_p2 }
  0x30   : > { %7384 = shalt.err (!%p7381_p3)
}
  0x31   : > { %6935 = dma.hbm_to_vmem [thread:$0]  (!%p7744_p6), %s9616_s1, 128, %s377_s18, [#allocation6]  }
  0x32   : > { %s9618_s4 = sld [smem:[#allocation23_spill]] }
  0x38   : > { %s7385_s17 = scalar_lea.hbm %s9618_s4, 1024 }
  0x39   : > { %p7386_p7 = scmp.ne.s32.totalorder %s9618_s4, %s7385_s17  ;;  %p7392_p1 = scmp.lt.u32.totalorder %s7385_s17, %s9618_s4 }
  0x3b   : > { %p7388_p9 = pnand %p7386_p7, %p7758_p8 }
  0x3d   : > { %p7389_p4 = pneg %p7388_p9 }
  0x3f   : > { %p7394_p3 = pnand %p7392_p1, %p7389_p4 }
  0x41   : > { %7397 = shalt.err (!%p7394_p3)
}
  0x42   : > { %s7398_s18 = scalar_lea.vmem %s7740_s22, 1024  ;;  %p7406_p13 = scmp.lt.s32.totalorder %s7740_s22, %s7740_s22 }
  0x43   : > { %p7399_p10 = scmp.ne.s32.totalorder %s7740_s22, %s7398_s18  ;;  %p7407_p0 = scmp.lt.s32.totalorder %s7398_s18, %s7398_s18 }
  0x45   : > { %p7401_p11 = pnand %p7399_p10, %p7758_p8  ;;  %p7408_p2 = por %p7407_p0, %p7406_p13 }
  0x47   : > { %p7402_p12 = pneg %p7401_p11 }
  0x49   : > { %p7409_p5 = pnand %p7408_p2, %p7402_p12 }
  0x4b   : > { %7412 = shalt.err (!%p7409_p5)
}
  0x4c   : > { %s9593_s12 = smov 64   ;;  %s9594_s11 = smov 4  }
  0x4d   : > { %6941 = dma.hbm_to_vmem [thread:$0]  (!%p7744_p6), %s9618_s4, 1024, %s7740_s22, [#allocation9], %s9593_s12, %s9593_s12, %s9594_s11  }
  0x4e   : > { %s9619_s2 = sld [smem:[#allocation21_spill]] }
  0x54   : > { %s7413_s17 = scalar_lea.hbm %s9619_s2, 3072 }
  0x55   : > { %p7414_p7 = scmp.ne.s32.totalorder %s9619_s2, %s7413_s17  ;;  %p7420_p1 = scmp.lt.u32.totalorder %s7413_s17, %s9619_s2 }
  0x57   : > { %p7416_p9 = pnand %p7414_p7, %p7758_p8 }
  0x59   : > { %p7417_p4 = pneg %p7416_p9 }
  0x5b   : > { %p7422_p3 = pnand %p7420_p1, %p7417_p4 }
  0x5d   : > { %7425 = shalt.err (!%p7422_p3)
}
  0x5e   : > { %s7426_s22 = scalar_lea.vmem %s7748_s25, 3072  ;;  %p7434_p13 = scmp.lt.s32.totalorder %s7748_s25, %s7748_s25 }
  0x5f   : > { %p7427_p10 = scmp.ne.s32.totalorder %s7748_s25, %s7426_s22  ;;  %p7435_p0 = scmp.lt.s32.totalorder %s7426_s22, %s7426_s22 }
  0x61   : > { %p7429_p11 = pnand %p7427_p10, %p7758_p8  ;;  %p7436_p2 = por %p7435_p0, %p7434_p13 }
  0x63   : > { %p7430_p12 = pneg %p7429_p11 }
  0x65   : > { %p7437_p5 = pnand %p7436_p2, %p7430_p12 }
  0x67   : > { %7440 = shalt.err (!%p7437_p5)
}
  0x68   : > { %s7612_s14 = smov 192   ;;  %s7613_s1 = smov 12  }
  0x69   : > { %6938 = dma.hbm_to_vmem [thread:$0]  (!%p7744_p6), %s9619_s2, 3072, %s7748_s25, [#allocation6], %s7612_s14, %s7612_s14, %s7613_s1  }
  0x6a   : > { %s7614_s28 = smov [#allocation10]   ;;  %s7441_s18 = scalar_lea.hbm %s9580_s8, 2048 }
  0x6b   : > { %s424_s17 = sshll.u32 %s7614_s28, 4  ;;  %p7442_p7 = scmp.ne.s32.totalorder %s9580_s8, %s7441_s18  ;;  %s425_s17 = int_to_ptr.vmem [resolvable:$true] %s424_s17 }
  0x6c   : > { %p7448_p1 = scmp.lt.u32.totalorder %s7441_s18, %s9580_s8 }
  0x6d   : > { %p7444_p9 = pnand %p7442_p7, %p7758_p8 }
  0x6f   : > { %p7445_p4 = pneg %p7444_p9 }
  0x71   : > { %p7450_p3 = pnand %p7448_p1, %p7445_p4 }
  0x73   : > { %7453 = shalt.err (!%p7450_p3)
}
  0x74   : > { %s7454_s25 = scalar_lea.vmem %s425_s17, 2048  ;;  %p7462_p13 = scmp.lt.s32.totalorder %s425_s17, %s425_s17 }
  0x75   : > { %p7455_p10 = scmp.ne.s32.totalorder %s425_s17, %s7454_s25  ;;  %p7463_p0 = scmp.lt.s32.totalorder %s7454_s25, %s7454_s25 }
  0x77   : > { %p7457_p11 = pnand %p7455_p10, %p7758_p8  ;;  %p7464_p2 = por %p7463_p0, %p7462_p13 }
  0x79   : > { %p7458_p12 = pneg %p7457_p11 }
  0x7b   : > { %p7465_p5 = pnand %p7464_p2, %p7458_p12 }
  0x7d   : > { %7468 = shalt.err (!%p7465_p5)
}
  0x7e   : > { %s9595_s12 = smov 128   ;;  %s9596_s14 = smov 8  }
  0x7f   : > { %6944 = dma.hbm_to_vmem [thread:$0]  (!%p7744_p6), %s9580_s8, 2048, %s425_s17, [#allocation9], %s9595_s12, %s9595_s12, %s9596_s14  }
  0x80   : > { %s7617_s1 = smov [#allocation11]   ;;  %s7469_s24 = scalar_lea.hbm %s9582_s10, 2048 }
  0x81   : > { %s440_s27 = sshll.u32 %s7617_s1, 4  ;;  %p7470_p7 = scmp.ne.s32.totalorder %s9582_s10, %s7469_s24  ;;  %s441_s27 = int_to_ptr.vmem [resolvable:$true] %s440_s27 }
  0x82   : > { %p7476_p1 = scmp.lt.u32.totalorder %s7469_s24, %s9582_s10 }
  0x83   : > { %p7472_p9 = pnand %p7470_p7, %p7758_p8 }
  0x85   : > { %p7473_p4 = pneg %p7472_p9 }
  0x87   : > { %p7478_p3 = pnand %p7476_p1, %p7473_p4 }
  0x89   : > { %7481 = shalt.err (!%p7478_p3)
}
  0x8a   : > { %s7482_s17 = scalar_lea.vmem %s441_s27, 2048  ;;  %p7490_p13 = scmp.lt.s32.totalorder %s441_s27, %s441_s27 }
  0x8b   : > { %p7483_p10 = scmp.ne.s32.totalorder %s441_s27, %s7482_s17  ;;  %p7491_p0 = scmp.lt.s32.totalorder %s7482_s17, %s7482_s17 }
  0x8d   : > { %p7485_p11 = pnand %p7483_p10, %p7758_p8  ;;  %p7492_p2 = por %p7491_p0, %p7490_p13 }
  0x8f   : > { %p7486_p12 = pneg %p7485_p11 }
  0x91   : > { %p7493_p5 = pnand %p7492_p2, %p7486_p12 }
  0x93   : > { %7496 = shalt.err (!%p7493_p5)
}
  0x94   : > { %s9620_s4 = smov 4   ;;  %s9621_s11 = smov 64  }
  0x95   : > { %6947 = dma.hbm_to_vmem [thread:$0]  (!%p7744_p6), %s9582_s10, 2048, %s441_s27, [#allocation12], %s9621_s11, %s9621_s11, %s9620_s4  }
  0x96   : > { %s6076_s23 = sadd.s32 4294967294, %s7605_s16   ;;  %s7867_s21 = sadd.s32 1, %s7605_s16  }
  0x97   : > { %s40_s28 = sadd.s32 1, %s7601_s15  ;;  %s37_s24 = ssub.s32 %s7605_s16, %s7867_s21 }
  0x98   : > { %p47_p8 = scmp.ne.s32.totalorder %s7601_s15, %s7597_s30  ;;  %p38_p7 = scmp.eq.s32.totalorder %s37_s24, 0 }
  0x99   : > { %p48_p9 = scmp.eq.s32.totalorder %s7605_s16, 0  ;;  %p53_p4 = scmp.ne.s32.totalorder %s7597_s30, %s7593_s29 }
  0x9a   : > { %p350_p1 = scmp.eq.s32.totalorder %s7728_s19, 1  ;;  %p9622_p10 = scmp.eq.s32.totalorder %s7728_s19, 0 }
  0x9b   : > { %s7879_s26 = scalar_select %p38_p7, %s7601_s15, %s40_s28  }
  0x9c   : > { %p49_p3 = por %p48_p9, %p47_p8  ;;  %p7883_p11 = por %p9622_p10, %p53_p4 }
  0x9d   : > { %p7887_p6 = por %p350_p1, %p47_p8  ;;  %p356_p12 = scmp.eq.s32.totalorder %s6076_s23, 1 }
  0x9e   : > { %p6961_p13 = scmp.lt.s32.totalorder %s7605_s16, 2  ;;  %s463_s22 = sand.u32 1, %s7601_s15  }
  0x9f   : > { %s9624_s27 = scalar_select %p7887_p6, 1, 0 }
  0xa0   : > { %p7893_p0 = por %p356_p12, %p53_p4  ;;  %s6084_s17 = sshll.u32 %s463_s22, 4 }
  0xa1   : > { %s6234_s4 = sshll.u32 %s7605_s16, 8  ;;  %s9626_s0 = sld [smem:[#allocation19_spill]] }
  0xa2   : > { %s9625_s25 = scalar_select %p7893_p0, 1, 0 }
  0xa3   : > { %s467_s28 = scalar_lea.vmem [#allocation2], %s6084_s17  ;;  %p7903_p2 = pnand %p6961_p13, %p49_p3 }
  0xa4   : > { %s474_s24 = sshll.u32 %s467_s28, 4  ;;  %s7909_s12 = scalar_lea.sflag [#allocation3], %s463_s22  ;;  %s7907_s24 = int_to_ptr.vmem [resolvable:$true] %s474_s24 }
  0xa5   : > { %p7499_p8 = pneg %p7903_p2 }
  0xa7   : > { %s7901_s13 = scalar_lea.hbm %s9626_s0, %s6234_s4  ;;  %s7502_s11 = scalar_lea.hbm %s9626_s0, 512 }
  0xa8   : > { %s7497_s14 = scalar_lea.hbm %s7901_s13, 256  ;;  %p7503_p4 = scmp.lt.u32.totalorder %s7901_s13, %s9626_s0 }
  0xa9   : > { %p7498_p5 = scmp.ne.s32.totalorder %s7901_s13, %s7497_s14  ;;  %p7504_p1 = scmp.lt.u32.totalorder %s7502_s11, %s7497_s14 }
  0xaa   : > { %p7506_p10 = scmp.lt.u32.totalorder %s7497_s14, %s7901_s13 }
  0xab   : > { %p7500_p7 = pnand %p7499_p8, %p7498_p5  ;;  %p7505_p3 = por %p7504_p1, %p7503_p4 }
  0xad   : > { %p7501_p9 = pneg %p7500_p7  ;;  %p7507_p12 = por %p7506_p10, %p7505_p3 }
  0xaf   : > { %p7508_p13 = pnand %p7507_p12, %p7501_p9 }
  0xb1   : > { %7511 = shalt.err (!%p7508_p13)
}
  0xb2   : > { %s7512_s22 = scalar_lea.vmem %s7907_s24, 256  ;;  %s7618_s17 = smov [#allocation2]  }
  0xb3   : > { %p7513_p5 = scmp.ne.s32.totalorder %s7907_s24, %s7512_s22  ;;  %s7517_s4 = sshll.u32 %s7618_s17, 4  ;;  %s7518_s4 = int_to_ptr.vmem [resolvable:$false] %s7517_s4 }
  0xb4   : > { %s7519_s1 = scalar_lea.vmem %s7518_s4, 512  ;;  %p7520_p6 = scmp.lt.s32.totalorder %s7907_s24, %s7518_s4 }
  0xb5   : > { %p7515_p7 = pnand %p7513_p5, %p7499_p8  ;;  %p7521_p4 = scmp.lt.s32.totalorder %s7519_s1, %s7512_s22 }
  0xb7   : > { %p7516_p0 = pneg %p7515_p7  ;;  %p7522_p1 = por %p7521_p4, %p7520_p6 }
  0xb9   : > { %p7523_p3 = pnand %p7522_p1, %p7516_p0 }
  0xbb   : > { %7526 = shalt.err (!%p7523_p3)
}
  0xbc   : > { %s9628_s14 = smov 8   ;;  %s9629_s11 = smov 128  }
  0xbd   : > { %6951 = dma.hbm_to_vmem [thread:$0]  (!%p7903_p2), %s7901_s13, 256, %s7907_s24, %s7909_s12, %s9629_s11, %s9629_s11, %s9628_s14  }
  0xbe   : > { %p9630_p8 = scmp.ne.s32.totalorder %s9614_s20, 0 }
  0xbf   : > { %s7943_s28 = sand.u32 (!%p9630_p8), 1, %s7597_s30  }
  0xc0   : > { %486 = sbr.rel (%p9630_p8) target bundleno = 5741 (0x166d), region = 76  ;;  %s9599_s22 = sshll.u32 (!%p9630_p8), %s7943_s28, 4 }
  0xc1   : > { %s489_s17 = scalar_lea.sflag (!%p9630_p8), [#allocation3], %s7943_s28  ;;  %s7949_s23 = scalar_lea.vmem (!%p9630_p8), [#allocation2], %s9599_s22 }
  0xc7   : > { %7572 = dma.done.wait (%p7883_p11), %s489_s17, 256  }
  0xc8   : > { %7574 = vsyncadd (%p7883_p11), %s489_s17, 4294967040  ;;  %p9631_p6 = scmp.eq.s32.totalorder %s7728_s19, 0 }
  0xca   : > { %7576 = dma.done.wait (%p9631_p6), [#allocation6], 3200   ;;  %p9632_p0 = pmov %p9631_p6 }
  0xcc   : > { %7578 = vsyncadd (%p9632_p0), [#allocation6], 4294964096  ;;  %p9633_p2 = pmov %p9632_p0 }
  0xcd   : > { %p9634_p9 = pmov %p9632_p0 }
  0xce   : > { %7580 = dma.done.wait (%p9633_p2), [#allocation9], 3072  }
  0xcf   : > { %7582 = vsyncadd (%p9634_p9), [#allocation9], 4294964224  ;;  %p9635_p10 = pmov %p9632_p0 }
  0xd0   : > { %p9636_p12 = pmov %p9632_p0 }
  0xd1   : > { %7584 = dma.done.wait (%p9635_p10), [#allocation12], 2048  }
  0xd2   : > { %7586 = vsyncadd (%p9636_p12), [#allocation12], 4294965248  ;;  %v7619_v0 = vmov 0.0   ;;  %v7620_v1 = vmov 0   ;;  %vm7621_vm0 = vmmov 0   ;;  %v560_v22 = vld [vmem:[%s7949_s23] sm:$0xff]  ;;  %v671_v32 = vlaneseq }
  0xd3   : > { %6444 = vmatprep.subr.bf16.mxu1 %v7619_v0  ;;  %846 = vmatprep.mubr.bf16.mxu0 %v7620_v1  ;;  %v7063_v2 = vld [vmem:[#allocation7 + $0x4] ss:$12 sps:$4 sm:$0xff]   ;;  %v7065_v3 = vld [vmem:[#allocation7] ss:$12 sps:$4 sm:$0xff]   ;;  %v7066_v4 = vld [vmem:[#allocation7 + $0x8] ss:$12 sps:$4 sm:$0xff]  }
  0xd4   : > { %6460 = vmatprep.mubr.msk.bf16.mxu1 %vm7621_vm0, %v7619_v0  ;;  %814 = vmatprep.subr.bf16.mxu0 %v7063_v2  ;;  %v7067_v5 = vld [vmem:[#allocation7 + $0x1c] ss:$12 sps:$4 sm:$0xff]   ;;  %v7069_v6 = vld [vmem:[#allocation7 + $0x18] ss:$12 sps:$4 sm:$0xff]   ;;  %v7070_v7 = vld [vmem:[#allocation7 + $0x20] ss:$12 sps:$4 sm:$0xff]  }
  0xd5   : > { %815 = vmatpush1.bf16.msra.mxu0 %v7065_v3  ;;  %6445 = vmatpush3.bf16.msra.mxu1 %v7066_v4  ;;  %v7071_v8 = vld [vmem:[#allocation7 + $0x34] ss:$12 sps:$4 sm:$0xff]   ;;  %v7073_v9 = vld [vmem:[#allocation7 + $0x30] ss:$12 sps:$4 sm:$0xff]   ;;  %v7074_v10 = vld [vmem:[#allocation7 + $0x38] ss:$12 sps:$4 sm:$0xff]  }
  0xd6   : > { %816 = vmatprep.subr.bf16.mxu0 %v7067_v5  ;;  %6446 = vmatprep.subr.bf16.mxu1 %v7619_v0  ;;  %v7075_v11 = vld [vmem:[#allocation7 + $0x4c] ss:$12 sps:$4 sm:$0xff]   ;;  %v7077_v12 = vld [vmem:[#allocation7 + $0x48] ss:$12 sps:$4 sm:$0xff]   ;;  %v7078_v13 = vld [vmem:[#allocation7 + $0x50] ss:$12 sps:$4 sm:$0xff]  }
  0xd7   : > { %v7079_v14 = vld [vmem:[#allocation7 + $0x64] ss:$12 sps:$4 sm:$0xff]   ;;  %v7081_v15 = vld [vmem:[#allocation7 + $0x60] ss:$12 sps:$4 sm:$0xff]   ;;  %v7082_v16 = vld [vmem:[#allocation7 + $0x68] ss:$12 sps:$4 sm:$0xff]  }
  0xd8   : > { %v7083_v17 = vld [vmem:[#allocation7 + $0x7c] ss:$12 sps:$4 sm:$0xff]   ;;  %v7085_v18 = vld [vmem:[#allocation7 + $0x78] ss:$12 sps:$4 sm:$0xff]   ;;  %v7086_v19 = vld [vmem:[#allocation7 + $0x80] ss:$12 sps:$4 sm:$0xff]  }
  0xd9   : > { %817 = vmatpush1.bf16.msra.mxu0 %v7069_v6  ;;  %6447 = vmatpush3.bf16.msra.mxu1 %v7070_v7  ;;  %v7087_v20 = vld [vmem:[#allocation7 + $0x94] ss:$12 sps:$4 sm:$0xff]   ;;  %v7089_v21 = vld [vmem:[#allocation7 + $0x90] ss:$12 sps:$4 sm:$0xff]   ;;  %v7090_v25 = vld [vmem:[#allocation7 + $0x98] ss:$12 sps:$4 sm:$0xff]  }
  0xda   : > { %818 = vmatprep.subr.bf16.mxu0 %v7071_v8  ;;  %6448 = vmatprep.subr.bf16.mxu1 %v7619_v0  ;;  %v561_v23 = vld [vmem:[%s7949_s23 + $0x8] sm:$0xff]  ;;  %v562_v24 = vld [vmem:[#allocation5] sm:$0xff]  ;;  %v7992_v33 = vshrl.u32 %v671_v32, 7  ;;  %s9637_s3 = sld [smem:[#allocation22_spill]]  ;;  %s7622_s18 = smov 80   ;;  %vm907_vm1 = vcmask 261120  }
  0xdb   : > { %v7091_v26 = vld [vmem:[#allocation7 + $0xac] ss:$12 sps:$4 sm:$0xff]   ;;  %v7093_v27 = vld [vmem:[#allocation7 + $0xa8] ss:$12 sps:$4 sm:$0xff]   ;;  %v7094_v28 = vld [vmem:[#allocation7 + $0xb0] ss:$12 sps:$4 sm:$0xff]   ;;  %v7979_v29 = vadd.f32 %v562_v24, %v560_v22  ;;  %v7981_v30 = vadd.f32 %v562_v24, %v561_v23 }
  0xdc   : > { %v673_v34 = vsub.s32 0, %v7992_v33  ;;  %v677_v36 = vsub.s32 1, %v7992_v33  ;;  %v681_v37 = vsub.s32 2, %v7992_v33  ;;  %s7623_s13 = smov 112   ;;  %s7624_s24 = smov 32   ;;  %vm921_vm2 = vcmask 130048  }
  0xdd   : > { %819 = vmatpush1.bf16.msra.mxu0 %v7073_v9  ;;  %6449 = vmatpush3.bf16.msra.mxu1 %v7074_v10  ;;  %v669_v31 = vpack.c.bf16 %v7981_v30, %v7979_v29  ;;  %s7625_s4 = smov 64   ;;  %s9602_s1 = smov 16   ;;  %vm1776_vm3 = vcmask 64512   ;;  %vm1974_vm4 = vcmask 1043456   ;;  %vm2787_vm5 = vcmask 1041409  }
  0xde   : > { %820 = vmatprep.subr.bf16.mxu0 %v7075_v11  ;;  %6450 = vmatprep.subr.bf16.mxu1 %v7619_v0  ;;  %s7627_s14 = smov 96   ;;  %s9600_s11 = smov 48   ;;  %vm2790_vm6 = vcmask 1042434   ;;  %vm2793_vm7 = vcmask 1043459   ;;  %vm2796_vm8 = vcmask 1044484   ;;  %vm2799_vm9 = vcmask 1045509  }
  0xdf   : > { %vm2802_vm10 = vcmask 1046534   ;;  %vm9598_vm11 = vcmask 1047559   ;;  %vm3044_vm12 = vcmask 392192   ;;  %vm3047_vm13 = vcmask 523264   ;;  %s9638_s20 = sld [smem:[#allocation24_spill]]  ;;  %s9639_s23 = sld [smem:[#allocation25_spill]] }
  0xe0   : > { %v597_v35 = vld [vmem:[%s9637_s3] sm:$0x7]  ;;  %vm3050_vm14 = vcmask 654336   ;;  %vm3053_vm15 = vcmask 785408   ;;  %s9641_s22 = smov 16   ;;  %s9659_s2 = sld [smem:[#allocation27_spill]] }
  0xe1   : > { %821 = vmatpush1.bf16.msra.mxu0 %v7077_v12  ;;  %6451 = vmatpush3.bf16.msra.mxu1 %v7078_v13  ;;  %v8002_v38 = vrot.slane %v597_v35, %v673_v34  ;;  %v8006_v39 = vrot.slane %v597_v35, %v677_v36  ;;  %v8008_v40 = vrot.slane %v597_v35, %v681_v37  ;;  %p9660_p13 = scmp.ne.s32.totalorder %s9624_s27, 0 }
  0xe2   : > { %822 = vmatprep.subr.bf16.mxu0 %v7079_v14  ;;  %6452 = vmatprep.subr.bf16.mxu1 %v7619_v0 }
  0xe5   : > { %823 = vmatpush1.bf16.msra.mxu0 %v7081_v15  ;;  %6453 = vmatpush3.bf16.msra.mxu1 %v7082_v16 }
  0xe6   : > { %824 = vmatprep.subr.bf16.mxu0 %v7083_v17  ;;  %6454 = vmatprep.subr.bf16.mxu1 %v7619_v0 }
  0xe9   : > { %825 = vmatpush1.bf16.msra.mxu0 %v7085_v18  ;;  %6455 = vmatpush3.bf16.msra.mxu1 %v7086_v19 }
  0xea   : > { %826 = vmatprep.subr.bf16.mxu0 %v7087_v20  ;;  %6456 = vmatprep.subr.bf16.mxu1 %v7619_v0 }
  0xed   : > { %827 = vmatpush1.bf16.msra.mxu0 %v7089_v21  ;;  %6457 = vmatpush3.bf16.msra.mxu1 %v7090_v25 }
  0xee   : > { %828 = vmatprep.subr.bf16.mxu0 %v7091_v26  ;;  %6458 = vmatprep.subr.bf16.mxu1 %v7619_v0 }
  0xf1   : > { %829 = vmatpush1.bf16.msra.mxu0 %v7093_v27  ;;  %6459 = vmatpush3.bf16.msra.mxu1 %v7094_v28 }
  0xf2   : > { %6488 = vmatprep.subr.bf16.mxu0 %v7619_v0  ;;  %6464 = vmatprep.subr.bf16.mxu1 %v7619_v0 }
  0xf4   : > { %847 = vmatmul.mubr.bf16.vlgmr.msra.gmra.mrb[0].mxu0 %v669_v31  ;;  %6461 = vmatmul.mubr.bf16.vlgmr.msra.gmra.mrb[0].mxu1 %v669_v31 }
  0xf5   : > { %6490 = vmatprep.mubr.msk.bf16.mxu0 %vm7621_vm0, %v7619_v0  ;;  %6466 = vmatprep.mubr.msk.bf16.mxu1 %vm7621_vm0, %v7619_v0 }
 0x1c7   : > { %v848_v41 = vpop.f32.mrb[0].mxu0  ;;  %v891_v44 = vpop.f32.mrb[0].mxu1 }
 0x1c8   : > { %v849_v42 = vadd.f32 %v848_v41, %v8002_v38  ;;  %v850_v43 = vpop.f32.mrb[1].mxu0  ;;  %v892_v46 = vadd.f32 %v891_v44, %v8008_v40  ;;  %v6462_v48 = vpop.f32.mrb[1].mxu1 }
 0x1c9   : > { %v851_v45 = vadd.f32 %v850_v43, %v8006_v39  ;;  %v852_v47 = vpop.f32.mrb[2].mxu0  ;;  %v894_v51 = vpop.f32.mrb[2].mxu1 }
 0x1ca   : > { %v8014_v49 = vadd.f32 %v852_v47, %v8002_v38  ;;  %v854_v50 = vpop.f32.mrb[3].mxu0  ;;  %899 = vrot.lane.b32.xlu0 %v849_v42, %s7622_s18  ;;  %v6463_v55 = vpop.f32.mrb[3].mxu1  ;;  %v895_v57 = vadd.f32 %v894_v51, %v8008_v40  ;;  %v8030_v58 = vpack.c.bf16 %v849_v42, %v849_v42 }
 0x1cb   : > { %v855_v52 = vadd.f32 %v854_v50, %v8006_v39  ;;  %910 = vrot.lane.b32.xlu1 %v851_v45, %s7623_s13  ;;  %v7023_v53 = vpack.i.bf16 %v851_v45, %v849_v42  ;;  %v7028_v54 = vpack.i.bf16 %v892_v46, %v851_v45 }
 0x1cc   : > { %v8070_v24 = vpack.c.bf16 %v8014_v49, %v8014_v49 }
 0x1cd   : > { %v7033_v56 = vpack.i.bf16 %v855_v52, %v8014_v49  ;;  %v7038_v59 = vpack.i.bf16 %v895_v57, %v855_v52 }
 0x1ce   : > { %7024 = vrot.lane.b32.xlu0 %v7023_v53, %s7624_s24 }
 0x1cf   : > { %913 = vrot.lane.b32.xlu1 %v851_v45, %s7625_s4 }
 0x1d2   : > { %7029 = vrot.lane.b32.xlu0 %v7028_v54, %s9602_s1 }
 0x1d3   : > { %924 = vrot.lane.b32.xlu1 %v892_v46, %s7627_s14 }
 0x1d6   : > { %927 = vrot.lane.b32.xlu0 %v892_v46, %s9600_s11 }
 0x1d7   : > { %931 = vrot.lane.b32.xlu1 %v8014_v49, %s7622_s18 }
 0x1da   : > { %7034 = vrot.lane.b32.xlu0 %v7033_v56, %s7624_s24 }
 0x1db   : > { %941 = vrot.lane.b32.xlu1 %v855_v52, %s7623_s13 }
 0x1de   : > { %977 = vrot.lane.b32.xlu0 %v8030_v58, %s7623_s13 }
 0x1df   : > { %944 = vrot.lane.b32.xlu1 %v855_v52, %s7625_s4 }
 0x1e2   : > { %7039 = vrot.lane.b32.xlu0 %v7038_v59, %s9602_s1 }
 0x1e6   : > { %954 = vrot.lane.b32.xlu0 %v895_v57, %s7627_s14 }
 0x23c   : > { %v900_v60 = vpop.permute.xlu0 %899 }
 0x23d   : > { %v8037_v61 = vpack.c.bf16 %v900_v60, %v900_v60  ;;  %v911_v62 = vpop.permute.xlu1 %910 }
 0x23e   : > { %v8045_v8 = vpack.c.bf16 %v911_v62, %v911_v62 }
 0x23f   : > { %1026 = vrot.lane.b32.xlu1 %v8037_v61, %s7623_s13 }
 0x240   : > { %v7025_v63 = vpop.permute.xlu0 %7024 }
 0x241   : > { %v7027_v2 = vunpack.i.h.bf16 %v7025_v63  ;;  %v7026_v3 = vunpack.i.l.bf16 %v7025_v63  ;;  %v914_v4 = vpop.permute.xlu1 %913 }
 0x242   : > { %v8052_v13 = vpack.c.bf16 %v914_v4, %v914_v4 }
 0x243   : > { %957 = vrot.lane.b32.xlu1 %v895_v57, %s9600_s11  ;;  %v908_v5 = vsel %vm907_vm1, %v7026_v3, %v7027_v2 }
 0x244   : > { %v7030_v6 = vpop.permute.xlu0 %7029  ;;  %v8043_v7 = vpack.c.bf16 %v908_v5, %v908_v5 }
 0x245   : > { %v7032_v9 = vunpack.i.h.bf16 %v7030_v6  ;;  %v7031_v10 = vunpack.i.l.bf16 %v7030_v6  ;;  %v925_v11 = vpop.permute.xlu1 %924 }
 0x246   : > { %1075 = vrot.lane.b32.xlu0 %v8043_v7, %s7623_s13  ;;  %v8056_v17 = vpack.c.bf16 %v925_v11, %v925_v11 }
 0x247   : > { %1124 = vrot.lane.b32.xlu1 %v8045_v8, %s7623_s13  ;;  %v922_v12 = vsel %vm921_vm2, %v7031_v10, %v7032_v9 }
 0x248   : > { %v928_v14 = vpop.permute.xlu0 %927  ;;  %v8054_v15 = vpack.c.bf16 %v922_v12, %v922_v12 }
 0x249   : > { %v932_v16 = vpop.permute.xlu1 %931  ;;  %v8060_v18 = vpack.c.bf16 %v928_v14, %v928_v14 }
 0x24a   : > { %1173 = vrot.lane.b32.xlu0 %v8052_v13, %s7623_s13  ;;  %v8072_v25 = vpack.c.bf16 %v932_v16, %v932_v16 }
 0x24b   : > { %1222 = vrot.lane.b32.xlu1 %v8054_v15, %s7623_s13 }
 0x24c   : > { %v7035_v19 = vpop.permute.xlu0 %7034 }
 0x24d   : > { %v7037_v20 = vunpack.i.h.bf16 %v7035_v19  ;;  %v7036_v21 = vunpack.i.l.bf16 %v7035_v19  ;;  %v942_v22 = vpop.permute.xlu1 %941 }
 0x24e   : > { %1271 = vrot.lane.b32.xlu0 %v8056_v17, %s7623_s13  ;;  %v8083_v32 = vpack.c.bf16 %v942_v22, %v942_v22 }
 0x24f   : > { %1320 = vrot.lane.b32.xlu1 %v8060_v18, %s7623_s13  ;;  %v939_v27 = vsel %vm907_vm1, %v7036_v21, %v7037_v20 }
 0x250   : > { %v978_v23 = vpop.permute.xlu0 %977  ;;  %v8081_v31 = vpack.c.bf16 %v939_v27, %v939_v27 }
 0x251   : > { %v983_v26 = vsel %vm921_vm2, %v978_v23, 0  ;;  %v945_v35 = vpop.permute.xlu1 %944 }
 0x252   : > { %1369 = vrot.lane.b32.xlu0 %v8070_v24, %s7623_s13  ;;  %6465 = vmatpush3.bf16.xpose.msra.mxu1 %v983_v26  ;;  %v8090_v43 = vpack.c.bf16 %v945_v35, %v945_v35 }
 0x253   : > { %1418 = vrot.lane.b32.xlu1 %v8072_v25, %s7623_s13  ;;  %6470 = vmatprep.subr.bf16.mxu1 %v7619_v0 }
 0x254   : > { %v7040_v28 = vpop.permute.xlu0 %7039 }
 0x255   : > { %v7042_v37 = vunpack.i.h.bf16 %v7040_v28  ;;  %v7041_v41 = vunpack.i.l.bf16 %v7040_v28 }
 0x256   : > { %1467 = vrot.lane.b32.xlu0 %v8081_v31, %s7623_s13 }
 0x257   : > { %1516 = vrot.lane.b32.xlu1 %v8083_v32, %s7623_s13  ;;  %v952_v42 = vsel %vm921_vm2, %v7041_v41, %v7042_v37 }
 0x258   : > { %v955_v44 = vpop.permute.xlu0 %954  ;;  %v8092_v45 = vpack.c.bf16 %v952_v42, %v952_v42 }
 0x259   : > { %6467 = vmatmul.mubr.msk.bf16.vlgmr.msra.gmra.mrb[4].mxu1 %vm921_vm2, %v8030_v58  ;;  %v8098_v46 = vpack.c.bf16 %v955_v44, %v955_v44 }
 0x25a   : > { %1565 = vrot.lane.b32.xlu0 %v8090_v43, %s7623_s13  ;;  %6472 = vmatprep.mubr.msk.bf16.mxu1 %vm7621_vm0, %v7619_v0 }
 0x25b   : > { %1614 = vrot.lane.b32.xlu1 %v8092_v45, %s7623_s13 }
 0x25e   : > { %1663 = vrot.lane.b32.xlu0 %v8098_v46, %s7623_s13 }
 0x262   : > { %2018 = vrot.lane.b32.xlu0 %v8037_v61, %s7627_s14 }
 0x266   : > { %2114 = vrot.lane.b32.xlu0 %v8045_v8, %s7627_s14 }
 0x26a   : > { %2210 = vrot.lane.b32.xlu0 %v8054_v15, %s7627_s14 }
 0x26e   : > { %2306 = vrot.lane.b32.xlu0 %v8060_v18, %s7627_s14 }
 0x2b1   : > { %v1027_v47 = vpop.permute.xlu1 %1026 }
 0x2b2   : > { %v1032_v48 = vsel %vm921_vm2, %v1027_v47, 0 }
 0x2b3   : > { %6471 = vmatpush3.bf16.xpose.msra.mxu1 %v1032_v48 }
 0x2b4   : > { %6476 = vmatprep.subr.bf16.mxu1 %v7619_v0 }
 0x2b5   : > { %v958_v49 = vpop.permute.xlu1 %957 }
 0x2b6   : > { %v8116_v50 = vpack.c.bf16 %v958_v49, %v958_v49 }
 0x2b8   : > { %v1076_v51 = vpop.permute.xlu0 %1075  ;;  %1712 = vrot.lane.b32.xlu1 %v8116_v50, %s7623_s13 }
 0x2b9   : > { %v1081_v52 = vsel %vm921_vm2, %v1076_v51, 0  ;;  %v1125_v55 = vpop.permute.xlu1 %1124 }
 0x2ba   : > { %6473 = vmatmul.mubr.msk.bf16.vlgmr.msra.gmra.mrb[8].mxu1 %vm921_vm2, %v8037_v61  ;;  %v1130_v56 = vsel %vm921_vm2, %v1125_v55, 0 }
 0x2bb   : > { %6477 = vmatpush3.bf16.xpose.msra.mxu1 %v1081_v52  ;;  %6478 = vmatprep.mubr.msk.bf16.mxu1 %vm7621_vm0, %v7619_v0 }
 0x2bc   : > { %v1174_v53 = vpop.permute.xlu0 %1173  ;;  %1969 = vrot.lane.b32.xlu1 %v8030_v58, %s7627_s14  ;;  %6482 = vmatprep.subr.bf16.mxu1 %v7619_v0 }
 0x2bd   : > { %v1179_v54 = vsel %vm921_vm2, %v1174_v53, 0  ;;  %v1223_v58 = vpop.permute.xlu1 %1222 }
 0x2be   : > { %6489 = vmatpush3.bf16.xpose.msra.mxu0 %v1179_v54  ;;  %v1228_v60 = vsel %vm921_vm2, %v1223_v58, 0 }
 0x2bf   : > { %6500 = vmatprep.subr.bf16.mxu0 %v7619_v0 }
 0x2c0   : > { %2066 = vrot.lane.b32.xlu1 %v8043_v7, %s7627_s14  ;;  %v1272_v57 = vpop.permute.xlu0 %1271 }
 0x2c1   : > { %v1277_v59 = vsel %vm921_vm2, %v1272_v57, 0  ;;  %v1321_v63 = vpop.permute.xlu1 %1320 }
 0x2c2   : > { %6479 = vmatmul.mubr.msk.bf16.vlgmr.msra.gmra.mrb[12].mxu1 %vm921_vm2, %v8043_v7  ;;  %v1326_v2 = vsel %vm921_vm2, %v1321_v63, 0 }
 0x2c3   : > { %6483 = vmatpush3.bf16.xpose.msra.mxu1 %v1130_v56  ;;  %6484 = vmatprep.mubr.msk.bf16.mxu1 %vm7621_vm0, %v7619_v0 }
 0x2c4   : > { %2162 = vrot.lane.b32.xlu1 %v8052_v13, %s7627_s14  ;;  %6494 = vmatprep.subr.bf16.mxu1 %v7619_v0  ;;  %v1370_v61 = vpop.permute.xlu0 %1369 }
 0x2c5   : > { %6491 = vmatmul.mubr.msk.bf16.vlgmr.msra.gmra.mrb[4].mxu0 %vm921_vm2, %v8052_v13  ;;  %v1375_v62 = vsel %vm921_vm2, %v1370_v61, 0  ;;  %v1419_v5 = vpop.permute.xlu1 %1418 }
 0x2c6   : > { %6501 = vmatpush3.bf16.xpose.msra.mxu0 %v1277_v59  ;;  %6502 = vmatprep.mubr.msk.bf16.mxu0 %vm7621_vm0, %v7619_v0  ;;  %v1424_v6 = vsel %vm921_vm2, %v1419_v5, 0 }
 0x2c7   : > { %6512 = vmatprep.subr.bf16.mxu0 %v7619_v0 }
 0x2c8   : > { %2258 = vrot.lane.b32.xlu1 %v8056_v17, %s7627_s14  ;;  %v1468_v3 = vpop.permute.xlu0 %1467 }
 0x2c9   : > { %v1473_v4 = vsel %vm921_vm2, %v1468_v3, 0  ;;  %v1517_v9 = vpop.permute.xlu1 %1516 }
 0x2ca   : > { %6485 = vmatmul.mubr.msk.bf16.vlgmr.msra.gmra.mrb[16].mxu1 %vm921_vm2, %v8045_v8  ;;  %v1522_v10 = vsel %vm921_vm2, %v1517_v9, 0 }
 0x2cb   : > { %6495 = vmatpush3.bf16.xpose.msra.mxu1 %v1228_v60  ;;  %6496 = vmatprep.mubr.msk.bf16.mxu1 %vm7621_vm0, %v7619_v0 }
 0x2cc   : > { %2354 = vrot.lane.b32.xlu1 %v8070_v24, %s7627_s14  ;;  %6506 = vmatprep.subr.bf16.mxu1 %v7619_v0  ;;  %v1566_v7 = vpop.permute.xlu0 %1565 }
 0x2cd   : > { %6503 = vmatmul.mubr.msk.bf16.vlgmr.msra.gmra.mrb[8].mxu0 %vm921_vm2, %v8056_v17  ;;  %v1571_v8 = vsel %vm921_vm2, %v1566_v7, 0  ;;  %v1615_v13 = vpop.permute.xlu1 %1614 }
 0x2ce   : > { %6513 = vmatpush3.bf16.xpose.msra.mxu0 %v1375_v62  ;;  %6514 = vmatprep.mubr.msk.bf16.mxu0 %vm7621_vm0, %v7619_v0  ;;  %v1620_v14 = vsel %vm921_vm2, %v1615_v13, 0 }
 0x2cf   : > { %6524 = vmatprep.subr.bf16.mxu0 %v7619_v0 }
 0x2d0   : > { %v1664_v11 = vpop.permute.xlu0 %1663 }
 0x2d1   : > { %v1669_v12 = vsel %vm921_vm2, %v1664_v11, 0 }
 0x2d2   : > { %6497 = vmatmul.mubr.msk.bf16.vlgmr.msra.gmra.mrb[20].mxu1 %vm921_vm2, %v8054_v15 }
 0x2d3   : > { %6507 = vmatpush3.bf16.xpose.msra.mxu1 %v1326_v2  ;;  %6508 = vmatprep.mubr.msk.bf16.mxu1 %vm7621_vm0, %v7619_v0 }
 0x2d4   : > { %6518 = vmatprep.subr.bf16.mxu1 %v7619_v0  ;;  %v2019_v26 = vpop.permute.xlu0 %2018 }
 0x2d5   : > { %6515 = vmatmul.mubr.msk.bf16.vlgmr.msra.gmra.mrb[12].mxu0 %vm921_vm2, %v8070_v24  ;;  %v2024_v27 = vsel %vm1974_vm4, %v2019_v26, 0 }
 0x2d6   : > { %6525 = vmatpush3.bf16.xpose.msra.mxu0 %v1473_v4  ;;  %6526 = vmatprep.mubr.msk.bf16.mxu0 %vm7621_vm0, %v7619_v0 }
 0x2d7   : > { %6536 = vmatprep.subr.bf16.mxu0 %v7619_v0 }
 0x2da   : > { %6509 = vmatmul.mubr.msk.bf16.vlgmr.msra.gmra.mrb[24].mxu1 %vm921_vm2, %v8060_v18 }
 0x2db   : > { %6519 = vmatpush3.bf16.xpose.msra.mxu1 %v1424_v6  ;;  %6520 = vmatprep.mubr.msk.bf16.mxu1 %vm7621_vm0, %v7619_v0 }
 0x2dc   : > { %6530 = vmatprep.subr.bf16.mxu1 %v7619_v0 }
 0x2dd   : > { %6527 = vmatmul.mubr.msk.bf16.vlgmr.msra.gmra.mrb[16].mxu0 %vm921_vm2, %v8081_v31 }
 0x2de   : > { %6537 = vmatpush3.bf16.xpose.msra.mxu0 %v1571_v8  ;;  %6538 = vmatprep.mubr.msk.bf16.mxu0 %vm7621_vm0, %v7619_v0 }
 0x2df   : > { %6548 = vmatprep.subr.bf16.mxu0 %v7619_v0 }
 0x2e2   : > { %6521 = vmatmul.mubr.msk.bf16.vlgmr.msra.gmra.mrb[28].mxu1 %vm921_vm2, %v8072_v25 }
 0x2e3   : > { %6531 = vmatpush3.bf16.xpose.msra.mxu1 %v1522_v10  ;;  %6532 = vmatprep.mubr.msk.bf16.mxu1 %vm7621_vm0, %v7619_v0 }
 0x2e4   : > { %6542 = vmatprep.subr.bf16.mxu1 %v7619_v0 }
 0x2e5   : > { %6539 = vmatmul.mubr.msk.bf16.vlgmr.msra.gmra.mrb[20].mxu0 %vm921_vm2, %v8090_v43 }
 0x2e6   : > { %6549 = vmatpush3.bf16.xpose.msra.mxu0 %v1669_v12  ;;  %6550 = vmatprep.mubr.msk.bf16.mxu0 %vm7621_vm0, %v7619_v0 }
 0x2e7   : > { %6560 = vmatprep.subr.bf16.mxu0 %v7619_v0 }
 0x2ea   : > { %6533 = vmatmul.mubr.msk.bf16.vlgmr.msra.gmra.mrb[32].mxu1 %vm921_vm2, %v8083_v32 }
 0x2eb   : > { %6543 = vmatpush3.bf16.xpose.msra.mxu1 %v1620_v14  ;;  %6544 = vmatprep.mubr.msk.bf16.mxu1 %vm7621_vm0, %v7619_v0 }
 0x2ec   : > { %6554 = vmatprep.subr.bf16.mxu1 %v7619_v0 }
 0x2ed   : > { %6551 = vmatmul.mubr.msk.bf16.vlgmr.msra.gmra.mrb[24].mxu0 %vm921_vm2, %v8098_v46 }
 0x2ee   : > { %6562 = vmatprep.mubr.msk.bf16.mxu0 %vm7621_vm0, %v7619_v0 }
 0x2f2   : > { %6545 = vmatmul.mubr.msk.bf16.vlgmr.msra.gmra.mrb[36].mxu1 %vm921_vm2, %v8092_v45 }
 0x2f3   : > { %6556 = vmatprep.mubr.msk.bf16.mxu1 %vm7621_vm0, %v7619_v0 }
 0x32a   : > { %v1713_v15 = vpop.permute.xlu1 %1712 }
 0x32b   : > { %v1718_v16 = vsel %vm921_vm2, %v1713_v15, 0 }
 0x32c   : > { %v1019_v17 = vpop.f32.mrb[4].mxu1  ;;  %6555 = vmatpush3.bf16.xpose.msra.mxu1 %v1718_v16 }
 0x32d   : > { %v8213_v18 = vmul.f32 0.25, %v1019_v17  ;;  %v6468_v19 = vpop.f32.mrb[5].mxu1  ;;  %6566 = vmatprep.subr.bf16.mxu1 %v7619_v0 }
 0x32e   : > { %v1022_v20 = vpop.f32.mrb[6].mxu1  ;;  %v1970_v21 = vpop.permute.xlu1 %1969 }
 0x32f   : > { %v1976_v22 = vsel %vm1974_vm4, %v1970_v21, 0  ;;  %v6469_v23 = vpop.f32.mrb[7].mxu1  ;;  %v1777_v24 = vsel %vm1776_vm3, %v8213_v18, -inf }
 0x330   : > { %1778 = vmax.xlane.f32.xlu0 %v1777_v24  ;;  %6561 = vmatpush3.bf16.msra.mxu0 %v1976_v22  ;;  %v8254_v23 = vpop.permute.xlu0 %2114 }
 0x331   : > { %6572 = vmatprep.subr.bf16.mxu0 %v7619_v0 }
 0x333   : > { %6557 = vmatmul.mubr.msk.bf16.vlgmr.msra.gmra.mrb[40].mxu1 %vm921_vm2, %v8116_v50 }
 0x334   : > { %6567 = vmatpush3.bf16.msra.mxu1 %v2024_v27  ;;  %6568 = vmatprep.mubr.msk.bf16.mxu1 %vm7621_vm0, %v7619_v0 }
 0x335   : > { %6578 = vmatprep.subr.bf16.mxu1 %v7619_v0 }
 0x38d   : > { %v1068_v28 = vpop.f32.mrb[8].mxu1 }
 0x38e   : > { %v8226_v35 = vmul.f32 0.25, %v1068_v28  ;;  %v6474_v37 = vpop.f32.mrb[9].mxu1 }
 0x38f   : > { %v1071_v41 = vpop.f32.mrb[10].mxu1 }
 0x390   : > { %v6475_v42 = vpop.f32.mrb[11].mxu1  ;;  %v1780_v44 = vsel %vm1776_vm3, %v8226_v35, -inf }
 0x391   : > { %1781 = vmax.xlane.f32.xlu1 %v1780_v44 }
 0x395   : > { %v1117_v47 = vpop.f32.mrb[12].mxu1 }
 0x396   : > { %v8230_v48 = vmul.f32 0.25, %v1117_v47  ;;  %v6480_v49 = vpop.f32.mrb[13].mxu1 }
 0x397   : > { %v1120_v51 = vpop.f32.mrb[14].mxu1 }
 0x398   : > { %v6481_v52 = vpop.f32.mrb[15].mxu1  ;;  %v1215_v53 = vpop.f32.mrb[4].mxu0  ;;  %v1783_v54 = vsel %vm1776_vm3, %v8230_v48, -inf }
 0x399   : > { %v8234_v55 = vmul.f32 0.25, %v1215_v53  ;;  %1784 = vmax.xlane.f32.xlu0 %v1783_v54  ;;  %v6492_v56 = vpop.f32.mrb[5].mxu0  ;;  %v8262_v51 = vpop.permute.xlu0 %2210 }
 0x39a   : > { %v1218_v57 = vpop.f32.mrb[6].mxu0 }
 0x39b   : > { %v6493_v59 = vpop.f32.mrb[7].mxu0  ;;  %v1789_v58 = vsel %vm1776_vm3, %v8234_v55, -inf }
 0x39c   : > { %1790 = vmax.xlane.f32.xlu1 %v1789_v58 }
 0x39d   : > { %v1166_v60 = vpop.f32.mrb[16].mxu1 }
 0x39e   : > { %v8238_v61 = vmul.f32 0.25, %v1166_v60  ;;  %v6486_v62 = vpop.f32.mrb[17].mxu1 }
 0x39f   : > { %v1169_v63 = vpop.f32.mrb[18].mxu1 }
 0x3a0   : > { %v6487_v2 = vpop.f32.mrb[19].mxu1  ;;  %v1313_v3 = vpop.f32.mrb[8].mxu0  ;;  %v1786_v4 = vsel %vm1776_vm3, %v8238_v61, -inf }
 0x3a1   : > { %v8242_v5 = vmul.f32 0.25, %v1313_v3  ;;  %1787 = vmax.xlane.f32.xlu0 %v1786_v4  ;;  %v6504_v6 = vpop.f32.mrb[9].mxu0  ;;  %v8270_v63 = vpop.permute.xlu0 %2306 }
 0x3a2   : > { %v1316_v7 = vpop.f32.mrb[10].mxu0 }
 0x3a3   : > { %v6505_v8 = vpop.f32.mrb[11].mxu0  ;;  %v1795_v9 = vsel %vm1776_vm3, %v8242_v5, -inf }
 0x3a4   : > { %1796 = vmax.xlane.f32.xlu1 %v1795_v9 }
 0x3a5   : > { %v1264_v10 = vpop.f32.mrb[20].mxu1 }
 0x3a6   : > { %v8246_v11 = vmul.f32 0.25, %v1264_v10  ;;  %v6498_v12 = vpop.f32.mrb[21].mxu1 }
 0x3a7   : > { %v1267_v13 = vpop.f32.mrb[22].mxu1 }
 0x3a8   : > { %v6499_v14 = vpop.f32.mrb[23].mxu1  ;;  %v1411_v15 = vpop.f32.mrb[12].mxu0  ;;  %v1792_v16 = vsel %vm1776_vm3, %v8246_v11, -inf }
 0x3a9   : > { %v8250_v17 = vmul.f32 0.25, %v1411_v15  ;;  %1793 = vmax.xlane.f32.xlu0 %v1792_v16  ;;  %v6516_v19 = vpop.f32.mrb[13].mxu0 }
 0x3aa   : > { %v1414_v20 = vpop.f32.mrb[14].mxu0 }
 0x3ab   : > { %v6517_v21 = vpop.f32.mrb[15].mxu0  ;;  %v1801_v22 = vsel %vm1776_vm3, %v8250_v17, -inf }
 0x3ac   : > { %1802 = vmax.xlane.f32.xlu1 %v1801_v22 }
 0x3ad   : > { %v1362_v24 = vpop.f32.mrb[24].mxu1 }
 0x3ae   : > { %v8256_v26 = vmul.f32 0.25, %v1362_v24  ;;  %v6510_v27 = vpop.f32.mrb[25].mxu1 }
 0x3af   : > { %v1365_v28 = vpop.f32.mrb[26].mxu1 }
 0x3b0   : > { %v6511_v37 = vpop.f32.mrb[27].mxu1  ;;  %v1509_v41 = vpop.f32.mrb[16].mxu0  ;;  %v1798_v42 = vsel %vm1776_vm3, %v8256_v26, -inf }
 0x3b1   : > { %v8260_v44 = vmul.f32 0.25, %v1509_v41  ;;  %1799 = vmax.xlane.f32.xlu0 %v1798_v42  ;;  %v6528_v47 = vpop.f32.mrb[17].mxu0 }
 0x3b2   : > { %v1512_v49 = vpop.f32.mrb[18].mxu0 }
 0x3b3   : > { %v6529_v52 = vpop.f32.mrb[19].mxu0  ;;  %v1807_v53 = vsel %vm1776_vm3, %v8260_v44, -inf }
 0x3b4   : > { %1808 = vmax.xlane.f32.xlu1 %v1807_v53 }
 0x3b5   : > { %v1460_v54 = vpop.f32.mrb[28].mxu1 }
 0x3b6   : > { %v8266_v56 = vmul.f32 0.25, %v1460_v54  ;;  %v6522_v57 = vpop.f32.mrb[29].mxu1 }
 0x3b7   : > { %v1463_v59 = vpop.f32.mrb[30].mxu1 }
 0x3b8   : > { %v6523_v58 = vpop.f32.mrb[31].mxu1  ;;  %v1607_v60 = vpop.f32.mrb[20].mxu0  ;;  %v1804_v62 = vsel %vm1776_vm3, %v8266_v56, -inf }
 0x3b9   : > { %v8272_v2 = vmul.f32 0.25, %v1607_v60  ;;  %1805 = vmax.xlane.f32.xlu0 %v1804_v62  ;;  %v6540_v3 = vpop.f32.mrb[21].mxu0  ;;  %v8299_v58 = vpop.permute.xlu1 %2066 }
 0x3ba   : > { %v1610_v4 = vpop.f32.mrb[22].mxu0 }
 0x3bb   : > { %v6541_v6 = vpop.f32.mrb[23].mxu0  ;;  %v1813_v7 = vsel %vm1776_vm3, %v8272_v2, -inf }
 0x3bc   : > { %1814 = vmax.xlane.f32.xlu1 %v1813_v7 }
 0x3bd   : > { %v1558_v8 = vpop.f32.mrb[32].mxu1  ;;  %v1779_v9 = vpop.xlane.xlu0 %1778 }
 0x3be   : > { %v8276_v10 = vmul.f32 0.25, %v1558_v8  ;;  %v1825_v12 = vsub.f32 %v8213_v18, %v1779_v9  ;;  %v6534_v13 = vpop.f32.mrb[33].mxu1  ;;  %v8303_v4 = vpop.permute.xlu1 %2162 }
 0x3bf   : > { %v1561_v14 = vpop.f32.mrb[34].mxu1 }
 0x3c0   : > { %v1841_v15 = vmul.f32 1.442695, %v1825_v12  ;;  %v6535_v16 = vpop.f32.mrb[35].mxu1  ;;  %v1705_v19 = vpop.f32.mrb[24].mxu0  ;;  %v1810_v20 = vsel %vm1776_vm3, %v8276_v10, -inf }
 0x3c1   : > { %v8281_v21 = vmul.f32 0.25, %v1705_v19  ;;  %1811 = vmax.xlane.f32.xlu0 %v1810_v20  ;;  %v6552_v22 = vpop.f32.mrb[25].mxu0 }
 0x3c2   : > { %7143 = vpow2.f32 %v1841_v15  ;;  %v1708_v24 = vpop.f32.mrb[26].mxu0  ;;  %v8305_v6 = vpop.permute.xlu1 %2258 }
 0x3c3   : > { %v6553_v27 = vpop.f32.mrb[27].mxu0  ;;  %v1819_v28 = vsel %vm1776_vm3, %v8281_v21, -inf }
 0x3c4   : > { %1820 = vmax.xlane.f32.xlu1 %v1819_v28 }
 0x3c5   : > { %v1656_v18 = vpop.f32.mrb[36].mxu1 }
 0x3c6   : > { %v8285_v37 = vmul.f32 0.25, %v1656_v18  ;;  %v6546_v41 = vpop.f32.mrb[37].mxu1 }
 0x3c7   : > { %v1659_v42 = vpop.f32.mrb[38].mxu1 }
 0x3c8   : > { %v6547_v47 = vpop.f32.mrb[39].mxu1  ;;  %v1816_v49 = vsel %vm1776_vm3, %v8285_v37, -inf }
 0x3c9   : > { %1817 = vmax.xlane.f32.xlu0 %v1816_v49 }
 0x3cc   : > { %v8289_v52 = vpop.eup %7143 }
 0x3cd   : > { %v1873_v53 = vsel %vm1776_vm3, %v8289_v52, 0.0 }
 0x3ce   : > { %1874 = vadd.xlane.f32.xlu1 %v1873_v53 }
 0x3df   : > { %2450 = vrot.lane.b32.xlu1 %v8081_v31, %s7627_s14  ;;  %2402 = vrot.lane.b32.xlu0 %v8072_v25, %s7627_s14  ;;  %v8307_v31 = vpop.permute.xlu1 %2354 }
 0x406   : > { %v1754_v54 = vpop.f32.mrb[40].mxu1 }
 0x407   : > { %v8297_v57 = vmul.f32 0.25, %v1754_v54  ;;  %v6558_v59 = vpop.f32.mrb[41].mxu1 }
 0x408   : > { %v1757_v60 = vpop.f32.mrb[42].mxu1 }
 0x409   : > { %v6559_v62 = vpop.f32.mrb[43].mxu1  ;;  %v1822_v3 = vsel %vm1776_vm3, %v8297_v57, -inf }
 0x40a   : > { %1823 = vmax.xlane.f32.xlu0 %v1822_v3 }
 0x41e   : > { %v1782_v7 = vpop.xlane.xlu1 %1781 }
 0x41f   : > { %v1826_v25 = vsub.f32 %v8226_v35, %v1782_v7 }
 0x421   : > { %v1843_v8 = vmul.f32 1.442695, %v1826_v25 }
 0x423   : > { %7145 = vpow2.f32 %v1843_v8 }
 0x426   : > { %v1785_v9 = vpop.xlane.xlu0 %1784 }
 0x427   : > { %v1827_v12 = vsub.f32 %v8230_v48, %v1785_v9 }
 0x429   : > { %v1791_v13 = vpop.xlane.xlu1 %1790  ;;  %v1845_v15 = vmul.f32 1.442695, %v1827_v12 }
 0x42a   : > { %v1829_v14 = vsub.f32 %v8234_v55, %v1791_v13 }
 0x42c   : > { %v1849_v16 = vmul.f32 1.442695, %v1829_v14 }
 0x42d   : > { %v8312_v19 = vpop.eup %7145 }
 0x42e   : > { %7147 = vpow2.f32 %v1849_v16  ;;  %v1788_v20 = vpop.xlane.xlu0 %1787  ;;  %v1876_v22 = vsel %vm1776_vm3, %v8312_v19, 0.0 }
 0x42f   : > { %v1828_v24 = vsub.f32 %v8238_v61, %v1788_v20  ;;  %1877 = vadd.xlane.f32.xlu0 %v1876_v22  ;;  %7149 = vpow2.f32 %v1845_v15 }
 0x431   : > { %v1847_v35 = vmul.f32 1.442695, %v1828_v24  ;;  %v1797_v62 = vpop.xlane.xlu1 %1796 }
 0x433   : > { %7151 = vpow2.f32 %v1847_v35 }
 0x436   : > { %v1794_v27 = vpop.xlane.xlu0 %1793 }
 0x437   : > { %v1830_v48 = vsub.f32 %v8246_v11, %v1794_v27 }
 0x438   : > { %v8318_v28 = vpop.eup %7147 }
 0x439   : > { %v1851_v55 = vmul.f32 1.442695, %v1830_v48  ;;  %v1885_v18 = vsel %vm1776_vm3, %v8318_v28, 0.0  ;;  %v8322_v41 = vpop.eup %7149  ;;  %v1803_v25 = vpop.xlane.xlu1 %1802 }
 0x43a   : > { %1886 = vadd.xlane.f32.xlu1 %v1885_v18  ;;  %v1879_v61 = vsel %vm1776_vm3, %v8322_v41, 0.0  ;;  %v1833_v27 = vsub.f32 %v8250_v17, %v1803_v25 }
 0x43b   : > { %7153 = vpow2.f32 %v1851_v55 }
 0x43c   : > { %v1857_v48 = vmul.f32 1.442695, %v1833_v27 }
 0x43d   : > { %v8324_v42 = vpop.eup %7151 }
 0x43e   : > { %v1800_v47 = vpop.xlane.xlu0 %1799  ;;  %1880 = vadd.xlane.f32.xlu1 %v1879_v61  ;;  %v1882_v11 = vsel %vm1776_vm3, %v8324_v42, 0.0 }
 0x43f   : > { %v1832_v49 = vsub.f32 %v8256_v26, %v1800_v47  ;;  %1883 = vadd.xlane.f32.xlu0 %v1882_v11 }
 0x441   : > { %v1855_v53 = vmul.f32 1.442695, %v1832_v49  ;;  %v1809_v12 = vpop.xlane.xlu1 %1808 }
 0x442   : > { %v1835_v55 = vsub.f32 %v8260_v44, %v1809_v12 }
 0x443   : > { %7155 = vpow2.f32 %v1855_v53 }
 0x444   : > { %v1861_v47 = vmul.f32 1.442695, %v1835_v55 }
 0x445   : > { %v8331_v54 = vpop.eup %7153 }
 0x446   : > { %v1806_v59 = vpop.xlane.xlu0 %1805  ;;  %v1888_v60 = vsel %vm1776_vm3, %v8331_v54, 0.0 }
 0x447   : > { %v1834_v3 = vsub.f32 %v8266_v56, %v1806_v59  ;;  %1889 = vadd.xlane.f32.xlu0 %v1888_v60 }
 0x449   : > { %v1859_v7 = vmul.f32 1.442695, %v1834_v3  ;;  %v1815_v15 = vpop.xlane.xlu1 %1814 }
 0x44a   : > { %v1837_v11 = vsub.f32 %v8272_v2, %v1815_v15 }
 0x44b   : > { %7157 = vpow2.f32 %v1859_v7 }
 0x44c   : > { %v1865_v17 = vmul.f32 1.442695, %v1837_v11 }
 0x44d   : > { %v8336_v8 = vpop.eup %7155 }
 0x44e   : > { %v1812_v9 = vpop.xlane.xlu0 %1811  ;;  %v1894_v26 = vsel %vm1776_vm3, %v8336_v8, 0.0 }
 0x44f   : > { %v1836_v13 = vsub.f32 %v8276_v10, %v1812_v9  ;;  %1895 = vadd.xlane.f32.xlu0 %v1894_v26  ;;  %2498 = vrot.lane.b32.xlu1 %v8083_v32, %s7627_s14  ;;  %v1831_v10 = vsub.f32 %v8242_v5, %v1797_v62  ;;  %v2072_v5 = vsel %vm1974_vm4, %v8299_v58, 0 }
 0x451   : > { %v1863_v14 = vmul.f32 1.442695, %v1836_v13  ;;  %v1821_v20 = vpop.xlane.xlu1 %1820  ;;  %v1853_v32 = vmul.f32 1.442695, %v1831_v10 }
 0x452   : > { %v1839_v44 = vsub.f32 %v8281_v21, %v1821_v20 }
 0x453   : > { %7159 = vpow2.f32 %v1863_v14 }
 0x454   : > { %v1869_v2 = vmul.f32 1.442695, %v1839_v44 }
 0x455   : > { %v8343_v56 = vpop.eup %7157 }
 0x456   : > { %v1900_v16 = vsel %vm1776_vm3, %v8343_v56, 0.0  ;;  %v1818_v3 = vpop.xlane.xlu0 %1817 }
 0x457   : > { %1901 = vadd.xlane.f32.xlu0 %v1900_v16  ;;  %v1838_v7 = vsub.f32 %v8285_v37, %v1818_v3 }
 0x45a   : > { %v8388_v13 = vpop.permute.xlu0 %2402 }
 0x45b   : > { %v1875_v22 = vpop.xlane.xlu1 %1874 }
 0x45c   : > { %7161 = vrcp.f32 %v1875_v22 }
 0x45d   : > { %v8347_v24 = vpop.eup %7159  ;;  %7163 = vpow2.f32 %v1853_v32 }
 0x45e   : > { %v1906_v35 = vsel %vm1776_vm3, %v8347_v24, 0.0  ;;  %7165 = vpow2.f32 %v1857_v48  ;;  %v2120_v48 = vsel %vm1974_vm4, %v8254_v23, 0 }
 0x45f   : > { %1907 = vadd.xlane.f32.xlu0 %v1906_v35  ;;  %7167 = vpow2.f32 %v1861_v47 }
 0x460   : > { %7169 = vpow2.f32 %v1865_v17  ;;  %v2216_v17 = vsel %vm1974_vm4, %v8262_v51, 0 }
 0x461   : > { %7171 = vpow2.f32 %v1869_v2 }
 0x466   : > { %v7162_v18 = vpop.eup %7161 }
 0x467   : > { %v1937_v61 = vmul.f32 %v7162_v18, %v8289_v52  ;;  %v8363_v52 = vpop.eup %7163 }
 0x468   : > { %v1891_v53 = vsel %vm1776_vm3, %v8363_v52, 0.0  ;;  %v8367_v58 = vpop.eup %7165 }
 0x469   : > { %v1953_v49 = vpack.c.bf16 %v1937_v61, %v1937_v61  ;;  %v1897_v59 = vsel %vm1776_vm3, %v8367_v58, 0.0  ;;  %v8373_v21 = vpop.eup %7167 }
 0x46a   : > { %v1903_v60 = vsel %vm1776_vm3, %v8373_v21, 0.0  ;;  %v8377_v62 = vpop.eup %7169 }
 0x46b   : > { %6563 = vmatmul.mubr.msk.bf16.vlgmr.msra.gmra.mrb[28].mxu0 %vm1776_vm3, %v1953_v49  ;;  %v1909_v25 = vsel %vm1776_vm3, %v8377_v62, 0.0  ;;  %v8382_v9 = vpop.eup %7171 }
 0x46c   : > { %6573 = vmatpush3.bf16.msra.mxu0 %v2072_v5  ;;  %6574 = vmatprep.mubr.msk.bf16.mxu0 %vm7621_vm0, %v7619_v0  ;;  %v1915_v26 = vsel %vm1776_vm3, %v8382_v9, 0.0  ;;  %v2168_v5 = vsel %vm1974_vm4, %v8303_v4, 0 }
 0x46d   : > { %6584 = vmatprep.subr.bf16.mxu0 %v7619_v0 }
 0x473   : > { %1892 = vadd.xlane.f32.xlu1 %v1891_v53  ;;  %v2264_v53 = vsel %vm1974_vm4, %v8305_v6, 0 }
 0x475   : > { %2546 = vrot.lane.b32.xlu0 %v8090_v43, %s7627_s14  ;;  %v1867_v43 = vmul.f32 1.442695, %v1838_v7 }
 0x477   : > { %1898 = vadd.xlane.f32.xlu1 %v1897_v59  ;;  %7173 = vpow2.f32 %v1867_v43 }
 0x47b   : > { %1904 = vadd.xlane.f32.xlu1 %v1903_v60  ;;  %v2408_v60 = vsel %vm1974_vm4, %v8388_v13, 0 }
 0x47f   : > { %1910 = vadd.xlane.f32.xlu1 %v1909_v25 }
 0x481   : > { %v8386_v12 = vpop.eup %7173 }
 0x482   : > { %v1912_v14 = vsel %vm1776_vm3, %v8386_v12, 0.0 }
 0x483   : > { %1916 = vadd.xlane.f32.xlu1 %v1915_v26 }
 0x494   : > { %1913 = vadd.xlane.f32.xlu0 %v1912_v14  ;;  %2594 = vrot.lane.b32.xlu1 %v8092_v45, %s7627_s14  ;;  %v8403_v45 = vpop.permute.xlu1 %2450 }
 0x497   : > { %v1824_v37 = vpop.xlane.xlu0 %1823 }
 0x498   : > { %v1840_v15 = vsub.f32 %v8297_v57, %v1824_v37  ;;  %2690 = vrot.lane.b32.xlu1 %v8116_v50, %s7627_s14 }
 0x49a   : > { %v1871_v16 = vmul.f32 1.442695, %v1840_v15 }
 0x49c   : > { %7175 = vpow2.f32 %v1871_v16 }
 0x4a6   : > { %v8397_v20 = vpop.eup %7175 }
 0x4a7   : > { %v1918_v22 = vsel %vm1776_vm3, %v8397_v20, 0.0 }
 0x4a8   : > { %1919 = vadd.xlane.f32.xlu0 %v1918_v22 }
 0x4bc   : > { %v1878_v10 = vpop.xlane.xlu0 %1877 }
 0x4bd   : > { %7177 = vrcp.f32 %v1878_v10 }
 0x4be   : > { %2642 = vrot.lane.b32.xlu0 %v8098_v46, %s7627_s14 }
 0x4c7   : > { %v7178_v35 = vpop.eup %7177  ;;  %v1887_v57 = vpop.xlane.xlu1 %1886 }
 0x4c8   : > { %v1938_v32 = vmul.f32 %v7178_v35, %v8312_v19 }
 0x4ca   : > { %v1954_v50 = vpack.c.bf16 %v1938_v32, %v1938_v32 }
 0x4cb   : > { %v1881_v27 = vpop.xlane.xlu1 %1880 }
 0x4cc   : > { %7179 = vrcp.f32 %v1881_v27  ;;  %6569 = vmatmul.mubr.msk.bf16.vlgmr.msra.gmra.mrb[44].mxu1 %vm1776_vm3, %v1954_v50  ;;  %v1884_v55 = vpop.xlane.xlu0 %1883 }
 0x4cd   : > { %6579 = vmatpush3.bf16.msra.mxu1 %v2120_v48  ;;  %7181 = vrcp.f32 %v1884_v55  ;;  %6580 = vmatprep.mubr.msk.bf16.mxu1 %vm7621_vm0, %v7619_v0 }
 0x4ce   : > { %6590 = vmatprep.subr.bf16.mxu1 %v7619_v0  ;;  %7183 = vrcp.f32 %v1887_v57 }
 0x4cf   : > { %v2499_v43 = vpop.permute.xlu1 %2498 }
 0x4d4   : > { %v1890_v46 = vpop.xlane.xlu0 %1889 }
 0x4d5   : > { %7185 = vrcp.f32 %v1890_v46 }
 0x4d6   : > { %v7180_v19 = vpop.eup %7179 }
 0x4d7   : > { %v7182_v18 = vpop.eup %7181  ;;  %v1939_v61 = vmul.f32 %v7180_v19, %v8322_v41 }
 0x4d8   : > { %v1940_v23 = vmul.f32 %v7182_v18, %v8324_v42  ;;  %v7184_v11 = vpop.eup %7183 }
 0x4d9   : > { %v1955_v47 = vpack.c.bf16 %v1939_v61, %v1939_v61  ;;  %v1941_v41 = vmul.f32 %v7184_v11, %v8318_v28  ;;  %v2312_v28 = vsel %vm1974_vm4, %v8270_v63, 0 }
 0x4da   : > { %v1956_v49 = vpack.c.bf16 %v1940_v23, %v1940_v23 }
 0x4db   : > { %6575 = vmatmul.mubr.msk.bf16.vlgmr.msra.gmra.mrb[32].mxu0 %vm1776_vm3, %v1955_v47  ;;  %v1957_v42 = vpack.c.bf16 %v1941_v41, %v1941_v41 }
 0x4dc   : > { %6585 = vmatpush3.bf16.msra.mxu0 %v2168_v5  ;;  %6581 = vmatmul.mubr.msk.bf16.vlgmr.msra.gmra.mrb[48].mxu1 %vm1776_vm3, %v1956_v49  ;;  %v1896_v44 = vpop.xlane.xlu0 %1895 }
 0x4dd   : > { %6591 = vmatpush3.bf16.msra.mxu1 %v2216_v17  ;;  %7187 = vrcp.f32 %v1896_v44  ;;  %6586 = vmatprep.mubr.msk.bf16.mxu0 %vm7621_vm0, %v7619_v0 }
 0x4de   : > { %6596 = vmatprep.subr.bf16.mxu0 %v7619_v0  ;;  %6592 = vmatprep.mubr.msk.bf16.mxu1 %vm7621_vm0, %v7619_v0 }
 0x4df   : > { %v7186_v4 = vpop.eup %7185  ;;  %6602 = vmatprep.subr.bf16.mxu1 %v7619_v0 }
 0x4e0   : > { %v1942_v51 = vmul.f32 %v7186_v4, %v8331_v54 }
 0x4e2   : > { %v1958_v2 = vpack.c.bf16 %v1942_v51, %v1942_v51 }
 0x4e3   : > { %6587 = vmatmul.mubr.msk.bf16.vlgmr.msra.gmra.mrb[36].mxu0 %vm1776_vm3, %v1957_v42 }
 0x4e4   : > { %6597 = vmatpush3.bf16.msra.mxu0 %v2264_v53  ;;  %6593 = vmatmul.mubr.msk.bf16.vlgmr.msra.gmra.mrb[52].mxu1 %vm1776_vm3, %v1958_v2  ;;  %v1902_v59 = vpop.xlane.xlu0 %1901 }
 0x4e5   : > { %6603 = vmatpush3.bf16.msra.mxu1 %v2312_v28  ;;  %7189 = vrcp.f32 %v1902_v59  ;;  %6604 = vmatprep.mubr.msk.bf16.mxu1 %vm7621_vm0, %v7619_v0 }
 0x4e6   : > { %6614 = vmatprep.subr.bf16.mxu1 %v7619_v0  ;;  %6598 = vmatprep.mubr.msk.bf16.mxu0 %vm7621_vm0, %v7619_v0 }
 0x4e7   : > { %v7188_v6 = vpop.eup %7187  ;;  %6608 = vmatprep.subr.bf16.mxu0 %v7619_v0 }
 0x4e8   : > { %v1944_v54 = vmul.f32 %v7188_v6, %v8336_v8  ;;  %v2504_v8 = vsel %vm1974_vm4, %v2499_v43, 0 }
 0x4ea   : > { %v1960_v63 = vpack.c.bf16 %v1944_v54, %v1944_v54 }
 0x4ec   : > { %6605 = vmatmul.mubr.msk.bf16.vlgmr.msra.gmra.mrb[56].mxu1 %vm1776_vm3, %v1960_v63  ;;  %v1908_v3 = vpop.xlane.xlu0 %1907 }
 0x4ed   : > { %6615 = vmatpush3.bf16.msra.mxu1 %v2408_v60  ;;  %7191 = vrcp.f32 %v1908_v3  ;;  %6616 = vmatprep.mubr.msk.bf16.mxu1 %vm7621_vm0, %v7619_v0 }
 0x4ee   : > { %6626 = vmatprep.subr.bf16.mxu1 %v7619_v0 }
 0x4ef   : > { %v7190_v7 = vpop.eup %7189 }
 0x4f0   : > { %v1946_v25 = vmul.f32 %v7190_v7, %v8343_v56  ;;  %v2547_v19 = vpop.permute.xlu0 %2546 }
 0x4f1   : > { %v2552_v23 = vsel %vm1974_vm4, %v2547_v19, 0 }
 0x4f2   : > { %v1962_v26 = vpack.c.bf16 %v1946_v25, %v1946_v25 }
 0x4f4   : > { %6617 = vmatmul.mubr.msk.bf16.vlgmr.msra.gmra.mrb[60].mxu1 %vm1776_vm3, %v1962_v26 }
 0x4f5   : > { %6627 = vmatpush3.bf16.msra.mxu1 %v2504_v8  ;;  %6628 = vmatprep.mubr.msk.bf16.mxu1 %vm7621_vm0, %v7619_v0 }
 0x4f6   : > { %6638 = vmatprep.subr.bf16.mxu1 %v7619_v0 }
 0x4f7   : > { %v7192_v13 = vpop.eup %7191 }
 0x4f8   : > { %v1948_v14 = vmul.f32 %v7192_v13, %v8347_v24  ;;  %v2360_v24 = vsel %vm1974_vm4, %v8307_v31, 0  ;;  %v2456_v31 = vsel %vm1974_vm4, %v8403_v45, 0 }
 0x4fa   : > { %v1964_v37 = vpack.c.bf16 %v1948_v14, %v1948_v14 }
 0x4fc   : > { %6629 = vmatmul.mubr.msk.bf16.vlgmr.msra.gmra.mrb[64].mxu1 %vm1776_vm3, %v1964_v37 }
 0x4fd   : > { %6640 = vmatprep.mubr.msk.bf16.mxu1 %vm7621_vm0, %v7619_v0 }
 0x500   : > { %v1893_v56 = vpop.xlane.xlu1 %1892 }
 0x501   : > { %7193 = vrcp.f32 %v1893_v56 }
 0x504   : > { %v1899_v15 = vpop.xlane.xlu1 %1898 }
 0x505   : > { %7195 = vrcp.f32 %v1899_v15 }
 0x508   : > { %v1905_v16 = vpop.xlane.xlu1 %1904 }
 0x509   : > { %7197 = vrcp.f32 %v1905_v16 }
 0x50b   : > { %v7194_v22 = vpop.eup %7193 }
 0x50c   : > { %v1911_v10 = vpop.xlane.xlu1 %1910  ;;  %v1943_v35 = vmul.f32 %v7194_v22, %v8363_v52 }
 0x50d   : > { %7199 = vrcp.f32 %v1911_v10 }
 0x50e   : > { %v1959_v57 = vpack.c.bf16 %v1943_v35, %v1943_v35 }
 0x50f   : > { %v7196_v32 = vpop.eup %7195 }
 0x510   : > { %6599 = vmatmul.mubr.msk.bf16.vlgmr.msra.gmra.mrb[40].mxu0 %vm1776_vm3, %v1959_v57  ;;  %v1917_v50 = vpop.xlane.xlu1 %1916  ;;  %v1945_v27 = vmul.f32 %v7196_v32, %v8367_v58  ;;  %v7095_v57 = vld [vmem:[#allocation8] sm:$0xff]  }
 0x511   : > { %6609 = vmatpush3.bf16.msra.mxu0 %v2360_v24  ;;  %6610 = vmatprep.mubr.msk.bf16.mxu0 %vm7621_vm0, %v7619_v0 }
 0x512   : > { %6620 = vmatprep.subr.bf16.mxu0 %v7619_v0  ;;  %v1961_v55 = vpack.c.bf16 %v1945_v27, %v1945_v27 }
 0x513   : > { %v7198_v46 = vpop.eup %7197 }
 0x514   : > { %v2595_v48 = vpop.permute.xlu1 %2594  ;;  %v1947_v58 = vmul.f32 %v7198_v46, %v8373_v21 }
 0x515   : > { %v2600_v52 = vsel %vm1974_vm4, %v2595_v48, 0 }
 0x516   : > { %6639 = vmatpush3.bf16.msra.mxu1 %v2600_v52  ;;  %v1963_v18 = vpack.c.bf16 %v1947_v58, %v1947_v58 }
 0x517   : > { %6650 = vmatprep.subr.bf16.mxu1 %v7619_v0  ;;  %v7200_v61 = vpop.eup %7199 }
 0x518   : > { %6611 = vmatmul.mubr.msk.bf16.vlgmr.msra.gmra.mrb[44].mxu0 %vm1776_vm3, %v1961_v55  ;;  %v1949_v45 = vmul.f32 %v7200_v61, %v8377_v62  ;;  %v2691_v5 = vpop.permute.xlu1 %2690 }
 0x519   : > { %6621 = vmatpush3.bf16.msra.mxu0 %v2456_v31  ;;  %6622 = vmatprep.mubr.msk.bf16.mxu0 %vm7621_vm0, %v7619_v0  ;;  %v2696_v44 = vsel %vm1974_vm4, %v2691_v5, 0 }
 0x51a   : > { %6632 = vmatprep.subr.bf16.mxu0 %v7619_v0  ;;  %v1965_v11 = vpack.c.bf16 %v1949_v45, %v1949_v45 }
 0x520   : > { %6623 = vmatmul.mubr.msk.bf16.vlgmr.msra.gmra.mrb[48].mxu0 %vm1776_vm3, %v1963_v18  ;;  %v7096_v18 = vld [vmem:[#allocation8 + $0x8] sm:$0xff]  }
 0x521   : > { %6633 = vmatpush3.bf16.msra.mxu0 %v2552_v23  ;;  %v1914_v47 = vpop.xlane.xlu0 %1913  ;;  %6634 = vmatprep.mubr.msk.bf16.mxu0 %vm7621_vm0, %v7619_v0 }
 0x522   : > { %7201 = vrcp.f32 %v1914_v47  ;;  %6644 = vmatprep.subr.bf16.mxu0 %v7619_v0 }
 0x523   : > { %7203 = vrcp.f32 %v1917_v50 }
 0x528   : > { %6635 = vmatmul.mubr.msk.bf16.vlgmr.msra.gmra.mrb[52].mxu0 %vm1776_vm3, %v1965_v11 }
 0x529   : > { %6646 = vmatprep.mubr.msk.bf16.mxu0 %vm7621_vm0, %v7619_v0 }
 0x52c   : > { %v7202_v21 = vpop.eup %7201 }
 0x52d   : > { %v1950_v49 = vmul.f32 %v7202_v21, %v8386_v12  ;;  %v7204_v62 = vpop.eup %7203 }
 0x52e   : > { %v1951_v4 = vmul.f32 %v7204_v62, %v8382_v9 }
 0x52f   : > { %v1966_v17 = vpack.c.bf16 %v1950_v49, %v1950_v49 }
 0x530   : > { %v1967_v12 = vpack.c.bf16 %v1951_v4, %v1951_v4 }
 0x531   : > { %6641 = vmatmul.mubr.msk.bf16.vlgmr.msra.gmra.mrb[68].mxu1 %vm1776_vm3, %v1966_v17 }
 0x532   : > { %6651 = vmatpush3.bf16.msra.mxu1 %v2696_v44  ;;  %6652 = vmatprep.mubr.msk.bf16.mxu1 %vm7621_vm0, %v7619_v0 }
 0x535   : > { %v1920_v41 = vpop.xlane.xlu0 %1919 }
 0x536   : > { %7205 = vrcp.f32 %v1920_v41 }
 0x539   : > { %v2643_v51 = vpop.permute.xlu0 %2642 }
 0x53a   : > { %v2648_v42 = vsel %vm1974_vm4, %v2643_v51, 0 }
 0x53b   : > { %6645 = vmatpush3.bf16.msra.mxu0 %v2648_v42 }
 0x53c   : > { %6656 = vmatprep.subr.bf16.mxu0 %v7619_v0 }
 0x53e   : > { %v2012_v2 = vpop.f32.mrb[28].mxu0  ;;  %6647 = vmatmul.mubr.msk.bf16.vlgmr.msra.gmra.mrb[56].mxu0 %vm1776_vm3, %v1967_v12 }
 0x53f   : > { %v6564_v53 = vpop.f32.mrb[29].mxu0  ;;  %6672 = vmatprep.mubr.msk.bf16.mxu0 %vm7621_vm0, %v7619_v0  ;;  %v2738_v25 = vpack.c.bf16 %v2012_v2, %v2012_v2  ;;  %6657 = vmatpush3.bf16.msra.mxu0 %v7095_v57 }
 0x540   : > { %v7206_v28 = vpop.eup %7205  ;;  %v2015_v59 = vpop.f32.mrb[30].mxu0  ;;  %6658 = vmatprep.subr.bf16.mxu0 %v7619_v0 }
 0x541   : > { %v6565_v6 = vpop.f32.mrb[31].mxu0  ;;  %v1952_v54 = vmul.f32 %v7206_v28, %v8397_v20  ;;  %v8497_v26 = vunpack.c.l.b16 %v2738_v25 }
 0x542   : > { %v7097_v6 = vld [vmem:[#allocation8 + $0x10] sm:$0xff]  }
 0x543   : > { %v1968_v9 = vpack.c.bf16 %v1952_v54, %v1952_v54  ;;  %v2853_v20 = vrot.slane %v8497_v26, 2  ;;  %v2822_v14 = vrot.slane %v8497_v26, 1  ;;  %v2915_v16 = vrot.slane %v8497_v26, 4  ;;  %6659 = vmatpush3.bf16.msra.mxu0 %v7096_v18 }
 0x544   : > { %v2884_v27 = vrot.slane %v8497_v26, 3  ;;  %v2977_v48 = vrot.slane %v8497_v26, 6  ;;  %v2946_v52 = vrot.slane %v8497_v26, 5  ;;  %v3008_v19 = vrot.slane %v8497_v26, 7  ;;  %6660 = vmatprep.subr.bf16.mxu0 %v7619_v0 }
 0x545   : > { %6653 = vmatmul.mubr.msk.bf16.vlgmr.msra.gmra.mrb[72].mxu1 %vm1776_vm3, %v1968_v9 }
 0x546   : > { %3320 = vmatprep.mubr.bf16.mxu1 %v7620_v1 }
 0x547   : > { %6661 = vmatpush3.bf16.msra.mxu0 %v7097_v6 }
 0x548   : > { %6662 = vmatprep.subr.bf16.mxu0 %v7619_v0 }
 0x59f   : > { %v2060_v63 = vpop.f32.mrb[44].mxu1 }
 0x5a0   : > { %v6570_v60 = vpop.f32.mrb[45].mxu1  ;;  %v2739_v43 = vpack.c.bf16 %v2060_v63, %v2060_v63 }
 0x5a1   : > { %v2063_v3 = vpop.f32.mrb[46].mxu1 }
 0x5a2   : > { %v6571_v7 = vpop.f32.mrb[47].mxu1  ;;  %v8499_v8 = vunpack.c.l.b16 %v2739_v43 }
 0x5a4   : > { %v2854_v13 = vrot.slane %v8499_v8, 1  ;;  %v2916_v37 = vrot.slane %v8499_v8, 3  ;;  %v2885_v56 = vrot.slane %v8499_v8, 2  ;;  %v2978_v22 = vrot.slane %v8499_v8, 5 }
 0x5a5   : > { %v2947_v10 = vrot.slane %v8499_v8, 4  ;;  %v3009_v35 = vrot.slane %v8499_v8, 6  ;;  %v2823_v58 = vsel %vm2787_vm5, %v8499_v8, %v2822_v14  ;;  %v2786_v61 = vrot.slane %v8499_v8, 7 }
 0x5a6   : > { %v2855_v11 = vsel %vm2787_vm5, %v2854_v13, %v2853_v20  ;;  %v2917_v21 = vsel %vm2787_vm5, %v2916_v37, %v2915_v16  ;;  %v2886_v49 = vsel %vm2787_vm5, %v2885_v56, %v2884_v27  ;;  %v2979_v44 = vsel %vm2787_vm5, %v2978_v22, %v2977_v48 }
 0x5a7   : > { %v2948_v62 = vsel %vm2787_vm5, %v2947_v10, %v2946_v52  ;;  %v3010_v41 = vsel %vm2787_vm5, %v3009_v35, %v3008_v19 }
 0x5ae   : > { %v2108_v15 = vpop.f32.mrb[32].mxu0 }
 0x5af   : > { %v2740_v32 = vpack.c.bf16 %v2108_v15, %v2108_v15  ;;  %v6576_v24 = vpop.f32.mrb[33].mxu0  ;;  %v2156_v50 = vpop.f32.mrb[48].mxu1 }
 0x5b0   : > { %v2741_v55 = vpack.c.bf16 %v2156_v50, %v2156_v50  ;;  %v2111_v46 = vpop.f32.mrb[34].mxu0  ;;  %v6582_v31 = vpop.f32.mrb[49].mxu1  ;;  %v2788_v24 = vsel %vm2787_vm5, %v2786_v61, %v8497_v26 }
 0x5b1   : > { %v8517_v23 = vunpack.c.l.b16 %v2740_v32  ;;  %v6577_v47 = vpop.f32.mrb[35].mxu0  ;;  %v2159_v45 = vpop.f32.mrb[50].mxu1  ;;  %v7098_v32 = vld [vmem:[#allocation8 + $0x18] sm:$0xff]  }
 0x5b2   : > { %v8523_v5 = vunpack.c.l.b16 %v2741_v55  ;;  %v6583_v17 = vpop.f32.mrb[51].mxu1  ;;  %6663 = vmatpush3.bf16.msra.mxu0 %v7098_v32 }
 0x5b3   : > { %v2856_v4 = vsel %vm2790_vm6, %v8517_v23, %v2855_v11  ;;  %v2824_v51 = vrot.slane %v8517_v23, 7  ;;  %v2918_v42 = vrot.slane %v8517_v23, 2  ;;  %v2887_v12 = vrot.slane %v8517_v23, 1  ;;  %6664 = vmatprep.subr.bf16.mxu0 %v7619_v0 }
 0x5b4   : > { %v2857_v2 = vrot.slane %v8523_v5, 7  ;;  %v2826_v53 = vrot.slane %v8523_v5, 6  ;;  %v2920_v28 = vrot.slane %v8523_v5, 1  ;;  %v2980_v59 = vrot.slane %v8517_v23, 4 }
 0x5b5   : > { %v2825_v54 = vsel %vm2790_vm6, %v2824_v51, %v2823_v58  ;;  %v2919_v9 = vsel %vm2790_vm6, %v2918_v42, %v2917_v21  ;;  %v2888_v63 = vsel %vm2790_vm6, %v2887_v12, %v2886_v49  ;;  %v2982_v60 = vrot.slane %v8523_v5, 3 }
 0x5b6   : > { %v2204_v3 = vpop.f32.mrb[36].mxu0  ;;  %v2858_v7 = vsel %vm2793_vm7, %v2857_v2, %v2856_v4  ;;  %v2827_v25 = vsel %vm2793_vm7, %v2826_v53, %v2825_v54  ;;  %v2921_v43 = vsel %vm2793_vm7, %v2920_v28, %v2919_v9  ;;  %v2889_v8 = vsel %vm2793_vm7, %v8523_v5, %v2888_v63 }
 0x5b7   : > { %v2742_v20 = vpack.c.bf16 %v2204_v3, %v2204_v3  ;;  %v6588_v13 = vpop.f32.mrb[37].mxu0  ;;  %v2252_v14 = vpop.f32.mrb[52].mxu1  ;;  %v2981_v37 = vsel %vm2790_vm6, %v2980_v59, %v2979_v44  ;;  %v2949_v56 = vrot.slane %v8517_v23, 3  ;;  %v2951_v15 = vrot.slane %v8523_v5, 2 }
 0x5b8   : > { %v2743_v16 = vpack.c.bf16 %v2252_v14, %v2252_v14  ;;  %v2207_v22 = vpop.f32.mrb[38].mxu0  ;;  %v6594_v10 = vpop.f32.mrb[53].mxu1  ;;  %v2983_v35 = vsel %vm2793_vm7, %v2982_v60, %v2981_v37  ;;  %v3011_v57 = vrot.slane %v8517_v23, 5  ;;  %v3013_v55 = vrot.slane %v8523_v5, 4 }
 0x5b9   : > { %v2774_v50 = vunpack.c.l.b16 %v2742_v20  ;;  %v6589_v27 = vpop.f32.mrb[39].mxu0  ;;  %v2255_v48 = vpop.f32.mrb[54].mxu1  ;;  %v2950_v52 = vsel %vm2790_vm6, %v2949_v56, %v2948_v62  ;;  %v2789_v46 = vrot.slane %v8517_v23, 6  ;;  %v2792_v47 = vrot.slane %v8523_v5, 5  ;;  %v7099_v62 = vld [vmem:[#allocation8 + $0x20] sm:$0xff]  }
 0x5ba   : > { %v2775_v31 = vunpack.c.l.b16 %v2743_v16  ;;  %v6595_v58 = vpop.f32.mrb[55].mxu1  ;;  %v2952_v19 = vsel %vm2793_vm7, %v2951_v15, %v2950_v52  ;;  %v3012_v18 = vsel %vm2790_vm6, %v3011_v57, %v3010_v41  ;;  %6665 = vmatpush3.bf16.msra.mxu0 %v7099_v62 }
 0x5bb   : > { %v2859_v26 = vrot.slane %v2774_v50, 6  ;;  %v2828_v61 = vrot.slane %v2774_v50, 5  ;;  %v2922_v45 = vsel %vm2796_vm8, %v2774_v50, %v2921_v43  ;;  %v2890_v11 = vrot.slane %v2774_v50, 7  ;;  %6666 = vmatprep.subr.bf16.mxu0 %v7619_v0 }
 0x5bc   : > { %v2861_v21 = vrot.slane %v2775_v31, 5  ;;  %v2830_v49 = vrot.slane %v2775_v31, 4  ;;  %v2923_v17 = vrot.slane %v2775_v31, 7  ;;  %v2892_v44 = vrot.slane %v2775_v31, 6 }
 0x5bd   : > { %v2860_v23 = vsel %vm2796_vm8, %v2859_v26, %v2858_v7  ;;  %v2829_v4 = vsel %vm2796_vm8, %v2828_v61, %v2827_v25  ;;  %v2891_v51 = vsel %vm2796_vm8, %v2890_v11, %v2889_v8  ;;  %v2984_v41 = vrot.slane %v2774_v50, 2 }
 0x5be   : > { %v8567_v5 = vsel %vm2799_vm9, %v2861_v21, %v2860_v23  ;;  %v8570_v42 = vsel %vm2799_vm9, %v2830_v49, %v2829_v4  ;;  %v8573_v12 = vsel %vm2799_vm9, %v2923_v17, %v2922_v45  ;;  %v8576_v2 = vsel %vm2799_vm9, %v2892_v44, %v2891_v51 }
 0x5bf   : > { %v2348_v53 = vpop.f32.mrb[56].mxu1  ;;  %v2985_v28 = vsel %vm2796_vm8, %v2984_v41, %v2983_v35  ;;  %v2986_v59 = vrot.slane %v2775_v31, 1  ;;  %v2953_v6 = vrot.slane %v2774_v50, 1  ;;  %v3014_v54 = vsel %vm2793_vm7, %v3013_v55, %v3012_v18 }
 0x5c0   : > { %v6606_v9 = vpop.f32.mrb[57].mxu1  ;;  %v3015_v63 = vrot.slane %v2774_v50, 3  ;;  %v3017_v60 = vrot.slane %v2775_v31, 2  ;;  %v2791_v3 = vsel %vm2790_vm6, %v2789_v46, %v2788_v24  ;;  %v2795_v20 = vrot.slane %v2774_v50, 4 }
 0x5c1   : > { %v2351_v7 = vpop.f32.mrb[58].mxu1  ;;  %v2987_v25 = vsel %vm2799_vm9, %v2986_v59, %v2985_v28  ;;  %v2954_v43 = vsel %vm2796_vm8, %v2953_v6, %v2952_v19  ;;  %v2794_v8 = vsel %vm2793_vm7, %v2792_v47, %v2791_v3  ;;  %v2798_v56 = vrot.slane %v2775_v31, 3 }
 0x5c2   : > { %v6607_v13 = vpop.f32.mrb[59].mxu1  ;;  %v2955_v14 = vsel %vm2799_vm9, %v2775_v31, %v2954_v43  ;;  %v3016_v37 = vsel %vm2796_vm8, %v3015_v63, %v3014_v54  ;;  %v2797_v16 = vsel %vm2796_vm8, %v2795_v20, %v2794_v8  ;;  %v2745_v52 = vpack.c.bf16 %v2348_v53, %v2348_v53 }
 0x5c3   : > { %v3018_v15 = vsel %vm2799_vm9, %v3017_v60, %v3016_v37  ;;  %v2800_v22 = vsel %vm2799_vm9, %v2798_v56, %v2797_v16 }
 0x5c4   : > { %v2777_v46 = vunpack.c.l.b16 %v2745_v52 }
 0x5c6   : > { %v2865_v26 = vrot.slane %v2777_v46, 3  ;;  %v2834_v61 = vrot.slane %v2777_v46, 2  ;;  %v2927_v21 = vrot.slane %v2777_v46, 5  ;;  %v2896_v49 = vrot.slane %v2777_v46, 4 }
 0x5c7   : > { %v2444_v10 = vpop.f32.mrb[60].mxu1  ;;  %v2989_v17 = vrot.slane %v2777_v46, 7  ;;  %v2958_v23 = vrot.slane %v2777_v46, 6  ;;  %v2804_v4 = vrot.slane %v2777_v46, 1 }
 0x5c8   : > { %v6618_v35 = vpop.f32.mrb[61].mxu1  ;;  %v2747_v55 = vpack.c.bf16 %v2444_v10, %v2444_v10 }
 0x5c9   : > { %v2447_v57 = vpop.f32.mrb[62].mxu1 }
 0x5ca   : > { %v6619_v32 = vpop.f32.mrb[63].mxu1  ;;  %v8590_v58 = vunpack.c.l.b16 %v2747_v55 }
 0x5cc   : > { %v2868_v62 = vrot.slane %v8590_v58, 1  ;;  %v2930_v16 = vrot.slane %v8590_v58, 3  ;;  %v3023_v52 = vrot.slane %v8590_v58, 6  ;;  %v2807_v55 = vrot.slane %v8590_v58, 7 }
 0x5cf   : > { %v2540_v24 = vpop.f32.mrb[64].mxu1 }
 0x5d0   : > { %v6630_v50 = vpop.f32.mrb[65].mxu1  ;;  %v2749_v44 = vpack.c.bf16 %v2540_v24, %v2540_v24 }
 0x5d1   : > { %v2543_v27 = vpop.f32.mrb[66].mxu1  ;;  %v2899_v50 = vrot.slane %v8590_v58, 2 }
 0x5d2   : > { %v6631_v48 = vpop.f32.mrb[67].mxu1  ;;  %v2992_v27 = vrot.slane %v8590_v58, 5 }
 0x5d3   : > { %v2961_v48 = vrot.slane %v8590_v58, 4 }
 0x5e3   : > { %v2300_v31 = vpop.f32.mrb[40].mxu0 }
 0x5e4   : > { %v2744_v19 = vpack.c.bf16 %v2300_v31, %v2300_v31  ;;  %v6600_v18 = vpop.f32.mrb[41].mxu0 }
 0x5e5   : > { %v2303_v47 = vpop.f32.mrb[42].mxu0 }
 0x5e6   : > { %v2776_v45 = vunpack.c.l.b16 %v2744_v19  ;;  %v6601_v11 = vpop.f32.mrb[43].mxu0 }
 0x5e8   : > { %v2863_v51 = vrot.slane %v2776_v45, 4  ;;  %v2832_v41 = vrot.slane %v2776_v45, 3  ;;  %v2925_v53 = vrot.slane %v2776_v45, 6  ;;  %v2894_v28 = vrot.slane %v2776_v45, 5 }
 0x5e9   : > { %v2988_v59 = vsel %vm2802_vm10, %v2776_v45, %v2987_v25  ;;  %v2956_v6 = vrot.slane %v2776_v45, 7  ;;  %v3019_v54 = vrot.slane %v2776_v45, 1  ;;  %v2801_v9 = vrot.slane %v2776_v45, 2 }
 0x5ea   : > { %v2864_v63 = vsel %vm2802_vm10, %v2863_v51, %v8567_v5  ;;  %v2833_v60 = vsel %vm2802_vm10, %v2832_v41, %v8570_v42  ;;  %v2926_v3 = vsel %vm2802_vm10, %v2925_v53, %v8573_v12  ;;  %v2895_v7 = vsel %vm2802_vm10, %v2894_v28, %v8576_v2 }
 0x5eb   : > { %v2396_v43 = vpop.f32.mrb[44].mxu0  ;;  %v8603_v8 = vsel %vm9598_vm11, %v2865_v26, %v2864_v63  ;;  %v8606_v25 = vsel %vm9598_vm11, %v2834_v61, %v2833_v60  ;;  %v8609_v20 = vsel %vm9598_vm11, %v2927_v21, %v2926_v3  ;;  %v8612_v5 = vsel %vm9598_vm11, %v2896_v49, %v2895_v7 }
 0x5ec   : > { %v2746_v42 = vpack.c.bf16 %v2396_v43, %v2396_v43  ;;  %v6612_v13 = vpop.f32.mrb[45].mxu0  ;;  %v8615_v12 = vsel %vm9598_vm11, %v2989_v17, %v2988_v59  ;;  %v2957_v2 = vsel %vm2802_vm10, %v2956_v6, %v2955_v14  ;;  %v3020_v37 = vsel %vm2802_vm10, %v3019_v54, %v3018_v15 }
 0x5ed   : > { %v2399_v56 = vpop.f32.mrb[46].mxu0  ;;  %v8621_v10 = vsel %vm9598_vm11, %v2958_v23, %v2957_v2  ;;  %v8624_v35 = vsel %vm9598_vm11, %v2777_v46, %v3020_v37  ;;  %v2803_v57 = vsel %vm2802_vm10, %v2801_v9, %v2800_v22  ;;  %v2781_v15 = vunpack.c.l.b16 %v2749_v44 }
 0x5ee   : > { %v2778_v32 = vunpack.c.l.b16 %v2746_v42  ;;  %v6613_v24 = vpop.f32.mrb[47].mxu0  ;;  %v8630_v14 = vsel %vm9598_vm11, %v2804_v4, %v2803_v57 }
 0x5ef   : > { %v2840_v6 = vrot.slane %v2781_v15, 6  ;;  %v2934_v54 = vrot.slane %v2781_v15, 1  ;;  %v2965_v9 = vrot.slane %v2781_v15, 2  ;;  %v3027_v63 = vrot.slane %v2781_v15, 4 }
 0x5f0   : > { %v2867_v46 = vrot.slane %v2778_v32, 2  ;;  %v2836_v31 = vrot.slane %v2778_v32, 1  ;;  %v2929_v19 = vrot.slane %v2778_v32, 4  ;;  %v2898_v22 = vrot.slane %v2778_v32, 3 }
 0x5f1   : > { %v2991_v18 = vrot.slane %v2778_v32, 6  ;;  %v2960_v47 = vrot.slane %v2778_v32, 5  ;;  %v3022_v26 = vrot.slane %v2778_v32, 7  ;;  %v2808_v61 = vsel %vm2787_vm5, %v2807_v55, %v2778_v32 }
 0x5f2   : > { %v2869_v45 = vsel %vm2787_vm5, %v2868_v62, %v2867_v46  ;;  %v2837_v11 = vsel %vm2787_vm5, %v8590_v58, %v2836_v31  ;;  %v2931_v21 = vsel %vm2787_vm5, %v2930_v16, %v2929_v19  ;;  %v2900_v49 = vsel %vm2787_vm5, %v2899_v50, %v2898_v22 }
 0x5f3   : > { %v2492_v17 = vpop.f32.mrb[48].mxu0  ;;  %v2993_v44 = vsel %vm2787_vm5, %v2992_v27, %v2991_v18  ;;  %v2962_v23 = vsel %vm2787_vm5, %v2961_v48, %v2960_v47  ;;  %v3024_v4 = vsel %vm2787_vm5, %v3023_v52, %v3022_v26  ;;  %v2871_v62 = vrot.slane %v2781_v15, 7 }
 0x5f4   : > { %v2748_v51 = vpack.c.bf16 %v2492_v17, %v2492_v17  ;;  %v6624_v41 = vpop.f32.mrb[49].mxu0  ;;  %v2996_v58 = vrot.slane %v2781_v15, 3  ;;  %v2811_v60 = vrot.slane %v2781_v15, 5 }
 0x5f5   : > { %v2495_v53 = vpop.f32.mrb[50].mxu0 }
 0x5f6   : > { %v2780_v28 = vunpack.c.l.b16 %v2748_v51  ;;  %v6625_v59 = vpop.f32.mrb[51].mxu0 }
 0x5f8   : > { %v2870_v3 = vsel %vm2790_vm6, %v2780_v28, %v2869_v45  ;;  %v2838_v7 = vrot.slane %v2780_v28, 7  ;;  %v2932_v43 = vrot.slane %v2780_v28, 2  ;;  %v2901_v42 = vrot.slane %v2780_v28, 1 }
 0x5f9   : > { %v2872_v13 = vsel %vm2793_vm7, %v2871_v62, %v2870_v3  ;;  %v2994_v2 = vrot.slane %v2780_v28, 4  ;;  %v2963_v37 = vrot.slane %v2780_v28, 3  ;;  %v3025_v56 = vrot.slane %v2780_v28, 5 }
 0x5fa   : > { %v2839_v16 = vsel %vm2790_vm6, %v2838_v7, %v2837_v11  ;;  %v2933_v57 = vsel %vm2790_vm6, %v2932_v43, %v2931_v21  ;;  %v2902_v32 = vsel %vm2790_vm6, %v2901_v42, %v2900_v49  ;;  %v2809_v24 = vrot.slane %v2780_v28, 6 }
 0x5fb   : > { %v2588_v50 = vpop.f32.mrb[52].mxu0  ;;  %v2841_v27 = vsel %vm2793_vm7, %v2840_v6, %v2839_v16  ;;  %v2935_v48 = vsel %vm2793_vm7, %v2934_v54, %v2933_v57  ;;  %v2903_v52 = vsel %vm2793_vm7, %v2781_v15, %v2902_v32  ;;  %v2995_v55 = vsel %vm2790_vm6, %v2994_v2, %v2993_v44 }
 0x5fc   : > { %v2750_v46 = vpack.c.bf16 %v2588_v50, %v2588_v50  ;;  %v6636_v31 = vpop.f32.mrb[53].mxu0  ;;  %v2997_v19 = vsel %vm2793_vm7, %v2996_v58, %v2995_v55  ;;  %v2964_v22 = vsel %vm2790_vm6, %v2963_v37, %v2962_v23  ;;  %v3026_v18 = vsel %vm2790_vm6, %v3025_v56, %v3024_v4 }
 0x5fd   : > { %v2591_v47 = vpop.f32.mrb[54].mxu0  ;;  %v2966_v26 = vsel %vm2793_vm7, %v2965_v9, %v2964_v22  ;;  %v3028_v45 = vsel %vm2793_vm7, %v3027_v63, %v3026_v18  ;;  %v2810_v11 = vsel %vm2790_vm6, %v2809_v24, %v2808_v61 }
 0x5fe   : > { %v2782_v21 = vunpack.c.l.b16 %v2750_v46  ;;  %v6637_v49 = vpop.f32.mrb[55].mxu0  ;;  %v2812_v15 = vsel %vm2793_vm7, %v2811_v60, %v2810_v11  ;;  %v7100_v11 = vld [vmem:[#allocation8 + $0x28] sm:$0xff]  }
 0x5ff   : > { %6667 = vmatpush3.bf16.msra.mxu0 %v7100_v11 }
 0x600   : > { %v2873_v17 = vrot.slane %v2782_v21, 6  ;;  %v2842_v44 = vrot.slane %v2782_v21, 5  ;;  %v2936_v51 = vsel %vm2796_vm8, %v2782_v21, %v2935_v48  ;;  %v2904_v41 = vrot.slane %v2782_v21, 7  ;;  %6668 = vmatprep.subr.bf16.mxu0 %v7619_v0 }
 0x601   : > { %v2998_v53 = vrot.slane %v2782_v21, 2  ;;  %v2967_v23 = vrot.slane %v2782_v21, 1  ;;  %v3029_v28 = vrot.slane %v2782_v21, 3  ;;  %v2813_v4 = vrot.slane %v2782_v21, 4 }
 0x602   : > { %v2874_v59 = vsel %vm2796_vm8, %v2873_v17, %v2872_v13  ;;  %v2843_v62 = vsel %vm2796_vm8, %v2842_v44, %v2841_v27  ;;  %v2905_v6 = vsel %vm2796_vm8, %v2904_v41, %v2903_v52 }
 0x603   : > { %v2999_v61 = vsel %vm2796_vm8, %v2998_v53, %v2997_v19  ;;  %v2968_v54 = vsel %vm2796_vm8, %v2967_v23, %v2966_v26  ;;  %v3030_v58 = vsel %vm2796_vm8, %v3029_v28, %v3028_v45  ;;  %v2814_v9 = vsel %vm2796_vm8, %v2813_v4, %v2812_v15 }
 0x604   : > { %v2636_v63 = vpop.f32.mrb[68].mxu1 }
 0x605   : > { %v2751_v60 = vpack.c.bf16 %v2636_v63, %v2636_v63  ;;  %v6642_v3 = vpop.f32.mrb[69].mxu1  ;;  %v7101_v63 = vld [vmem:[#allocation8 + $0x30] sm:$0xff]  }
 0x606   : > { %v2639_v7 = vpop.f32.mrb[70].mxu1  ;;  %6669 = vmatpush3.bf16.msra.mxu0 %v7101_v63  ;;  %v7106_v63 = vld [vmem:[#allocation10 + $0x10] ss:$8 sps:$4 sm:$0xff]  }
 0x607   : > { %v2783_v43 = vunpack.c.l.b16 %v2751_v60  ;;  %v6643_v42 = vpop.f32.mrb[71].mxu1  ;;  %6670 = vmatprep.subr.bf16.mxu0 %v7619_v0 }
 0x609   : > { %v2875_v2 = vrot.slane %v2783_v43, 5  ;;  %v2844_v13 = vrot.slane %v2783_v43, 4  ;;  %v2937_v37 = vrot.slane %v2783_v43, 7  ;;  %v2906_v56 = vrot.slane %v2783_v43, 6 }
 0x60a   : > { %v3000_v16 = vrot.slane %v2783_v43, 1  ;;  %v2969_v57 = vsel %vm2799_vm9, %v2783_v43, %v2968_v54  ;;  %v3031_v32 = vrot.slane %v2783_v43, 2  ;;  %v2815_v24 = vrot.slane %v2783_v43, 3 }
 0x60b   : > { %v2876_v50 = vsel %vm2799_vm9, %v2875_v2, %v2874_v59  ;;  %v2845_v27 = vsel %vm2799_vm9, %v2844_v13, %v2843_v62  ;;  %v2938_v48 = vsel %vm2799_vm9, %v2937_v37, %v2936_v51  ;;  %v2907_v52 = vsel %vm2799_vm9, %v2906_v56, %v2905_v6  ;;  %v7102_v37 = vld [vmem:[#allocation8 + $0x38] sm:$0xff]  }
 0x60c   : > { %v3001_v55 = vsel %vm2799_vm9, %v3000_v16, %v2999_v61  ;;  %v3032_v46 = vsel %vm2799_vm9, %v3031_v32, %v3030_v58  ;;  %v2816_v31 = vsel %vm2799_vm9, %v2815_v24, %v2814_v9  ;;  %6671 = vmatpush3.bf16.msra.mxu0 %v7102_v37  ;;  %v7111_v37 = vld [vmem:[#allocation10 + $0x24] ss:$8 sps:$4 sm:$0xff]  }
 0x611   : > { %v2684_v19 = vpop.f32.mrb[56].mxu0 }
 0x612   : > { %v2752_v22 = vpack.c.bf16 %v2684_v19, %v2684_v19  ;;  %v6648_v18 = vpop.f32.mrb[57].mxu0 }
 0x613   : > { %v2687_v47 = vpop.f32.mrb[58].mxu0 }
 0x614   : > { %v2784_v26 = vunpack.c.l.b16 %v2752_v22  ;;  %v6649_v45 = vpop.f32.mrb[59].mxu0 }
 0x616   : > { %v2877_v21 = vrot.slane %v2784_v26, 4  ;;  %v2846_v49 = vrot.slane %v2784_v26, 3  ;;  %v2939_v15 = vrot.slane %v2784_v26, 6  ;;  %v2908_v17 = vrot.slane %v2784_v26, 5 }
 0x617   : > { %v3002_v44 = vsel %vm2802_vm10, %v2784_v26, %v3001_v55  ;;  %v2970_v51 = vrot.slane %v2784_v26, 7  ;;  %v3033_v41 = vrot.slane %v2784_v26, 1  ;;  %v2817_v53 = vrot.slane %v2784_v26, 2 }
 0x618   : > { %v2732_v23 = vpop.f32.mrb[72].mxu1  ;;  %v2878_v28 = vsel %vm2802_vm10, %v2877_v21, %v2876_v50  ;;  %v2847_v4 = vsel %vm2802_vm10, %v2846_v49, %v2845_v27  ;;  %v2940_v59 = vsel %vm2802_vm10, %v2939_v15, %v2938_v48  ;;  %v2909_v62 = vsel %vm2802_vm10, %v2908_v17, %v2907_v52 }
 0x619   : > { %v2753_v6 = vpack.c.bf16 %v2732_v23, %v2732_v23  ;;  %v6654_v61 = vpop.f32.mrb[73].mxu1  ;;  %v2971_v54 = vsel %vm2802_vm10, %v2970_v51, %v2969_v57  ;;  %v3034_v58 = vsel %vm2802_vm10, %v3033_v41, %v3032_v46  ;;  %v2818_v9 = vsel %vm2802_vm10, %v2817_v53, %v2816_v31  ;;  %v6151_v41 = vld [vmem:[%s9577_s5] ss:$0 sm:$0xff] }
 0x61a   : > { %v2735_v60 = vpop.f32.mrb[74].mxu1 }
 0x61b   : > { %v2785_v3 = vunpack.c.l.b16 %v2753_v6  ;;  %v6655_v7 = vpop.f32.mrb[75].mxu1 }
 0x61d   : > { %v2879_v43 = vrot.slane %v2785_v3, 3  ;;  %v2848_v42 = vrot.slane %v2785_v3, 2  ;;  %v2941_v2 = vrot.slane %v2785_v3, 5  ;;  %v2910_v13 = vrot.slane %v2785_v3, 4 }
 0x61e   : > { %v3003_v56 = vrot.slane %v2785_v3, 7  ;;  %v2972_v16 = vrot.slane %v2785_v3, 6  ;;  %v3035_v57 = vsel %vm9598_vm11, %v2785_v3, %v3034_v58  ;;  %v2819_v32 = vrot.slane %v2785_v3, 1  ;;  %v7105_v58 = vld [vmem:[#allocation10 + $0x4] ss:$8 sps:$4 sm:$0xff]  }
 0x61f   : > { %v2880_v24 = vsel %vm9598_vm11, %v2879_v43, %v2878_v28  ;;  %v2849_v50 = vsel %vm9598_vm11, %v2848_v42, %v2847_v4  ;;  %v2942_v27 = vsel %vm9598_vm11, %v2941_v2, %v2940_v59  ;;  %v2911_v48 = vsel %vm9598_vm11, %v2910_v13, %v2909_v62  ;;  %3288 = vmatprep.subr.bf16.mxu1 %v7105_v58  ;;  %v7109_v13 = vld [vmem:[#allocation10 + $0x20] ss:$8 sps:$4 sm:$0xff]   ;;  %v7292_v58 = vld [vmem:[#allocation7 + $0x30] ss:$12 sps:$4 sm:$0xff]  }
 0x620   : > { %v2881_v52 = vpack.c.b16 %v2880_v24, %v8603_v8  ;;  %v2850_v55 = vpack.c.b16 %v2849_v50, %v8606_v25  ;;  %v2943_v46 = vpack.c.b16 %v2942_v27, %v8609_v20  ;;  %v2912_v31 = vpack.c.b16 %v2911_v48, %v8612_v5  ;;  %v7120_v24 = vld [vmem:[#allocation10 + $0x54] ss:$8 sps:$4 sm:$0xff]   ;;  %v7118_v50 = vld [vmem:[#allocation10 + $0x50] ss:$8 sps:$4 sm:$0xff]   ;;  %v7123_v27 = vld [vmem:[#allocation10 + $0x64] ss:$8 sps:$4 sm:$0xff]  }
 0x621   : > { %v3004_v19 = vsel %vm9598_vm11, %v3003_v56, %v3002_v44  ;;  %v2973_v22 = vsel %vm9598_vm11, %v2972_v16, %v2971_v54  ;;  %v3036_v18 = vpack.c.b16 %v3035_v57, %v8624_v35  ;;  %v2820_v47 = vsel %vm9598_vm11, %v2819_v32, %v2818_v9  ;;  %v7103_v54 = vld [vmem:[#allocation10] ss:$8 sps:$4 sm:$0xff]   ;;  %v7108_v9 = vld [vmem:[#allocation10 + $0x14] ss:$8 sps:$4 sm:$0xff]   ;;  %v7112_v16 = vld [vmem:[#allocation10 + $0x30] ss:$8 sps:$4 sm:$0xff]  }
 0x622   : > { %2882 = vrot.lane.b32.xlu1 %v2881_v52, %s7624_s24  ;;  %2851 = vrot.lane.b32.xlu0 %v2850_v55, %s9602_s1  ;;  %v3005_v8 = vpack.c.b16 %v3004_v19, %v8615_v12  ;;  %v2974_v25 = vpack.c.b16 %v2973_v22, %v8621_v10  ;;  %v2821_v20 = vpack.c.b16 %v2820_v47, %v8630_v14  ;;  %vm9604_vm11 = vcmask 916480   ;;  %v7114_v56 = vld [vmem:[#allocation10 + $0x34] ss:$8 sps:$4 sm:$0xff]   ;;  %v7115_v57 = vld [vmem:[#allocation10 + $0x40] ss:$8 sps:$4 sm:$0xff]   ;;  %s9640_s1 = sld [smem:[#allocation26_spill]] }
 0x623   : > { %3289 = vmatpush1.bf16.msra.mxu1 %v7103_v54  ;;  %v7117_v32 = vld [vmem:[#allocation10 + $0x44] ss:$8 sps:$4 sm:$0xff]   ;;  %v7121_v48 = vld [vmem:[#allocation10 + $0x60] ss:$8 sps:$4 sm:$0xff]   ;;  %v7124_v22 = vld [vmem:[#allocation10 + $0x70] ss:$8 sps:$4 sm:$0xff]  }
 0x624   : > { %3290 = vmatprep.subr.bf16.mxu1 %v7108_v9  ;;  %v7127_v52 = vld [vmem:[#allocation11 + $0x40] sm:$0xff]   ;;  %v7130_v19 = vld [vmem:[#allocation11 + $0x8] sm:$0xff]   ;;  %v7132_v47 = vld [vmem:[#allocation11 + $0x10] sm:$0xff]  }
 0x625   : > { %v7128_v55 = vld [vmem:[#allocation11] sm:$0xff]   ;;  %6318 = vmatprep.subr.bf16.mxu0 %v7127_v52  ;;  %v7293_v9 = vld [vmem:[#allocation7 + $0x4c] ss:$12 sps:$4 sm:$0xff]  }
 0x626   : > { %2944 = vrot.lane.b32.xlu1 %v2943_v46, %s7625_s4  ;;  %2913 = vrot.lane.b32.xlu0 %v2912_v31, %s9600_s11  ;;  %v7129_v46 = vld [vmem:[#allocation11 + $0x48] sm:$0xff]   ;;  %v7126_v31 = vld [vmem:[#allocation10 + $0x74] ss:$8 sps:$4 sm:$0xff]   ;;  %s9642_s11 = smov 48  }
 0x627   : > { %3291 = vmatpush1.bf16.msra.mxu1 %v7106_v63  ;;  %v7291_v54 = vld [vmem:[#allocation7 + $0x34] ss:$12 sps:$4 sm:$0xff]  }
 0x628   : > { %3292 = vmatprep.subr.bf16.mxu1 %v7111_v37  ;;  %v7294_v63 = vld [vmem:[#allocation7 + $0x48] ss:$12 sps:$4 sm:$0xff]  }
 0x629   : > { %v7139_v37 = vld [vmem:[#allocation11 + $0x70] sm:$0xff]  }
 0x62a   : > { %3006 = vrot.lane.b32.xlu1 %v3005_v8, %s7627_s14  ;;  %2975 = vrot.lane.b32.xlu0 %v2974_v25, %s7622_s18  ;;  %v7133_v8 = vld [vmem:[#allocation11 + $0x58] sm:$0xff]   ;;  %v7287_v25 = vld [vmem:[#allocation7 + $0x4] ss:$12 sps:$4 sm:$0xff]  }
 0x62b   : > { %3293 = vmatpush1.bf16.msra.mxu1 %v7109_v13  ;;  %v7138_v13 = vld [vmem:[#allocation11 + $0x28] sm:$0xff]  }
 0x62c   : > { %3294 = vmatprep.subr.bf16.mxu1 %v7114_v56  ;;  %v7140_v56 = vld [vmem:[#allocation11 + $0x30] sm:$0xff]  }
 0x62e   : > { %3037 = vrot.lane.b32.xlu0 %v3036_v18, %s7623_s13  ;;  %v7131_v18 = vld [vmem:[#allocation11 + $0x50] sm:$0xff]  }
 0x62f   : > { %3295 = vmatpush1.bf16.msra.mxu1 %v7112_v16  ;;  %v7141_v16 = vld [vmem:[#allocation11 + $0x78] sm:$0xff]  }
 0x630   : > { %3296 = vmatprep.subr.bf16.mxu1 %v7117_v32  ;;  %v633_v32 = vld [vmem:[%s9581_s9] sm:$0x3] }
 0x633   : > { %3297 = vmatpush1.bf16.msra.mxu1 %v7115_v57  ;;  %v7142_v57 = vld [vmem:[#allocation11 + $0x38] sm:$0xff]  }
 0x634   : > { %3298 = vmatprep.subr.bf16.mxu1 %v7120_v24  ;;  %v8751_v24 = vrot.slane %v633_v32, %v673_v34 }
 0x637   : > { %3299 = vmatpush1.bf16.msra.mxu1 %v7118_v50  ;;  %v8755_v50 = vrot.slane %v633_v32, %v677_v36  ;;  %v7303_v36 = vld [vmem:[#allocation7 + $0x8] ss:$12 sps:$4 sm:$0xff]  }
 0x638   : > { %3300 = vmatprep.subr.bf16.mxu1 %v7123_v27 }
 0x63b   : > { %3301 = vmatpush1.bf16.msra.mxu1 %v7121_v48 }
 0x63c   : > { %3302 = vmatprep.subr.bf16.mxu1 %v7126_v31 }
 0x63f   : > { %3303 = vmatpush1.bf16.msra.mxu1 %v7124_v22 }
 0x640   : > { %3521 = vmatprep.subr.bf16.mxu1 %v7287_v25 }
 0x694   : > { %v2883_v5 = vpop.permute.xlu1 %2882  ;;  %v2852_v35 = vpop.permute.xlu0 %2851 }
 0x695   : > { %v3041_v26 = vsel %vm921_vm2, %v2821_v20, %v2852_v35  ;;  %v7134_v20 = vld [vmem:[#allocation11 + $0x18] sm:$0xff]   ;;  %v7136_v35 = vld [vmem:[#allocation11 + $0x20] sm:$0xff]  }
 0x696   : > { %v3043_v10 = vsel %vm907_vm1, %v3041_v26, %v2883_v5  ;;  %v7135_v5 = vld [vmem:[#allocation11 + $0x60] sm:$0xff]   ;;  %v7137_v26 = vld [vmem:[#allocation11 + $0x68] sm:$0xff]  }
 0x698   : > { %v2945_v12 = vpop.permute.xlu1 %2944  ;;  %v2914_v45 = vpop.permute.xlu0 %2913 }
 0x699   : > { %v3046_v14 = vsel %vm3044_vm12, %v3043_v10, %v2914_v45 }
 0x69a   : > { %v3049_v21 = vsel %vm3047_vm13, %v3046_v14, %v2945_v12 }
 0x69c   : > { %v2976_v11 = vpop.permute.xlu0 %2975  ;;  %v3007_v49 = vpop.permute.xlu1 %3006 }
 0x69d   : > { %v3052_v15 = vsel %vm3050_vm14, %v3049_v21, %v2976_v11 }
 0x69e   : > { %v3055_v44 = vsel %vm3053_vm15, %v3052_v15, %v3007_v49  ;;  %v6160_v15 = vld [vmem:[%s9578_s6] ss:$0 sm:$0xff] }
 0x6a0   : > { %v3038_v17 = vpop.permute.xlu0 %3037 }
 0x6a1   : > { %v3058_v51 = vsel %vm9604_vm11, %v3055_v44, %v3038_v17 }
 0x6a2   : > { %6673 = vmatmul.mubr.bf16.vlgmr.msra.gmra.mrb[60].mxu0 %v3058_v51 }
 0x6a3   : > { %6319 = vmatpush3.bf16.msra.mxu0 %v7128_v55 }
 0x6a4   : > { %6320 = vmatprep.subr.bf16.mxu0 %v7129_v46 }
 0x6a7   : > { %6321 = vmatpush3.bf16.msra.mxu0 %v7130_v19 }
 0x6a8   : > { %6322 = vmatprep.subr.bf16.mxu0 %v7131_v18 }
 0x6ab   : > { %6323 = vmatpush3.bf16.msra.mxu0 %v7132_v47 }
 0x6ac   : > { %6324 = vmatprep.subr.bf16.mxu0 %v7133_v8 }
 0x6af   : > { %6325 = vmatpush3.bf16.msra.mxu0 %v7134_v20  ;;  %v7304_v20 = vld [vmem:[#allocation7 + $0x20] ss:$12 sps:$4 sm:$0xff]  }
 0x6b0   : > { %6326 = vmatprep.subr.bf16.mxu0 %v7135_v5  ;;  %v7305_v5 = vld [vmem:[#allocation7 + $0x38] ss:$12 sps:$4 sm:$0xff]  }
 0x6b3   : > { %6327 = vmatpush3.bf16.msra.mxu0 %v7136_v35  ;;  %v7306_v35 = vld [vmem:[#allocation7 + $0x50] ss:$12 sps:$4 sm:$0xff]  }
 0x6b4   : > { %6328 = vmatprep.subr.bf16.mxu0 %v7137_v26  ;;  %v7307_v26 = vld [vmem:[#allocation7 + $0x68] ss:$12 sps:$4 sm:$0xff]  }
 0x6b7   : > { %6329 = vmatpush3.bf16.msra.mxu0 %v7138_v13 }
 0x6b8   : > { %6330 = vmatprep.subr.bf16.mxu0 %v7139_v37 }
 0x6bb   : > { %6331 = vmatpush3.bf16.msra.mxu0 %v7140_v56  ;;  %v6196_v56 = vld [vmem:[%s9640_s1] ss:$0 sm:$0xff] }
 0x6bc   : > { %6332 = vmatprep.subr.bf16.mxu0 %v7141_v16 }
 0x6bf   : > { %6333 = vmatpush3.bf16.msra.mxu0 %v7142_v57 }
 0x6c0   : > { %6676 = vmatprep.subr.bf16.mxu0 %v7619_v0 }
 0x775   : > { %v3148_v53 = vpop.f32.mrb[60].mxu0 }
 0x776   : > { %v3149_v23 = vadd.f32 %v6151_v41, %v3148_v53  ;;  %v6674_v28 = vpop.f32.mrb[61].mxu0  ;;  %v6161_v53 = vld [vmem:[%s9579_s7] ss:$0 sm:$0xff] }
 0x777   : > { %v3151_v4 = vpop.f32.mrb[62].mxu0 }
 0x778   : > { %v3152_v59 = vadd.f32 %v6151_v41, %v3151_v4  ;;  %v6675_v62 = vpop.f32.mrb[63].mxu0  ;;  %v3155_v6 = vadd.f32 %v3149_v23, %v7979_v29 }
 0x779   : > { %v7288_v62 = vld [vmem:[#allocation7] ss:$12 sps:$4 sm:$0xff]  }
 0x77a   : > { %3157 = vadd.xlane.f32.xlu1 %v3155_v6  ;;  %v3156_v61 = vadd.f32 %v3152_v59, %v7981_v30 }
 0x77c   : > { %3159 = vadd.xlane.f32.xlu0 %v3156_v61 }
 0x807   : > { %v3158_v60 = vpop.xlane.xlu1 %3157 }
 0x808   : > { %v3162_v3 = vmul.f32 0.0078125, %v3158_v60  ;;  %v7295_v60 = vld [vmem:[#allocation7 + $0x64] ss:$12 sps:$4 sm:$0xff]  }
 0x809   : > { %v3160_v7 = vpop.xlane.xlu0 %3159 }
 0x80a   : > { %v3163_v43 = vmul.f32 0.0078125, %v3160_v7  ;;  %v8721_v42 = vsub.f32 %v3155_v6, %v3162_v3  ;;  %v7289_v6 = vld [vmem:[#allocation7 + $0x1c] ss:$12 sps:$4 sm:$0xff]   ;;  %v7296_v3 = vld [vmem:[#allocation7 + $0x60] ss:$12 sps:$4 sm:$0xff]  }
 0x80b   : > { %v7297_v7 = vld [vmem:[#allocation7 + $0x7c] ss:$12 sps:$4 sm:$0xff]  }
 0x80c   : > { %v3166_v29 = vmul.f32 %v8721_v42, %v8721_v42  ;;  %v8725_v2 = vsub.f32 %v3156_v61, %v3163_v43  ;;  %v7290_v61 = vld [vmem:[#allocation7 + $0x18] ss:$12 sps:$4 sm:$0xff]  }
 0x80d   : > { %v7298_v43 = vld [vmem:[#allocation7 + $0x78] ss:$12 sps:$4 sm:$0xff]  }
 0x80e   : > { %3168 = vadd.xlane.f32.xlu0 %v3166_v29  ;;  %v3167_v30 = vmul.f32 %v8725_v2, %v8725_v2  ;;  %v7300_v29 = vld [vmem:[#allocation7 + $0x90] ss:$12 sps:$4 sm:$0xff]  }
 0x810   : > { %3170 = vadd.xlane.f32.xlu1 %v3167_v30  ;;  %v7302_v30 = vld [vmem:[#allocation7 + $0xa8] ss:$12 sps:$4 sm:$0xff]  }
 0x89b   : > { %v3169_v12 = vpop.xlane.xlu0 %3168 }
 0x89c   : > { %v3172_v45 = vmul.f32 0.0078125, %v3169_v12  ;;  %v7308_v12 = vld [vmem:[#allocation7 + $0x80] ss:$12 sps:$4 sm:$0xff]  }
 0x89d   : > { %v3171_v10 = vpop.xlane.xlu1 %3170 }
 0x89e   : > { %v3174_v14 = vadd.f32 1e-05, %v3172_v45  ;;  %v3173_v11 = vmul.f32 0.0078125, %v3171_v10  ;;  %v7309_v45 = vld [vmem:[#allocation7 + $0x98] ss:$12 sps:$4 sm:$0xff]  }
 0x89f   : > { %v7310_v10 = vld [vmem:[#allocation7 + $0xb0] ss:$12 sps:$4 sm:$0xff]  }
 0x8a0   : > { %7207 = vrsqrt.f32 %v3174_v14  ;;  %v3175_v21 = vadd.f32 1e-05, %v3173_v11  ;;  %v6178_v11 = vld [vmem:[%s9638_s20] ss:$0 sm:$0xff] }
 0x8a2   : > { %7209 = vrsqrt.f32 %v3175_v21 }
 0x8aa   : > { %v7208_v49 = vpop.eup %7207 }
 0x8ab   : > { %v3178_v17 = vmul.f32 %v7208_v49, %v8721_v42  ;;  %v7299_v42 = vld [vmem:[#allocation7 + $0x94] ss:$12 sps:$4 sm:$0xff]  }
 0x8ac   : > { %v7210_v44 = vpop.eup %7209 }
 0x8ad   : > { %v3179_v51 = vmul.f32 %v7210_v44, %v8725_v2  ;;  %v3186_v41 = vmul.f32 %v6160_v15, %v3178_v17  ;;  %v7301_v2 = vld [vmem:[#allocation7 + $0xac] ss:$12 sps:$4 sm:$0xff]  }
 0x8af   : > { %v3187_v23 = vmul.f32 %v6160_v15, %v3179_v51  ;;  %v8737_v28 = vadd.f32 %v6161_v53, %v3186_v41 }
 0x8b1   : > { %v8739_v4 = vadd.f32 %v6161_v53, %v3187_v23 }
 0x8b3   : > { %v3196_v59 = vpack.c.bf16 %v8739_v4, %v8737_v28 }
 0x8b5   : > { %3321 = vmatmul.mubr.bf16.vlgmr.msra.gmra.mrb[76].mxu1 %v3196_v59 }
 0x8b6   : > { %3522 = vmatpush1.bf16.msra.mxu1 %v7288_v62  ;;  %3553 = vmatprep.mubr.bf16.mxu1 %v7620_v1 }
 0x8b7   : > { %3523 = vmatprep.subr.bf16.mxu1 %v7289_v6 }
 0x8ba   : > { %3524 = vmatpush1.bf16.msra.mxu1 %v7290_v61 }
 0x8bb   : > { %3525 = vmatprep.subr.bf16.mxu1 %v7291_v54 }
 0x8be   : > { %3526 = vmatpush1.bf16.msra.mxu1 %v7292_v58 }
 0x8bf   : > { %3527 = vmatprep.subr.bf16.mxu1 %v7293_v9 }
 0x8c2   : > { %3528 = vmatpush1.bf16.msra.mxu1 %v7294_v63 }
 0x8c3   : > { %3529 = vmatprep.subr.bf16.mxu1 %v7295_v60 }
 0x8c6   : > { %3530 = vmatpush1.bf16.msra.mxu1 %v7296_v3 }
 0x8c7   : > { %3531 = vmatprep.subr.bf16.mxu1 %v7297_v7 }
 0x8ca   : > { %3532 = vmatpush1.bf16.msra.mxu1 %v7298_v43 }
 0x8cb   : > { %3533 = vmatprep.subr.bf16.mxu1 %v7299_v42 }
 0x8ce   : > { %3534 = vmatpush1.bf16.msra.mxu1 %v7300_v29  ;;  %v6195_v29 = vld [vmem:[%s9639_s23] ss:$0 sm:$0xff] }
 0x8cf   : > { %3535 = vmatprep.subr.bf16.mxu1 %v7301_v2 }
 0x8d2   : > { %3536 = vmatpush1.bf16.msra.mxu1 %v7302_v30 }
 0x8d3   : > { %6696 = vmatprep.subr.bf16.mxu1 %v7619_v0 }
 0x988   : > { %v3322_v27 = vpop.f32.mrb[76].mxu1 }
 0x989   : > { %v3323_v48 = vadd.f32 %v3322_v27, %v8751_v24  ;;  %v3324_v52 = vpop.f32.mrb[77].mxu1 }
 0x98a   : > { %v3325_v55 = vadd.f32 %v3324_v52, %v8755_v50  ;;  %v3326_v46 = vpop.f32.mrb[78].mxu1 }
 0x98b   : > { %v3327_v31 = vadd.f32 %v3326_v46, %v8751_v24  ;;  %v3328_v19 = vpop.f32.mrb[79].mxu1  ;;  %v3331_v18 = vmax.f32 %v3323_v48, 0.0 }
 0x98c   : > { %v3329_v22 = vadd.f32 %v3328_v19, %v8755_v50  ;;  %v3332_v34 = vmax.f32 %v3325_v55, 0.0 }
 0x98d   : > { %v3333_v47 = vmax.f32 %v3327_v31, 0.0 }
 0x98e   : > { %v3334_v8 = vmax.f32 %v3329_v22, 0.0 }
 0x98f   : > { %v3335_v25 = vpack.c.bf16 %v3333_v47, %v3331_v18 }
 0x990   : > { %v3336_v33 = vpack.c.bf16 %v3334_v8, %v3332_v34 }
 0x992   : > { %3471 = vmatprep.mubr.bf16.mxu0 %v3336_v33 }
 0x993   : > { %3472 = vmatmul.mubr.bf16.vlgmr.msra.gmra.mrb[64].mxu0 %v3335_v25 }
 0x994   : > { %6677 = vmatpush3.bf16.msra.mxu0 %v7303_v36  ;;  %6692 = vmatprep.mubr.msk.bf16.mxu0 %vm7621_vm0, %v7619_v0 }
 0x995   : > { %6678 = vmatprep.subr.bf16.mxu0 %v7619_v0 }
 0x998   : > { %6679 = vmatpush3.bf16.msra.mxu0 %v7304_v20 }
 0x999   : > { %6680 = vmatprep.subr.bf16.mxu0 %v7619_v0 }
 0x99c   : > { %6681 = vmatpush3.bf16.msra.mxu0 %v7305_v5 }
 0x99d   : > { %6682 = vmatprep.subr.bf16.mxu0 %v7619_v0 }
 0x9a0   : > { %6683 = vmatpush3.bf16.msra.mxu0 %v7306_v35 }
 0x9a1   : > { %6684 = vmatprep.subr.bf16.mxu0 %v7619_v0 }
 0x9a4   : > { %6685 = vmatpush3.bf16.msra.mxu0 %v7307_v26 }
 0x9a5   : > { %6686 = vmatprep.subr.bf16.mxu0 %v7619_v0 }
 0x9a8   : > { %6687 = vmatpush3.bf16.msra.mxu0 %v7308_v12 }
 0x9a9   : > { %6688 = vmatprep.subr.bf16.mxu0 %v7619_v0 }
 0x9ac   : > { %6689 = vmatpush3.bf16.msra.mxu0 %v7309_v45 }
 0x9ad   : > { %6690 = vmatprep.subr.bf16.mxu0 %v7619_v0 }
 0x9b0   : > { %6691 = vmatpush3.bf16.msra.mxu0 %v7310_v10 }
 0x9b1   : > { %6720 = vmatprep.subr.bf16.mxu0 %v7619_v0 }
 0xa66   : > { %v6334_v14 = vpop.f32.mrb[64].mxu0 }
 0xa67   : > { %v6335_v21 = vpop.f32.mrb[65].mxu0 }
 0xa68   : > { %v6336_v49 = vadd.f32 %v6335_v21, %v6334_v14  ;;  %v6337_v15 = vpop.f32.mrb[66].mxu0 }
 0xa69   : > { %v6338_v17 = vpop.f32.mrb[67].mxu0 }
 0xa6a   : > { %v3474_v44 = vadd.f32 %v6336_v49, %v6178_v11  ;;  %v6339_v51 = vadd.f32 %v6338_v17, %v6337_v15 }
 0xa6c   : > { %v3477_v41 = vadd.f32 %v6339_v51, %v6178_v11  ;;  %v3480_v53 = vadd.f32 %v3474_v44, %v8737_v28 }
 0xa6e   : > { %3482 = vadd.xlane.f32.xlu0 %v3480_v53  ;;  %v3481_v23 = vadd.f32 %v3477_v41, %v8739_v4 }
 0xa70   : > { %3484 = vadd.xlane.f32.xlu1 %v3481_v23 }
 0xafb   : > { %v3483_v59 = vpop.xlane.xlu0 %3482 }
 0xafc   : > { %v3486_v62 = vmul.f32 0.0078125, %v3483_v59 }
 0xafd   : > { %v3485_v6 = vpop.xlane.xlu1 %3484 }
 0xafe   : > { %v3488_v61 = vsub.f32 %v3480_v53, %v3486_v62  ;;  %v3487_v54 = vmul.f32 0.0078125, %v3485_v6 }
 0xb00   : > { %v3489_v58 = vsub.f32 %v3481_v23, %v3487_v54  ;;  %v3490_v9 = vmul.f32 %v3488_v61, %v3488_v61 }
 0xb02   : > { %3492 = vadd.xlane.f32.xlu0 %v3490_v9  ;;  %v3491_v63 = vmul.f32 %v3489_v58, %v3489_v58 }
 0xb04   : > { %3494 = vadd.xlane.f32.xlu1 %v3491_v63 }
 0xb8f   : > { %v3493_v60 = vpop.xlane.xlu0 %3492 }
 0xb90   : > { %v3496_v3 = vmul.f32 0.0078125, %v3493_v60 }
 0xb91   : > { %v3495_v7 = vpop.xlane.xlu1 %3494 }
 0xb92   : > { %v3498_v43 = vadd.f32 1e-05, %v3496_v3  ;;  %v3497_v42 = vmul.f32 0.0078125, %v3495_v7 }
 0xb94   : > { %7211 = vrsqrt.f32 %v3498_v43  ;;  %v3499_v28 = vadd.f32 1e-05, %v3497_v42 }
 0xb96   : > { %7213 = vrsqrt.f32 %v3499_v28 }
 0xb9e   : > { %v7212_v4 = vpop.eup %7211 }
 0xb9f   : > { %v3502_v2 = vmul.f32 %v7212_v4, %v3488_v61 }
 0xba0   : > { %v7214_v30 = vpop.eup %7213 }
 0xba1   : > { %v3503_v13 = vmul.f32 %v7214_v30, %v3489_v58  ;;  %v3510_v37 = vmul.f32 %v6195_v29, %v3502_v2 }
 0xba3   : > { %v3511_v16 = vmul.f32 %v6195_v29, %v3503_v13  ;;  %v8782_v57 = vadd.f32 %v6196_v56, %v3510_v37 }
 0xba5   : > { %v8784_v32 = vadd.f32 %v6196_v56, %v3511_v16 }
 0xba7   : > { %v3520_v27 = vpack.c.bf16 %v8784_v32, %v8782_v57 }
 0xba9   : > { %3554 = vmatmul.mubr.bf16.vlgmr.msra.gmra.mrb[80].mxu1 %v3520_v27  ;;  %6693 = vmatmul.mubr.bf16.vlgmr.msra.gmra.mrb[68].mxu0 %v3520_v27 }
 0xbaa   : > { %6698 = vmatprep.mubr.msk.bf16.mxu1 %vm7621_vm0, %v7619_v0  ;;  %6722 = vmatprep.mubr.msk.bf16.mxu0 %vm7621_vm0, %v7619_v0 }
 0xc7c   : > { %v3555_v48 = vpop.f32.mrb[80].mxu1  ;;  %v3598_v52 = vpop.f32.mrb[68].mxu0 }
 0xc7d   : > { %v3556_v55 = vadd.f32 %v3555_v48, %v8002_v38  ;;  %v3599_v46 = vadd.f32 %v3598_v52, %v8008_v40  ;;  %v3557_v31 = vpop.f32.mrb[81].mxu1  ;;  %v6694_v19 = vpop.f32.mrb[69].mxu0 }
 0xc7e   : > { %v3558_v22 = vadd.f32 %v3557_v31, %v8006_v39  ;;  %v3559_v18 = vpop.f32.mrb[82].mxu1  ;;  %v3601_v47 = vpop.f32.mrb[70].mxu0 }
 0xc7f   : > { %v3560_v34 = vadd.f32 %v3559_v18, %v8002_v38  ;;  %v3561_v8 = vpop.f32.mrb[83].mxu1  ;;  %v6695_v25 = vpop.f32.mrb[71].mxu0  ;;  %3606 = vrot.lane.b32.xlu0 %v3556_v55, %s7622_s18  ;;  %v8808_v38 = vpack.c.bf16 %v3556_v55, %v3556_v55 }
 0xc80   : > { %v3562_v33 = vadd.f32 %v3561_v8, %v8006_v39  ;;  %v7043_v36 = vpack.i.bf16 %v3558_v22, %v3556_v55  ;;  %v7048_v20 = vpack.i.bf16 %v3599_v46, %v3558_v22  ;;  %v3602_v39 = vadd.f32 %v3601_v47, %v8008_v40 }
 0xc81   : > { %v8842_v58 = vpack.c.bf16 %v3560_v34, %v3560_v34 }
 0xc82   : > { %7044 = vrot.lane.b32.xlu1 %v7043_v36, %s7624_s24  ;;  %v7053_v5 = vpack.i.bf16 %v3562_v33, %v3560_v34  ;;  %v7058_v35 = vpack.i.bf16 %v3602_v39, %v3562_v33 }
 0xc83   : > { %3619 = vrot.lane.b32.xlu0 %v3558_v22, %s7625_s4 }
 0xc86   : > { %3616 = vrot.lane.b32.xlu1 %v3558_v22, %s7623_s13 }
 0xc87   : > { %3629 = vrot.lane.b32.xlu0 %v3599_v46, %s7627_s14 }
 0xc8a   : > { %7049 = vrot.lane.b32.xlu1 %v7048_v20, %s9641_s22 }
 0xc8b   : > { %3636 = vrot.lane.b32.xlu0 %v3560_v34, %s7622_s18 }
 0xc8e   : > { %3632 = vrot.lane.b32.xlu1 %v3599_v46, %s9642_s11 }
 0xc8f   : > { %3646 = vrot.lane.b32.xlu0 %v3562_v33, %s7623_s13 }
 0xc92   : > { %7054 = vrot.lane.b32.xlu1 %v7053_v5, %s7624_s24 }
 0xc93   : > { %3649 = vrot.lane.b32.xlu0 %v3562_v33, %s7625_s4 }
 0xc96   : > { %3682 = vrot.lane.b32.xlu1 %v8808_v38, %s7623_s13 }
 0xc9a   : > { %7059 = vrot.lane.b32.xlu1 %v7058_v35, %s9641_s22 }
 0xc9e   : > { %3659 = vrot.lane.b32.xlu1 %v3602_v39, %s7627_s14 }
 0xcf1   : > { %v3607_v26 = vpop.permute.xlu0 %3606 }
 0xcf2   : > { %v8815_v12 = vpack.c.bf16 %v3607_v26, %v3607_v26 }
 0xcf4   : > { %v7045_v45 = vpop.permute.xlu1 %7044  ;;  %3731 = vrot.lane.b32.xlu0 %v8815_v12, %s7623_s13 }
 0xcf5   : > { %v7047_v10 = vunpack.i.h.bf16 %v7045_v45  ;;  %v7046_v14 = vunpack.i.l.bf16 %v7045_v45  ;;  %v3620_v11 = vpop.permute.xlu0 %3619 }
 0xcf6   : > { %v8827_v44 = vpack.c.bf16 %v3620_v11, %v3620_v11 }
 0xcf7   : > { %v3614_v40 = vsel %vm907_vm1, %v7046_v14, %v7047_v10 }
 0xcf8   : > { %v8820_v21 = vpack.c.bf16 %v3614_v40, %v3614_v40  ;;  %v3617_v49 = vpop.permute.xlu1 %3616  ;;  %3662 = vrot.lane.b32.xlu0 %v3602_v39, %s9642_s11 }
 0xcf9   : > { %v8823_v15 = vpack.c.bf16 %v3617_v49, %v3617_v49  ;;  %v3630_v17 = vpop.permute.xlu0 %3629 }
 0xcfa   : > { %3780 = vrot.lane.b32.xlu1 %v8820_v21, %s7623_s13  ;;  %v8834_v62 = vpack.c.bf16 %v3630_v17, %v3630_v17 }
 0xcfc   : > { %v7050_v51 = vpop.permute.xlu1 %7049  ;;  %3829 = vrot.lane.b32.xlu0 %v8823_v15, %s7623_s13 }
 0xcfd   : > { %v7052_v41 = vunpack.i.h.bf16 %v7050_v51  ;;  %v7051_v53 = vunpack.i.l.bf16 %v7050_v51  ;;  %v3637_v23 = vpop.permute.xlu0 %3636 }
 0xcfe   : > { %3878 = vrot.lane.b32.xlu1 %v8827_v44, %s7623_s13  ;;  %v8851_v43 = vpack.c.bf16 %v3637_v23, %v3637_v23 }
 0xcff   : > { %v3627_v59 = vsel %vm921_vm2, %v7051_v53, %v7052_v41 }
 0xd00   : > { %v8836_v6 = vpack.c.bf16 %v3627_v59, %v3627_v59  ;;  %v3633_v61 = vpop.permute.xlu1 %3632 }
 0xd01   : > { %v3647_v54 = vpop.permute.xlu0 %3646  ;;  %v8844_v9 = vpack.c.bf16 %v3633_v61, %v3633_v61 }
 0xd02   : > { %3927 = vrot.lane.b32.xlu0 %v8836_v6, %s7623_s13  ;;  %3976 = vrot.lane.b32.xlu1 %v8834_v62, %s7623_s13  ;;  %v8860_v2 = vpack.c.bf16 %v3647_v54, %v3647_v54 }
 0xd04   : > { %v7055_v63 = vpop.permute.xlu1 %7054 }
 0xd05   : > { %v7057_v60 = vunpack.i.h.bf16 %v7055_v63  ;;  %v7056_v3 = vunpack.i.l.bf16 %v7055_v63  ;;  %v3650_v4 = vpop.permute.xlu0 %3649 }
 0xd06   : > { %4025 = vrot.lane.b32.xlu0 %v8844_v9, %s7623_s13  ;;  %4074 = vrot.lane.b32.xlu1 %v8842_v58, %s7623_s13  ;;  %v8862_v30 = vpack.c.bf16 %v3650_v4, %v3650_v4 }
 0xd07   : > { %v3644_v7 = vsel %vm907_vm1, %v7056_v3, %v7057_v60 }
 0xd08   : > { %v8853_v42 = vpack.c.bf16 %v3644_v7, %v3644_v7  ;;  %v3683_v28 = vpop.permute.xlu1 %3682 }
 0xd09   : > { %v3688_v29 = vsel %vm921_vm2, %v3683_v28, 0 }
 0xd0a   : > { %4123 = vrot.lane.b32.xlu0 %v8851_v43, %s7623_s13  ;;  %4172 = vrot.lane.b32.xlu1 %v8853_v42, %s7623_s13 }
 0xd0b   : > { %6697 = vmatpush3.bf16.xpose.msra.mxu1 %v3688_v29 }
 0xd0c   : > { %v7060_v13 = vpop.permute.xlu1 %7059  ;;  %6702 = vmatprep.subr.bf16.mxu1 %v7619_v0 }
 0xd0d   : > { %v7062_v37 = vunpack.i.h.bf16 %v7060_v13  ;;  %v7061_v56 = vunpack.i.l.bf16 %v7060_v13 }
 0xd0e   : > { %4221 = vrot.lane.b32.xlu0 %v8860_v2, %s7623_s13  ;;  %4270 = vrot.lane.b32.xlu1 %v8862_v30, %s7623_s13 }
 0xd0f   : > { %v3657_v16 = vsel %vm921_vm2, %v7061_v56, %v7062_v37 }
 0xd10   : > { %v8870_v27 = vpack.c.bf16 %v3657_v16, %v3657_v16  ;;  %v3660_v48 = vpop.permute.xlu1 %3659 }
 0xd11   : > { %v8872_v52 = vpack.c.bf16 %v3660_v48, %v3660_v48 }
 0xd12   : > { %6699 = vmatmul.mubr.msk.bf16.vlgmr.msra.gmra.mrb[84].mxu1 %vm921_vm2, %v8808_v38  ;;  %4319 = vrot.lane.b32.xlu0 %v8870_v27, %s7623_s13 }
 0xd13   : > { %4368 = vrot.lane.b32.xlu1 %v8872_v52, %s7623_s13  ;;  %6704 = vmatprep.mubr.msk.bf16.mxu1 %vm7621_vm0, %v7619_v0 }
 0xd17   : > { %4721 = vrot.lane.b32.xlu1 %v8815_v12, %s7627_s14 }
 0xd1b   : > { %4817 = vrot.lane.b32.xlu1 %v8823_v15, %s7627_s14 }
 0xd1f   : > { %4913 = vrot.lane.b32.xlu1 %v8836_v6, %s7627_s14 }
 0xd23   : > { %5009 = vrot.lane.b32.xlu1 %v8844_v9, %s7627_s14 }
 0xd27   : > { %5105 = vrot.lane.b32.xlu1 %v8851_v43, %s7627_s14 }
 0xd66   : > { %v3732_v55 = vpop.permute.xlu0 %3731 }
 0xd67   : > { %v3737_v46 = vsel %vm921_vm2, %v3732_v55, 0 }
 0xd68   : > { %6703 = vmatpush3.bf16.xpose.msra.mxu1 %v3737_v46 }
 0xd69   : > { %6708 = vmatprep.subr.bf16.mxu1 %v7619_v0 }
 0xd6a   : > { %v3663_v31 = vpop.permute.xlu0 %3662 }
 0xd6b   : > { %v8894_v19 = vpack.c.bf16 %v3663_v31, %v3663_v31 }
 0xd6c   : > { %v3781_v22 = vpop.permute.xlu1 %3780 }
 0xd6d   : > { %4417 = vrot.lane.b32.xlu0 %v8894_v19, %s7623_s13  ;;  %v3786_v18 = vsel %vm921_vm2, %v3781_v22, 0 }
 0xd6e   : > { %v3830_v8 = vpop.permute.xlu0 %3829 }
 0xd6f   : > { %6705 = vmatmul.mubr.msk.bf16.vlgmr.msra.gmra.mrb[88].mxu1 %vm921_vm2, %v8815_v12  ;;  %v3835_v33 = vsel %vm921_vm2, %v3830_v8, 0 }
 0xd70   : > { %6709 = vmatpush3.bf16.xpose.msra.mxu1 %v3786_v18  ;;  %v3879_v47 = vpop.permute.xlu1 %3878  ;;  %6710 = vmatprep.mubr.msk.bf16.mxu1 %vm7621_vm0, %v7619_v0 }
 0xd71   : > { %v3884_v34 = vsel %vm921_vm2, %v3879_v47, 0  ;;  %4673 = vrot.lane.b32.xlu0 %v8808_v38, %s7627_s14  ;;  %6714 = vmatprep.subr.bf16.mxu1 %v7619_v0 }
 0xd72   : > { %6721 = vmatpush3.bf16.xpose.msra.mxu0 %v3884_v34 }
 0xd73   : > { %6732 = vmatprep.subr.bf16.mxu0 %v7619_v0 }
 0xd74   : > { %v3977_v25 = vpop.permute.xlu1 %3976  ;;  %v3928_v20 = vpop.permute.xlu0 %3927 }
 0xd75   : > { %4769 = vrot.lane.b32.xlu0 %v8820_v21, %s7627_s14  ;;  %v3982_v36 = vsel %vm921_vm2, %v3977_v25, 0  ;;  %v3933_v38 = vsel %vm921_vm2, %v3928_v20, 0 }
 0xd77   : > { %6711 = vmatmul.mubr.msk.bf16.vlgmr.msra.gmra.mrb[92].mxu1 %vm921_vm2, %v8820_v21 }
 0xd78   : > { %6715 = vmatpush3.bf16.xpose.msra.mxu1 %v3835_v33  ;;  %6716 = vmatprep.mubr.msk.bf16.mxu1 %vm7621_vm0, %v7619_v0  ;;  %v4075_v5 = vpop.permute.xlu1 %4074  ;;  %v4026_v35 = vpop.permute.xlu0 %4025 }
 0xd79   : > { %6723 = vmatmul.mubr.msk.bf16.vlgmr.msra.gmra.mrb[72].mxu0 %vm921_vm2, %v8827_v44  ;;  %4865 = vrot.lane.b32.xlu0 %v8827_v44, %s7627_s14  ;;  %v4080_v39 = vsel %vm921_vm2, %v4075_v5, 0  ;;  %v4031_v12 = vsel %vm921_vm2, %v4026_v35, 0 }
 0xd7a   : > { %6733 = vmatpush3.bf16.xpose.msra.mxu0 %v3982_v36  ;;  %6726 = vmatprep.subr.bf16.mxu1 %v7619_v0 }
 0xd7b   : > { %6734 = vmatprep.mubr.msk.bf16.mxu0 %vm7621_vm0, %v7619_v0  ;;  %6744 = vmatprep.subr.bf16.mxu0 %v7619_v0 }
 0xd7c   : > { %v4173_v26 = vpop.permute.xlu1 %4172  ;;  %v4124_v10 = vpop.permute.xlu0 %4123 }
 0xd7d   : > { %4961 = vrot.lane.b32.xlu0 %v8834_v62, %s7627_s14  ;;  %v4178_v45 = vsel %vm921_vm2, %v4173_v26, 0  ;;  %v4129_v11 = vsel %vm921_vm2, %v4124_v10, 0 }
 0xd7f   : > { %6717 = vmatmul.mubr.msk.bf16.vlgmr.msra.gmra.mrb[96].mxu1 %vm921_vm2, %v8823_v15 }
 0xd80   : > { %6727 = vmatpush3.bf16.xpose.msra.mxu1 %v3933_v38  ;;  %6728 = vmatprep.mubr.msk.bf16.mxu1 %vm7621_vm0, %v7619_v0  ;;  %v4271_v14 = vpop.permute.xlu1 %4270  ;;  %v4222_v21 = vpop.permute.xlu0 %4221 }
 0xd81   : > { %6735 = vmatmul.mubr.msk.bf16.vlgmr.msra.gmra.mrb[76].mxu0 %vm921_vm2, %v8834_v62  ;;  %5057 = vrot.lane.b32.xlu0 %v8842_v58, %s7627_s14  ;;  %v4276_v40 = vsel %vm921_vm2, %v4271_v14, 0  ;;  %v4227_v15 = vsel %vm921_vm2, %v4222_v21, 0 }
 0xd82   : > { %6745 = vmatpush3.bf16.xpose.msra.mxu0 %v4080_v39  ;;  %6738 = vmatprep.subr.bf16.mxu1 %v7619_v0 }
 0xd83   : > { %6746 = vmatprep.mubr.msk.bf16.mxu0 %vm7621_vm0, %v7619_v0  ;;  %6756 = vmatprep.subr.bf16.mxu0 %v7619_v0 }
 0xd84   : > { %v4320_v44 = vpop.permute.xlu0 %4319 }
 0xd85   : > { %v4369_v49 = vpop.permute.xlu1 %4368  ;;  %v4325_v51 = vsel %vm921_vm2, %v4320_v44, 0 }
 0xd86   : > { %v4374_v17 = vsel %vm921_vm2, %v4369_v49, 0 }
 0xd87   : > { %6729 = vmatmul.mubr.msk.bf16.vlgmr.msra.gmra.mrb[100].mxu1 %vm921_vm2, %v8836_v6 }
 0xd88   : > { %6739 = vmatpush3.bf16.xpose.msra.mxu1 %v4031_v12  ;;  %6740 = vmatprep.mubr.msk.bf16.mxu1 %vm7621_vm0, %v7619_v0 }
 0xd89   : > { %6747 = vmatmul.mubr.msk.bf16.vlgmr.msra.gmra.mrb[80].mxu0 %vm921_vm2, %v8842_v58  ;;  %6750 = vmatprep.subr.bf16.mxu1 %v7619_v0  ;;  %v4722_v62 = vpop.permute.xlu1 %4721 }
 0xd8a   : > { %6757 = vmatpush3.bf16.xpose.msra.mxu0 %v4178_v45  ;;  %6758 = vmatprep.mubr.msk.bf16.mxu0 %vm7621_vm0, %v7619_v0 }
 0xd8b   : > { %6768 = vmatprep.subr.bf16.mxu0 %v7619_v0 }
 0xd8d   : > { %v9024_v14 = vpop.permute.xlu1 %4817 }
 0xd8f   : > { %6741 = vmatmul.mubr.msk.bf16.vlgmr.msra.gmra.mrb[104].mxu1 %vm921_vm2, %v8844_v9  ;;  %v4727_v9 = vsel %vm1974_vm4, %v4722_v62, 0 }
 0xd90   : > { %6751 = vmatpush3.bf16.xpose.msra.mxu1 %v4129_v11  ;;  %6752 = vmatprep.mubr.msk.bf16.mxu1 %vm7621_vm0, %v7619_v0 }
 0xd91   : > { %6759 = vmatmul.mubr.msk.bf16.vlgmr.msra.gmra.mrb[84].mxu0 %vm921_vm2, %v8853_v42  ;;  %6762 = vmatprep.subr.bf16.mxu1 %v7619_v0  ;;  %v9034_v62 = vpop.permute.xlu1 %4913 }
 0xd92   : > { %6769 = vmatpush3.bf16.xpose.msra.mxu0 %v4276_v40  ;;  %6770 = vmatprep.mubr.msk.bf16.mxu0 %vm7621_vm0, %v7619_v0 }
 0xd93   : > { %6780 = vmatprep.subr.bf16.mxu0 %v7619_v0 }
 0xd97   : > { %6753 = vmatmul.mubr.msk.bf16.vlgmr.msra.gmra.mrb[108].mxu1 %vm921_vm2, %v8851_v43 }
 0xd98   : > { %6763 = vmatpush3.bf16.xpose.msra.mxu1 %v4227_v15  ;;  %6764 = vmatprep.mubr.msk.bf16.mxu1 %vm7621_vm0, %v7619_v0 }
 0xd99   : > { %6771 = vmatmul.mubr.msk.bf16.vlgmr.msra.gmra.mrb[88].mxu0 %vm921_vm2, %v8862_v30  ;;  %6774 = vmatprep.subr.bf16.mxu1 %v7619_v0 }
 0xd9a   : > { %6781 = vmatpush3.bf16.xpose.msra.mxu0 %v4374_v17  ;;  %6782 = vmatprep.mubr.msk.bf16.mxu0 %vm7621_vm0, %v7619_v0 }
 0xd9b   : > { %6792 = vmatprep.subr.bf16.mxu0 %v7619_v0 }
 0xd9f   : > { %6765 = vmatmul.mubr.msk.bf16.vlgmr.msra.gmra.mrb[112].mxu1 %vm921_vm2, %v8860_v2 }
 0xda0   : > { %6775 = vmatpush3.bf16.xpose.msra.mxu1 %v4325_v51  ;;  %6776 = vmatprep.mubr.msk.bf16.mxu1 %vm7621_vm0, %v7619_v0 }
 0xda1   : > { %6783 = vmatmul.mubr.msk.bf16.vlgmr.msra.gmra.mrb[92].mxu0 %vm921_vm2, %v8872_v52  ;;  %6786 = vmatprep.subr.bf16.mxu1 %v7619_v0 }
 0xda2   : > { %6794 = vmatprep.mubr.msk.bf16.mxu0 %vm7621_vm0, %v7619_v0 }
 0xda7   : > { %6777 = vmatmul.mubr.msk.bf16.vlgmr.msra.gmra.mrb[116].mxu1 %vm921_vm2, %v8870_v27 }
 0xda8   : > { %6788 = vmatprep.mubr.msk.bf16.mxu1 %vm7621_vm0, %v7619_v0 }
 0xddf   : > { %v4418_v41 = vpop.permute.xlu0 %4417 }
 0xde0   : > { %v4423_v53 = vsel %vm921_vm2, %v4418_v41, 0 }
 0xde1   : > { %6787 = vmatpush3.bf16.xpose.msra.mxu1 %v4423_v53 }
 0xde2   : > { %6798 = vmatprep.subr.bf16.mxu1 %v7619_v0 }
 0xde3   : > { %v4674_v23 = vpop.permute.xlu0 %4673 }
 0xde4   : > { %v4679_v59 = vsel %vm1974_vm4, %v4674_v23, 0 }
 0xde5   : > { %v3724_v6 = vpop.f32.mrb[84].mxu1  ;;  %6793 = vmatpush3.bf16.msra.mxu0 %v4679_v59 }
 0xde6   : > { %v8993_v61 = vmul.f32 0.25, %v3724_v6  ;;  %v6700_v54 = vpop.f32.mrb[85].mxu1  ;;  %6804 = vmatprep.subr.bf16.mxu0 %v7619_v0 }
 0xde7   : > { %v3727_v58 = vpop.f32.mrb[86].mxu1 }
 0xde8   : > { %v6701_v63 = vpop.f32.mrb[87].mxu1  ;;  %v4481_v60 = vsel %vm1776_vm3, %v8993_v61, -inf  ;;  %6789 = vmatmul.mubr.msk.bf16.vlgmr.msra.gmra.mrb[120].mxu1 %vm921_vm2, %v8894_v19 }
 0xde9   : > { %4482 = vmax.xlane.f32.xlu1 %v4481_v60  ;;  %6799 = vmatpush3.bf16.msra.mxu1 %v4727_v9 }
 0xdea   : > { %6800 = vmatprep.mubr.msk.bf16.mxu1 %vm7621_vm0, %v7619_v0  ;;  %6810 = vmatprep.subr.bf16.mxu1 %v7619_v0 }
 0xe42   : > { %v3773_v3 = vpop.f32.mrb[88].mxu1 }
 0xe43   : > { %v9004_v7 = vmul.f32 0.25, %v3773_v3  ;;  %v6706_v43 = vpop.f32.mrb[89].mxu1 }
 0xe44   : > { %v3776_v28 = vpop.f32.mrb[90].mxu1 }
 0xe45   : > { %v6707_v4 = vpop.f32.mrb[91].mxu1  ;;  %v4484_v29 = vsel %vm1776_vm3, %v9004_v7, -inf }
 0xe46   : > { %4485 = vmax.xlane.f32.xlu0 %v4484_v29 }
 0xe4a   : > { %v3822_v13 = vpop.f32.mrb[92].mxu1 }
 0xe4b   : > { %v6712_v37 = vpop.f32.mrb[93].mxu1  ;;  %v9010_v22 = vmul.f32 0.25, %v3822_v13 }
 0xe4c   : > { %v3825_v56 = vpop.f32.mrb[94].mxu1  ;;  %v3920_v16 = vpop.f32.mrb[72].mxu0 }
 0xe4d   : > { %v9008_v48 = vmul.f32 0.25, %v3920_v16  ;;  %v6713_v55 = vpop.f32.mrb[95].mxu1  ;;  %v6724_v46 = vpop.f32.mrb[73].mxu0  ;;  %v4487_v33 = vsel %vm1776_vm3, %v9010_v22, -inf }
 0xe4e   : > { %v3923_v31 = vpop.f32.mrb[74].mxu0  ;;  %v9044_v37 = vpop.permute.xlu1 %5009 }
 0xe4f   : > { %v6725_v18 = vpop.f32.mrb[75].mxu0  ;;  %v4493_v47 = vsel %vm1776_vm3, %v9008_v48, -inf }
 0xe50   : > { %4494 = vmax.xlane.f32.xlu0 %v4493_v47 }
 0xe52   : > { %v3871_v34 = vpop.f32.mrb[96].mxu1 }
 0xe53   : > { %v9014_v8 = vmul.f32 0.25, %v3871_v34  ;;  %v6718_v25 = vpop.f32.mrb[97].mxu1 }
 0xe54   : > { %v3874_v36 = vpop.f32.mrb[98].mxu1  ;;  %v4018_v20 = vpop.f32.mrb[76].mxu0  ;;  %4488 = vmax.xlane.f32.xlu0 %v4487_v33 }
 0xe55   : > { %v9018_v5 = vmul.f32 0.25, %v4018_v20  ;;  %v6719_v38 = vpop.f32.mrb[99].mxu1  ;;  %v6736_v39 = vpop.f32.mrb[77].mxu0  ;;  %v4490_v35 = vsel %vm1776_vm3, %v9014_v8, -inf }
 0xe56   : > { %4491 = vmax.xlane.f32.xlu1 %v4490_v35  ;;  %v4021_v26 = vpop.f32.mrb[78].mxu0  ;;  %v9054_v20 = vpop.permute.xlu1 %5105 }
 0xe57   : > { %v6737_v12 = vpop.f32.mrb[79].mxu0  ;;  %v4499_v45 = vsel %vm1776_vm3, %v9018_v5, -inf }
 0xe58   : > { %4500 = vmax.xlane.f32.xlu0 %v4499_v45 }
 0xe5a   : > { %v3969_v10 = vpop.f32.mrb[100].mxu1 }
 0xe5b   : > { %v9026_v11 = vmul.f32 0.25, %v3969_v10  ;;  %v6730_v40 = vpop.f32.mrb[101].mxu1 }
 0xe5c   : > { %v3972_v21 = vpop.f32.mrb[102].mxu1  ;;  %v4116_v49 = vpop.f32.mrb[80].mxu0 }
 0xe5d   : > { %v9028_v15 = vmul.f32 0.25, %v4116_v49  ;;  %v6731_v17 = vpop.f32.mrb[103].mxu1  ;;  %v6748_v44 = vpop.f32.mrb[81].mxu0  ;;  %v4496_v51 = vsel %vm1776_vm3, %v9026_v11, -inf }
 0xe5e   : > { %4497 = vmax.xlane.f32.xlu1 %v4496_v51  ;;  %v4119_v41 = vpop.f32.mrb[82].mxu0 }
 0xe5f   : > { %v6749_v53 = vpop.f32.mrb[83].mxu0  ;;  %v4505_v23 = vsel %vm1776_vm3, %v9028_v15, -inf }
 0xe60   : > { %4506 = vmax.xlane.f32.xlu0 %v4505_v23 }
 0xe62   : > { %v4067_v59 = vpop.f32.mrb[104].mxu1 }
 0xe63   : > { %v9036_v6 = vmul.f32 0.25, %v4067_v59  ;;  %v6742_v54 = vpop.f32.mrb[105].mxu1 }
 0xe64   : > { %v4070_v58 = vpop.f32.mrb[106].mxu1  ;;  %v4214_v9 = vpop.f32.mrb[84].mxu0 }
 0xe65   : > { %v9038_v63 = vmul.f32 0.25, %v4214_v9  ;;  %v6743_v60 = vpop.f32.mrb[107].mxu1  ;;  %v6760_v3 = vpop.f32.mrb[85].mxu0  ;;  %v4502_v43 = vsel %vm1776_vm3, %v9036_v6, -inf }
 0xe66   : > { %4503 = vmax.xlane.f32.xlu1 %v4502_v43  ;;  %v4217_v28 = vpop.f32.mrb[86].mxu0 }
 0xe67   : > { %v6761_v4 = vpop.f32.mrb[87].mxu0  ;;  %v4511_v29 = vsel %vm1776_vm3, %v9038_v63, -inf }
 0xe68   : > { %4512 = vmax.xlane.f32.xlu0 %v4511_v29  ;;  %v9079_v29 = vpop.permute.xlu0 %4769 }
 0xe6a   : > { %v4165_v13 = vpop.f32.mrb[108].mxu1 }
 0xe6b   : > { %v9046_v56 = vmul.f32 0.25, %v4165_v13  ;;  %v6754_v16 = vpop.f32.mrb[109].mxu1 }
 0xe6c   : > { %v4168_v55 = vpop.f32.mrb[110].mxu1  ;;  %v4312_v46 = vpop.f32.mrb[88].mxu0 }
 0xe6d   : > { %v9048_v31 = vmul.f32 0.25, %v4312_v46  ;;  %v6755_v18 = vpop.f32.mrb[111].mxu1  ;;  %v6772_v47 = vpop.f32.mrb[89].mxu0  ;;  %v4508_v34 = vsel %vm1776_vm3, %v9046_v56, -inf }
 0xe6e   : > { %4509 = vmax.xlane.f32.xlu1 %v4508_v34  ;;  %v4315_v25 = vpop.f32.mrb[90].mxu0  ;;  %v9083_v55 = vpop.permute.xlu0 %4865 }
 0xe6f   : > { %v6773_v33 = vpop.f32.mrb[91].mxu0  ;;  %v4517_v36 = vsel %vm1776_vm3, %v9048_v31, -inf }
 0xe70   : > { %4518 = vmax.xlane.f32.xlu0 %v4517_v36 }
 0xe72   : > { %v4263_v38 = vpop.f32.mrb[112].mxu1 }
 0xe73   : > { %v9056_v39 = vmul.f32 0.25, %v4263_v38  ;;  %v6766_v35 = vpop.f32.mrb[113].mxu1 }
 0xe74   : > { %v4266_v26 = vpop.f32.mrb[114].mxu1  ;;  %v4410_v12 = vpop.f32.mrb[92].mxu0 }
 0xe75   : > { %v9058_v45 = vmul.f32 0.25, %v4410_v12  ;;  %v6767_v10 = vpop.f32.mrb[115].mxu1  ;;  %v6784_v40 = vpop.f32.mrb[93].mxu0  ;;  %v4514_v21 = vsel %vm1776_vm3, %v9056_v39, -inf }
 0xe76   : > { %v4483_v49 = vpop.xlane.xlu1 %4482  ;;  %4515 = vmax.xlane.f32.xlu1 %v4514_v21  ;;  %v4413_v17 = vpop.f32.mrb[94].mxu0 }
 0xe77   : > { %v4529_v44 = vsub.f32 %v8993_v61, %v4483_v49  ;;  %v6785_v51 = vpop.f32.mrb[95].mxu0  ;;  %v4523_v41 = vsel %vm1776_vm3, %v9058_v45, -inf }
 0xe78   : > { %4524 = vmax.xlane.f32.xlu0 %v4523_v41 }
 0xe79   : > { %v4545_v53 = vmul.f32 1.442695, %v4529_v44 }
 0xe7a   : > { %v4361_v23 = vpop.f32.mrb[116].mxu1 }
 0xe7b   : > { %7215 = vpow2.f32 %v4545_v53  ;;  %v6778_v59 = vpop.f32.mrb[117].mxu1  ;;  %v9073_v61 = vmul.f32 0.25, %v4361_v23 }
 0xe7c   : > { %v4364_v54 = vpop.f32.mrb[118].mxu1 }
 0xe7d   : > { %v6779_v58 = vpop.f32.mrb[119].mxu1  ;;  %v4520_v3 = vsel %vm1776_vm3, %v9073_v61, -inf }
 0xe85   : > { %v9065_v9 = vpop.eup %7215 }
 0xe86   : > { %v4577_v60 = vsel %vm1776_vm3, %v9065_v9, 0.0 }
 0xe87   : > { %4578 = vadd.xlane.f32.xlu0 %v4577_v60  ;;  %5153 = vrot.lane.b32.xlu1 %v8853_v42, %s7627_s14 }
 0xe9d   : > { %5201 = vrot.lane.b32.xlu0 %v8860_v2, %s7627_s14  ;;  %v9085_v2 = vpop.permute.xlu0 %4961 }
 0xea1   : > { %v9087_v46 = vpop.permute.xlu0 %5057 }
 0xeab   : > { %4521 = vmax.xlane.f32.xlu1 %v4520_v3 }
 0xebb   : > { %v4459_v43 = vpop.f32.mrb[120].mxu1 }
 0xebc   : > { %v9077_v28 = vmul.f32 0.25, %v4459_v43  ;;  %v6790_v4 = vpop.f32.mrb[121].mxu1 }
 0xebd   : > { %v4462_v13 = vpop.f32.mrb[122].mxu1 }
 0xebe   : > { %v6791_v16 = vpop.f32.mrb[123].mxu1  ;;  %v4526_v42 = vsel %vm1776_vm3, %v9077_v28, -inf }
 0xebf   : > { %4527 = vmax.xlane.f32.xlu1 %v4526_v42 }
 0xed3   : > { %v4486_v18 = vpop.xlane.xlu0 %4485 }
 0xed4   : > { %v4530_v47 = vsub.f32 %v9004_v7, %v4486_v18 }
 0xed6   : > { %v4547_v34 = vmul.f32 1.442695, %v4530_v47 }
 0xed8   : > { %7217 = vpow2.f32 %v4547_v34 }
 0xedd   : > { %v4495_v25 = vpop.xlane.xlu0 %4494 }
 0xede   : > { %v4533_v33 = vsub.f32 %v9008_v48, %v4495_v25 }
 0xee0   : > { %v4553_v36 = vmul.f32 1.442695, %v4533_v33 }
 0xee1   : > { %v4489_v38 = vpop.xlane.xlu0 %4488 }
 0xee2   : > { %v9091_v35 = vpop.eup %7217  ;;  %7219 = vpow2.f32 %v4553_v36  ;;  %v4531_v26 = vsub.f32 %v9010_v22, %v4489_v38 }
 0xee3   : > { %v4492_v12 = vpop.xlane.xlu1 %4491  ;;  %v4580_v10 = vsel %vm1776_vm3, %v9091_v35, 0.0 }
 0xee4   : > { %v4549_v40 = vmul.f32 1.442695, %v4531_v26  ;;  %v4532_v21 = vsub.f32 %v9014_v8, %v4492_v12  ;;  %4581 = vadd.xlane.f32.xlu1 %v4580_v10 }
 0xee5   : > { %v4501_v7 = vpop.xlane.xlu0 %4500 }
 0xee6   : > { %7221 = vpow2.f32 %v4549_v40  ;;  %v4551_v49 = vmul.f32 1.442695, %v4532_v21  ;;  %v4535_v48 = vsub.f32 %v9018_v5, %v4501_v7 }
 0xee8   : > { %7223 = vpow2.f32 %v4551_v49  ;;  %v4557_v17 = vmul.f32 1.442695, %v4535_v48 }
 0xeea   : > { %7225 = vpow2.f32 %v4557_v17 }
 0xeeb   : > { %v4498_v44 = vpop.xlane.xlu1 %4497 }
 0xeec   : > { %v9098_v51 = vpop.eup %7219  ;;  %v4534_v22 = vsub.f32 %v9026_v11, %v4498_v44 }
 0xeed   : > { %v4507_v41 = vpop.xlane.xlu0 %4506  ;;  %v4589_v53 = vsel %vm1776_vm3, %v9098_v51, 0.0 }
 0xeee   : > { %v4537_v8 = vsub.f32 %v9028_v15, %v4507_v41  ;;  %4590 = vadd.xlane.f32.xlu0 %v4589_v53  ;;  %v4555_v59 = vmul.f32 1.442695, %v4534_v22 }
 0xef0   : > { %v9104_v23 = vpop.eup %7221  ;;  %v4561_v54 = vmul.f32 1.442695, %v4537_v8  ;;  %v4775_v8 = vsel %vm1974_vm4, %v9079_v29, 0 }
 0xef1   : > { %v4583_v5 = vsel %vm1776_vm3, %v9104_v23, 0.0 }
 0xef2   : > { %v9108_v58 = vpop.eup %7223  ;;  %7227 = vpow2.f32 %v4561_v54  ;;  %4584 = vadd.xlane.f32.xlu0 %v4583_v5 }
 0xef3   : > { %v4504_v60 = vpop.xlane.xlu1 %4503  ;;  %v4586_v11 = vsel %vm1776_vm3, %v9108_v58, 0.0  ;;  %7229 = vpow2.f32 %v4555_v59 }
 0xef4   : > { %v9112_v3 = vpop.eup %7225  ;;  %v4536_v15 = vsub.f32 %v9036_v6, %v4504_v60  ;;  %4587 = vadd.xlane.f32.xlu1 %v4586_v11 }
 0xef5   : > { %v4513_v43 = vpop.xlane.xlu0 %4512  ;;  %v4595_v4 = vsel %vm1776_vm3, %v9112_v3, 0.0 }
 0xef6   : > { %v4539_v13 = vsub.f32 %v9038_v63, %v4513_v43  ;;  %4596 = vadd.xlane.f32.xlu0 %v4595_v4  ;;  %v4559_v16 = vmul.f32 1.442695, %v4536_v15 }
 0xef8   : > { %v4565_v42 = vmul.f32 1.442695, %v4539_v13 }
 0xefa   : > { %7231 = vpow2.f32 %v4565_v42 }
 0xefb   : > { %v4510_v18 = vpop.xlane.xlu1 %4509  ;;  %7233 = vpow2.f32 %v4559_v16 }
 0xefc   : > { %v9118_v47 = vpop.eup %7227  ;;  %v4538_v34 = vsub.f32 %v9046_v56, %v4510_v18 }
 0xefd   : > { %v4601_v6 = vsel %vm1776_vm3, %v9118_v47, 0.0  ;;  %v9123_v25 = vpop.eup %7229  ;;  %v4519_v49 = vpop.xlane.xlu0 %4518 }
 0xefe   : > { %v4563_v33 = vmul.f32 1.442695, %v4538_v34  ;;  %4602 = vadd.xlane.f32.xlu1 %v4601_v6  ;;  %v4592_v63 = vsel %vm1776_vm3, %v9123_v25, 0.0  ;;  %v4541_v59 = vsub.f32 %v9048_v31, %v4519_v49 }
 0xf00   : > { %7235 = vpow2.f32 %v4563_v33 }
 0xf02   : > { %4593 = vadd.xlane.f32.xlu1 %v4592_v63 }
 0xf03   : > { %v4516_v36 = vpop.xlane.xlu1 %4515 }
 0xf04   : > { %v9127_v38 = vpop.eup %7231  ;;  %v4540_v26 = vsub.f32 %v9056_v39, %v4516_v36 }
 0xf05   : > { %v4607_v56 = vsel %vm1776_vm3, %v9127_v38, 0.0  ;;  %v9132_v12 = vpop.eup %7233  ;;  %v4525_v39 = vpop.xlane.xlu0 %4524 }
 0xf06   : > { %v4567_v10 = vmul.f32 1.442695, %v4540_v26  ;;  %4608 = vadd.xlane.f32.xlu1 %v4607_v56  ;;  %v4598_v40 = vsel %vm1776_vm3, %v9132_v12, 0.0 }
 0xf07   : > { %v9157_v5 = vpop.permute.xlu1 %5153 }
 0xf08   : > { %7237 = vpow2.f32 %v4567_v10 }
 0xf0a   : > { %v9136_v21 = vpop.eup %7235  ;;  %4599 = vadd.xlane.f32.xlu1 %v4598_v40 }
 0xf0b   : > { %v4604_v7 = vsel %vm1776_vm3, %v9136_v21, 0.0 }
 0xf0c   : > { %4605 = vadd.xlane.f32.xlu0 %v4604_v7 }
 0xf12   : > { %v9140_v48 = vpop.eup %7237 }
 0xf13   : > { %v4610_v17 = vsel %vm1776_vm3, %v9140_v48, 0.0 }
 0xf14   : > { %v4579_v44 = vpop.xlane.xlu0 %4578  ;;  %4611 = vadd.xlane.f32.xlu0 %v4610_v17  ;;  %v4871_v17 = vsel %vm1974_vm4, %v9083_v55, 0 }
 0xf15   : > { %7239 = vrcp.f32 %v4579_v44 }
 0xf18   : > { %v9181_v6 = vpop.permute.xlu0 %5201 }
 0xf1b   : > { %5249 = vrot.lane.b32.xlu1 %v8862_v30, %s7627_s14  ;;  %v4569_v30 = vmul.f32 1.442695, %v4541_v59 }
 0xf1d   : > { %7241 = vpow2.f32 %v4569_v30 }
 0xf1f   : > { %v7240_v22 = vpop.eup %7239 }
 0xf20   : > { %v4641_v41 = vmul.f32 %v7240_v22, %v9065_v9  ;;  %v4543_v9 = vsub.f32 %v9058_v45, %v4525_v39 }
 0xf22   : > { %v4657_v53 = vpack.c.bf16 %v4641_v41, %v4641_v41  ;;  %v4573_v54 = vmul.f32 1.442695, %v4543_v9 }
 0xf24   : > { %6795 = vmatmul.mubr.msk.bf16.vlgmr.msra.gmra.mrb[96].mxu0 %vm1776_vm3, %v4657_v53  ;;  %7243 = vpow2.f32 %v4573_v54 }
 0xf25   : > { %6805 = vmatpush3.bf16.msra.mxu0 %v4775_v8  ;;  %6806 = vmatprep.mubr.msk.bf16.mxu0 %vm7621_vm0, %v7619_v0  ;;  %v4967_v8 = vsel %vm1974_vm4, %v9085_v2, 0 }
 0xf26   : > { %6816 = vmatprep.subr.bf16.mxu0 %v7619_v0 }
 0xf27   : > { %v9160_v11 = vpop.eup %7241 }
 0xf28   : > { %v4613_v31 = vsel %vm1776_vm3, %v9160_v11, 0.0 }
 0xf2a   : > { %5297 = vrot.lane.b32.xlu0 %v8870_v27, %s7627_s14 }
 0xf2e   : > { %v9164_v43 = vpop.eup %7243 }
 0xf2f   : > { %v4619_v27 = vsel %vm1776_vm3, %v9164_v43, 0.0 }
 0xf38   : > { %v4522_v29 = vpop.xlane.xlu1 %4521 }
 0xf39   : > { %v4542_v60 = vsub.f32 %v9073_v61, %v4522_v29 }
 0xf3b   : > { %v4571_v15 = vmul.f32 1.442695, %v4542_v60  ;;  %v5015_v60 = vsel %vm1974_vm4, %v9044_v37, 0 }
 0xf3d   : > { %7245 = vpow2.f32 %v4571_v15  ;;  %v5063_v15 = vsel %vm1974_vm4, %v9087_v46, 0 }
 0xf3f   : > { %4614 = vadd.xlane.f32.xlu1 %v4613_v31 }
 0xf43   : > { %4620 = vadd.xlane.f32.xlu1 %v4619_v27 }
 0xf47   : > { %v9168_v45 = vpop.eup %7245 }
 0xf48   : > { %v4616_v4 = vsel %vm1776_vm3, %v9168_v45, 0.0 }
 0xf49   : > { %4617 = vadd.xlane.f32.xlu0 %v4616_v4 }
 0xf4c   : > { %v4528_v61 = vpop.xlane.xlu1 %4527 }
 0xf4d   : > { %v4544_v13 = vsub.f32 %v9077_v28, %v4528_v61 }
 0xf4f   : > { %v4575_v16 = vmul.f32 1.442695, %v4544_v13  ;;  %v5159_v13 = vsel %vm1974_vm4, %v9157_v5, 0 }
 0xf51   : > { %7247 = vpow2.f32 %v4575_v16 }
 0xf54   : > { %5345 = vrot.lane.b32.xlu1 %v8872_v52, %s7627_s14  ;;  %v4823_v52 = vsel %vm1974_vm4, %v9024_v14, 0 }
 0xf5b   : > { %v9175_v42 = vpop.eup %7247 }
 0xf5c   : > { %v4622_v18 = vsel %vm1776_vm3, %v9175_v42, 0.0 }
 0xf5d   : > { %4623 = vadd.xlane.f32.xlu0 %v4622_v18 }
 0xf71   : > { %v4582_v34 = vpop.xlane.xlu1 %4581 }
 0xf72   : > { %7249 = vrcp.f32 %v4582_v34 }
 0xf73   : > { %5393 = vrot.lane.b32.xlu0 %v8894_v19, %s7627_s14 }
 0xf7b   : > { %v4591_v33 = vpop.xlane.xlu0 %4590 }
 0xf7c   : > { %v7250_v28 = vpop.eup %7249 }
 0xf7d   : > { %v4642_v63 = vmul.f32 %v7250_v28, %v9091_v35 }
 0xf7f   : > { %v4585_v36 = vpop.xlane.xlu0 %4584  ;;  %v4658_v26 = vpack.c.bf16 %v4642_v63, %v4642_v63 }
 0xf80   : > { %7251 = vrcp.f32 %v4585_v36 }
 0xf81   : > { %6801 = vmatmul.mubr.msk.bf16.vlgmr.msra.gmra.mrb[124].mxu1 %vm1776_vm3, %v4658_v26  ;;  %v4588_v56 = vpop.xlane.xlu1 %4587 }
 0xf82   : > { %6811 = vmatpush3.bf16.msra.mxu1 %v4823_v52  ;;  %7253 = vrcp.f32 %v4588_v56  ;;  %6812 = vmatprep.mubr.msk.bf16.mxu1 %vm7621_vm0, %v7619_v0 }
 0xf83   : > { %6822 = vmatprep.subr.bf16.mxu1 %v7619_v0  ;;  %7255 = vrcp.f32 %v4591_v33  ;;  %v4597_v19 = vpop.xlane.xlu0 %4596  ;;  %v5207_v33 = vsel %vm1974_vm4, %v9181_v6, 0 }
 0xf84   : > { %7257 = vrcp.f32 %v4597_v19 }
 0xf8a   : > { %v7252_v10 = vpop.eup %7251 }
 0xf8b   : > { %v4643_v35 = vmul.f32 %v7252_v10, %v9104_v23  ;;  %v4603_v40 = vpop.xlane.xlu1 %4602  ;;  %v4919_v23 = vsel %vm1974_vm4, %v9034_v62, 0 }
 0xf8c   : > { %v7254_v7 = vpop.eup %7253 }
 0xf8d   : > { %v4644_v14 = vmul.f32 %v7254_v7, %v9108_v58  ;;  %v4659_v49 = vpack.c.bf16 %v4643_v35, %v4643_v35  ;;  %v7256_v39 = vpop.eup %7255 }
 0xf8e   : > { %v4645_v41 = vmul.f32 %v7256_v39, %v9098_v51  ;;  %v7258_v53 = vpop.eup %7257 }
 0xf8f   : > { %v4594_v44 = vpop.xlane.xlu1 %4593  ;;  %6807 = vmatmul.mubr.msk.bf16.vlgmr.msra.gmra.mrb[100].mxu0 %vm1776_vm3, %v4659_v49  ;;  %v4660_v22 = vpack.c.bf16 %v4644_v14, %v4644_v14  ;;  %v4647_v51 = vmul.f32 %v7258_v53, %v9112_v3  ;;  %v7316_v53 = vld [vmem:[#allocation8 + $0x20] sm:$0xff]  }
 0xf90   : > { %7259 = vrcp.f32 %v4594_v44  ;;  %6817 = vmatpush3.bf16.msra.mxu0 %v4871_v17  ;;  %6818 = vmatprep.mubr.msk.bf16.mxu0 %vm7621_vm0, %v7619_v0  ;;  %v4661_v58 = vpack.c.bf16 %v4645_v41, %v4645_v41  ;;  %v7311_v17 = vld [vmem:[#allocation8] sm:$0xff]   ;;  %v7314_v41 = vld [vmem:[#allocation8 + $0x18] sm:$0xff]  }
 0xf91   : > { %6813 = vmatmul.mubr.msk.bf16.vlgmr.msra.gmra.mrb[128].mxu1 %vm1776_vm3, %v4660_v22  ;;  %6828 = vmatprep.subr.bf16.mxu0 %v7619_v0  ;;  %7261 = vrcp.f32 %v4603_v40  ;;  %v4663_v2 = vpack.c.bf16 %v4647_v51, %v4647_v51 }
 0xf92   : > { %6823 = vmatpush3.bf16.msra.mxu1 %v4919_v23  ;;  %6824 = vmatprep.mubr.msk.bf16.mxu1 %vm7621_vm0, %v7619_v0 }
 0xf93   : > { %v4609_v55 = vpop.xlane.xlu1 %4608  ;;  %6834 = vmatprep.subr.bf16.mxu1 %v7619_v0 }
 0xf97   : > { %v4600_v62 = vpop.xlane.xlu1 %4599  ;;  %6819 = vmatmul.mubr.msk.bf16.vlgmr.msra.gmra.mrb[104].mxu0 %vm1776_vm3, %v4661_v58 }
 0xf98   : > { %7263 = vrcp.f32 %v4600_v62  ;;  %6829 = vmatpush3.bf16.msra.mxu0 %v4967_v8  ;;  %6830 = vmatprep.mubr.msk.bf16.mxu0 %vm7621_vm0, %v7619_v0 }
 0xf99   : > { %v4606_v59 = vpop.xlane.xlu0 %4605  ;;  %6840 = vmatprep.subr.bf16.mxu0 %v7619_v0  ;;  %7265 = vrcp.f32 %v4609_v55  ;;  %v7315_v55 = vld [vmem:[#allocation10 + $0x4] ss:$8 sps:$4 sm:$0xff]  }
 0xf9a   : > { %v7260_v30 = vpop.eup %7259  ;;  %7267 = vrcp.f32 %v4606_v59 }
 0xf9b   : > { %v4646_v9 = vmul.f32 %v7260_v30, %v9123_v25  ;;  %v7262_v29 = vpop.eup %7261 }
 0xf9c   : > { %v4649_v3 = vmul.f32 %v7262_v29, %v9118_v47  ;;  %v5111_v47 = vsel %vm1974_vm4, %v9054_v20, 0  ;;  %v5250_v20 = vpop.permute.xlu1 %5249  ;;  %v7319_v29 = vld [vmem:[#allocation10 + $0x14] ss:$8 sps:$4 sm:$0xff]  }
 0xf9d   : > { %v4662_v54 = vpack.c.bf16 %v4646_v9, %v4646_v9  ;;  %v7317_v9 = vld [vmem:[#allocation8 + $0x28] sm:$0xff]  }
 0xf9e   : > { %v4665_v4 = vpack.c.bf16 %v4649_v3, %v4649_v3  ;;  %v7323_v3 = vld [vmem:[#allocation8 + $0x38] sm:$0xff]  }
 0xf9f   : > { %6825 = vmatmul.mubr.msk.bf16.vlgmr.msra.gmra.mrb[132].mxu1 %vm1776_vm3, %v4662_v54  ;;  %6831 = vmatmul.mubr.msk.bf16.vlgmr.msra.gmra.mrb[108].mxu0 %vm1776_vm3, %v4663_v2  ;;  %v7318_v2 = vld [vmem:[#allocation10] ss:$8 sps:$4 sm:$0xff]  }
 0xfa0   : > { %6835 = vmatpush3.bf16.msra.mxu1 %v5015_v60  ;;  %6841 = vmatpush3.bf16.msra.mxu0 %v5063_v15  ;;  %v7321_v60 = vld [vmem:[#allocation10 + $0x10] ss:$8 sps:$4 sm:$0xff]   ;;  %v7322_v15 = vld [vmem:[#allocation10 + $0x24] ss:$8 sps:$4 sm:$0xff]  }
 0xfa1   : > { %v4612_v25 = vpop.xlane.xlu0 %4611  ;;  %6836 = vmatprep.mubr.msk.bf16.mxu1 %vm7621_vm0, %v7619_v0  ;;  %6842 = vmatprep.mubr.msk.bf16.mxu0 %vm7621_vm0, %v7619_v0 }
 0xfa2   : > { %v7264_v31 = vpop.eup %7263  ;;  %6846 = vmatprep.subr.bf16.mxu1 %v7619_v0  ;;  %6852 = vmatprep.subr.bf16.mxu0 %v7619_v0  ;;  %7269 = vrcp.f32 %v4612_v25  ;;  %v7324_v25 = vld [vmem:[#allocation11 + $0x40] sm:$0xff]  }
 0xfa3   : > { %v4648_v37 = vmul.f32 %v7264_v31, %v9132_v12  ;;  %v7266_v46 = vpop.eup %7265  ;;  %v7325_v31 = vld [vmem:[#allocation10 + $0x20] ss:$8 sps:$4 sm:$0xff]  }
 0xfa4   : > { %v7268_v61 = vpop.eup %7267  ;;  %v4651_v16 = vmul.f32 %v7266_v46, %v9127_v38  ;;  %v5255_v38 = vsel %vm1974_vm4, %v5250_v20, 0  ;;  %v7327_v46 = vld [vmem:[#allocation10 + $0x30] ss:$8 sps:$4 sm:$0xff]  }
 0xfa5   : > { %v4664_v27 = vpack.c.bf16 %v4648_v37, %v4648_v37  ;;  %v4650_v12 = vmul.f32 %v7268_v61, %v9136_v21  ;;  %v5298_v6 = vpop.permute.xlu0 %5297  ;;  %v7326_v37 = vld [vmem:[#allocation10 + $0x34] ss:$8 sps:$4 sm:$0xff]   ;;  %v7332_v61 = vld [vmem:[#allocation10 + $0x64] ss:$8 sps:$4 sm:$0xff]  }
 0xfa6   : > { %v4667_v18 = vpack.c.bf16 %v4651_v16, %v4651_v16  ;;  %v5303_v63 = vsel %vm1974_vm4, %v5298_v6, 0  ;;  %v7335_v16 = vld [vmem:[#allocation10 + $0x70] ss:$8 sps:$4 sm:$0xff]  }
 0xfa7   : > { %6837 = vmatmul.mubr.msk.bf16.vlgmr.msra.gmra.mrb[136].mxu1 %vm1776_vm3, %v4664_v27  ;;  %6843 = vmatmul.mubr.msk.bf16.vlgmr.msra.gmra.mrb[112].mxu0 %vm1776_vm3, %v4665_v4  ;;  %v4666_v5 = vpack.c.bf16 %v4650_v12, %v4650_v12  ;;  %v7329_v27 = vld [vmem:[#allocation10 + $0x40] ss:$8 sps:$4 sm:$0xff]   ;;  %v7330_v4 = vld [vmem:[#allocation10 + $0x54] ss:$8 sps:$4 sm:$0xff]  }
 0xfa8   : > { %6847 = vmatpush3.bf16.msra.mxu1 %v5111_v47  ;;  %6853 = vmatpush3.bf16.msra.mxu0 %v5159_v13  ;;  %v7333_v47 = vld [vmem:[#allocation10 + $0x60] ss:$8 sps:$4 sm:$0xff]   ;;  %v7334_v13 = vld [vmem:[#allocation10 + $0x74] ss:$8 sps:$4 sm:$0xff]  }
 0xfa9   : > { %6848 = vmatprep.mubr.msk.bf16.mxu1 %vm7621_vm0, %v7619_v0  ;;  %6854 = vmatprep.mubr.msk.bf16.mxu0 %vm7621_vm0, %v7619_v0 }
 0xfaa   : > { %6858 = vmatprep.subr.bf16.mxu1 %v7619_v0  ;;  %6864 = vmatprep.subr.bf16.mxu0 %v7619_v0 }
 0xfac   : > { %v7270_v34 = vpop.eup %7269 }
 0xfad   : > { %v4652_v21 = vmul.f32 %v7270_v34, %v9140_v48 }
 0xfaf   : > { %6849 = vmatmul.mubr.msk.bf16.vlgmr.msra.gmra.mrb[140].mxu1 %vm1776_vm3, %v4666_v5  ;;  %6855 = vmatmul.mubr.msk.bf16.vlgmr.msra.gmra.mrb[116].mxu0 %vm1776_vm3, %v4667_v18  ;;  %v4668_v28 = vpack.c.bf16 %v4652_v21, %v4652_v21 }
 0xfb0   : > { %6859 = vmatpush3.bf16.msra.mxu1 %v5207_v33  ;;  %6865 = vmatpush3.bf16.msra.mxu0 %v5255_v38 }
 0xfb1   : > { %6860 = vmatprep.mubr.msk.bf16.mxu1 %vm7621_vm0, %v7619_v0  ;;  %6870 = vmatprep.subr.bf16.mxu1 %v7619_v0 }
 0xfb2   : > { %6866 = vmatprep.mubr.msk.bf16.mxu0 %vm7621_vm0, %v7619_v0  ;;  %6876 = vmatprep.subr.bf16.mxu0 %v7619_v0 }
 0xfb7   : > { %6861 = vmatmul.mubr.msk.bf16.vlgmr.msra.gmra.mrb[144].mxu1 %vm1776_vm3, %v4668_v28 }
 0xfb8   : > { %6871 = vmatpush3.bf16.msra.mxu1 %v5303_v63  ;;  %6872 = vmatprep.mubr.msk.bf16.mxu1 %vm7621_vm0, %v7619_v0 }
 0xfb9   : > { %6882 = vmatprep.subr.bf16.mxu1 %v7619_v0 }
 0xfcc   : > { %v4615_v48 = vpop.xlane.xlu1 %4614 }
 0xfcd   : > { %7271 = vrcp.f32 %v4615_v48 }
 0xfd0   : > { %v4621_v36 = vpop.xlane.xlu1 %4620 }
 0xfd1   : > { %7273 = vrcp.f32 %v4621_v36 }
 0xfd4   : > { %v5346_v19 = vpop.permute.xlu1 %5345 }
 0xfd5   : > { %v5351_v40 = vsel %vm1974_vm4, %v5346_v19, 0 }
 0xfd6   : > { %v4618_v26 = vpop.xlane.xlu0 %4617 }
 0xfd7   : > { %v7272_v52 = vpop.eup %7271  ;;  %7275 = vrcp.f32 %v4618_v26 }
 0xfd8   : > { %v4653_v56 = vmul.f32 %v7272_v52, %v9160_v11 }
 0xfda   : > { %v4669_v10 = vpack.c.bf16 %v4653_v56, %v4653_v56 }
 0xfdb   : > { %v7274_v35 = vpop.eup %7273 }
 0xfdc   : > { %6867 = vmatmul.mubr.msk.bf16.vlgmr.msra.gmra.mrb[120].mxu0 %vm1776_vm3, %v4669_v10  ;;  %v4655_v7 = vmul.f32 %v7274_v35, %v9164_v43  ;;  %v7312_v43 = vld [vmem:[#allocation8 + $0x8] sm:$0xff]  }
 0xfdd   : > { %6877 = vmatpush3.bf16.msra.mxu0 %v5351_v40  ;;  %6878 = vmatprep.mubr.msk.bf16.mxu0 %vm7621_vm0, %v7619_v0 }
 0xfde   : > { %6888 = vmatprep.subr.bf16.mxu0 %v7619_v0  ;;  %v4671_v39 = vpack.c.bf16 %v4655_v7, %v4655_v7 }
 0xfe1   : > { %v7276_v14 = vpop.eup %7275 }
 0xfe2   : > { %v4654_v49 = vmul.f32 %v7276_v14, %v9168_v45  ;;  %v7313_v45 = vld [vmem:[#allocation8 + $0x10] sm:$0xff]  }
 0xfe4   : > { %6879 = vmatmul.mubr.msk.bf16.vlgmr.msra.gmra.mrb[124].mxu0 %vm1776_vm3, %v4671_v39  ;;  %v4670_v11 = vpack.c.bf16 %v4654_v49, %v4654_v49 }
 0xfe5   : > { %6889 = vmatpush3.bf16.msra.mxu0 %v7311_v17  ;;  %6904 = vmatprep.mubr.msk.bf16.mxu0 %vm7621_vm0, %v7619_v0 }
 0xfe6   : > { %6873 = vmatmul.mubr.msk.bf16.vlgmr.msra.gmra.mrb[148].mxu1 %vm1776_vm3, %v4670_v11  ;;  %6890 = vmatprep.subr.bf16.mxu0 %v7619_v0 }
 0xfe7   : > { %6884 = vmatprep.mubr.msk.bf16.mxu1 %vm7621_vm0, %v7619_v0  ;;  %vm9643_vm0 = vcmask 1047559  }
 0xfe8   : > { %vm9646_vm11 = vmmov %vm9643_vm0 }
 0xfe9   : > { %6891 = vmatpush3.bf16.msra.mxu0 %v7312_v43 }
 0xfea   : > { %v4624_v44 = vpop.xlane.xlu0 %4623  ;;  %6892 = vmatprep.subr.bf16.mxu0 %v7619_v0 }
 0xfeb   : > { %7277 = vrcp.f32 %v4624_v44 }
 0xfed   : > { %6893 = vmatpush3.bf16.msra.mxu0 %v7313_v45 }
 0xfee   : > { %v5394_v22 = vpop.permute.xlu0 %5393  ;;  %6894 = vmatprep.subr.bf16.mxu0 %v7619_v0 }
 0xfef   : > { %v5399_v23 = vsel %vm1974_vm4, %v5394_v22, 0  ;;  %vm9645_vm4 = vmmov %vm9643_vm0 }
 0xff0   : > { %6883 = vmatpush3.bf16.msra.mxu1 %v5399_v23 }
 0xff1   : > { %6895 = vmatpush3.bf16.msra.mxu0 %v7314_v41  ;;  %5821 = vmatprep.subr.bf16.mxu1 %v7315_v55 }
 0xff2   : > { %6896 = vmatprep.subr.bf16.mxu0 %v7619_v0 }
 0xff5   : > { %v7278_v58 = vpop.eup %7277  ;;  %6897 = vmatpush3.bf16.msra.mxu0 %v7316_v53 }
 0xff6   : > { %v4656_v8 = vmul.f32 %v7278_v58, %v9175_v42  ;;  %6898 = vmatprep.subr.bf16.mxu0 %v7619_v0  ;;  %v7320_v42 = vld [vmem:[#allocation8 + $0x30] sm:$0xff]  }
 0xff7   : > { %v4715_v62 = vpop.f32.mrb[96].mxu0 }
 0xff8   : > { %v6796_v51 = vpop.f32.mrb[97].mxu0  ;;  %v4672_v59 = vpack.c.bf16 %v4656_v8, %v4656_v8  ;;  %v5441_v34 = vpack.c.bf16 %v4715_v62, %v4715_v62 }
 0xff9   : > { %v4718_v30 = vpop.f32.mrb[98].mxu0  ;;  %6899 = vmatpush3.bf16.msra.mxu0 %v7317_v9 }
 0xffa   : > { %v6797_v54 = vpop.f32.mrb[99].mxu0  ;;  %6885 = vmatmul.mubr.msk.bf16.vlgmr.msra.gmra.mrb[152].mxu1 %vm1776_vm3, %v4672_v59  ;;  %6900 = vmatprep.subr.bf16.mxu0 %v7619_v0  ;;  %v9283_v38 = vunpack.c.l.b16 %v5441_v34  ;;  %vm9644_vm3 = vmmov %vm9643_vm0 }
 0xffb   : > { %5822 = vmatpush1.bf16.msra.mxu1 %v7318_v2  ;;  %5853 = vmatprep.mubr.bf16.mxu1 %v7620_v1  ;;  %v7328_v1 = vld [vmem:[#allocation10 + $0x44] ss:$8 sps:$4 sm:$0xff]  }
 0xffc   : > { %5823 = vmatprep.subr.bf16.mxu1 %v7319_v29  ;;  %v5549_v6 = vrot.slane %v9283_v38, 2  ;;  %v5518_v63 = vrot.slane %v9283_v38, 1  ;;  %v5611_v40 = vrot.slane %v9283_v38, 4  ;;  %v5580_v7 = vrot.slane %v9283_v38, 3 }
 0xffd   : > { %6901 = vmatpush3.bf16.msra.mxu0 %v7320_v42  ;;  %v5673_v14 = vrot.slane %v9283_v38, 6  ;;  %v5642_v17 = vrot.slane %v9283_v38, 5  ;;  %v5704_v43 = vrot.slane %v9283_v38, 7 }
 0xffe   : > { %6902 = vmatprep.subr.bf16.mxu0 %v7619_v0  ;;  %v7331_v0 = vld [vmem:[#allocation10 + $0x50] ss:$8 sps:$4 sm:$0xff]  }
 0xfff   : > { %5824 = vmatpush1.bf16.msra.mxu1 %v7321_v60 }
0x1000   : > { %5825 = vmatprep.subr.bf16.mxu1 %v7322_v15 }
0x1001   : > { %6903 = vmatpush3.bf16.msra.mxu0 %v7323_v3 }
0x1002   : > { %6422 = vmatprep.subr.bf16.mxu0 %v7324_v25 }
0x1003   : > { %5826 = vmatpush1.bf16.msra.mxu1 %v7325_v31 }
0x1004   : > { %5827 = vmatprep.subr.bf16.mxu1 %v7326_v37 }
0x1007   : > { %5828 = vmatpush1.bf16.msra.mxu1 %v7327_v46 }
0x1008   : > { %5829 = vmatprep.subr.bf16.mxu1 %v7328_v1 }
0x100b   : > { %5830 = vmatpush1.bf16.msra.mxu1 %v7329_v27 }
0x100c   : > { %5831 = vmatprep.subr.bf16.mxu1 %v7330_v4 }
0x100f   : > { %5832 = vmatpush1.bf16.msra.mxu1 %v7331_v0 }
0x1010   : > { %5833 = vmatprep.subr.bf16.mxu1 %v7332_v61 }
0x1013   : > { %5834 = vmatpush1.bf16.msra.mxu1 %v7333_v47 }
0x1014   : > { %5835 = vmatprep.subr.bf16.mxu1 %v7334_v13 }
0x1017   : > { %5836 = vmatpush1.bf16.msra.mxu1 %v7335_v16 }
0x1054   : > { %v4763_v12 = vpop.f32.mrb[124].mxu1 }
0x1055   : > { %v6802_v20 = vpop.f32.mrb[125].mxu1  ;;  %v5442_v33 = vpack.c.bf16 %v4763_v12, %v4763_v12 }
0x1056   : > { %v4766_v5 = vpop.f32.mrb[126].mxu1 }
0x1057   : > { %v6803_v18 = vpop.f32.mrb[127].mxu1  ;;  %v9285_v21 = vunpack.c.l.b16 %v5442_v33 }
0x1059   : > { %v5550_v28 = vrot.slane %v9285_v21, 1  ;;  %v5612_v48 = vrot.slane %v9285_v21, 3  ;;  %v5581_v26 = vrot.slane %v9285_v21, 2  ;;  %v5674_v52 = vrot.slane %v9285_v21, 5 }
0x105a   : > { %v5643_v56 = vrot.slane %v9285_v21, 4  ;;  %v5705_v19 = vrot.slane %v9285_v21, 6  ;;  %v5519_v11 = vsel %vm2787_vm5, %v9285_v21, %v5518_v63  ;;  %v5489_v44 = vrot.slane %v9285_v21, 7 }
0x105b   : > { %v5551_v55 = vsel %vm2787_vm5, %v5550_v28, %v5549_v6  ;;  %v5613_v58 = vsel %vm2787_vm5, %v5612_v48, %v5611_v40  ;;  %v5582_v8 = vsel %vm2787_vm5, %v5581_v26, %v5580_v7  ;;  %v5675_v62 = vsel %vm2787_vm5, %v5674_v52, %v5673_v14 }
0x105c   : > { %v5644_v51 = vsel %vm2787_vm5, %v5643_v56, %v5642_v17  ;;  %v5706_v59 = vsel %vm2787_vm5, %v5705_v19, %v5704_v43  ;;  %v5490_v52 = vsel %vm2787_vm5, %v5489_v44, %v9283_v38 }
0x1062   : > { %v4811_v36 = vpop.f32.mrb[100].mxu0 }
0x1063   : > { %v5443_v10 = vpack.c.bf16 %v4811_v36, %v4811_v36  ;;  %v6808_v35 = vpop.f32.mrb[101].mxu0 }
0x1064   : > { %v4814_v49 = vpop.f32.mrb[102].mxu0  ;;  %v4859_v39 = vpop.f32.mrb[128].mxu1 }
0x1065   : > { %v5475_v45 = vunpack.c.l.b16 %v5443_v10  ;;  %v5444_v22 = vpack.c.bf16 %v4859_v39, %v4859_v39  ;;  %v6809_v23 = vpop.f32.mrb[103].mxu0  ;;  %v6814_v41 = vpop.f32.mrb[129].mxu1 }
0x1066   : > { %v4862_v53 = vpop.f32.mrb[130].mxu1 }
0x1067   : > { %v5476_v30 = vunpack.c.l.b16 %v5444_v22  ;;  %v6815_v9 = vpop.f32.mrb[131].mxu1  ;;  %v5552_v54 = vsel %vm2790_vm6, %v5475_v45, %v5551_v55  ;;  %v5520_v2 = vrot.slane %v5475_v45, 7  ;;  %v5614_v29 = vrot.slane %v5475_v45, 2 }
0x1068   : > { %v5583_v42 = vrot.slane %v5475_v45, 1  ;;  %v5676_v60 = vrot.slane %v5475_v45, 4  ;;  %v5645_v15 = vrot.slane %v5475_v45, 3  ;;  %v5707_v3 = vrot.slane %v5475_v45, 5 }
0x1069   : > { %v5553_v25 = vrot.slane %v5476_v30, 7  ;;  %v5521_v31 = vsel %vm2790_vm6, %v5520_v2, %v5519_v11  ;;  %v5522_v37 = vrot.slane %v5476_v30, 6  ;;  %v5615_v46 = vsel %vm2790_vm6, %v5614_v29, %v5613_v58 }
0x106a   : > { %v4907_v1 = vpop.f32.mrb[104].mxu0  ;;  %v5616_v27 = vrot.slane %v5476_v30, 1  ;;  %v5584_v4 = vsel %vm2790_vm6, %v5583_v42, %v5582_v8  ;;  %v5677_v0 = vsel %vm2790_vm6, %v5676_v60, %v5675_v62  ;;  %v5678_v61 = vrot.slane %v5476_v30, 3 }
0x106b   : > { %v5445_v47 = vpack.c.bf16 %v4907_v1, %v4907_v1  ;;  %v6820_v13 = vpop.f32.mrb[105].mxu0  ;;  %v5554_v16 = vsel %vm2793_vm7, %v5553_v25, %v5552_v54  ;;  %v5523_v12 = vsel %vm2793_vm7, %v5522_v37, %v5521_v31  ;;  %v5585_v20 = vsel %vm2793_vm7, %v5476_v30, %v5584_v4 }
0x106c   : > { %v4910_v5 = vpop.f32.mrb[106].mxu0  ;;  %v5617_v18 = vsel %vm2793_vm7, %v5616_v27, %v5615_v46  ;;  %v5679_v34 = vsel %vm2793_vm7, %v5678_v61, %v5677_v0  ;;  %v5646_v33 = vsel %vm2790_vm6, %v5645_v15, %v5644_v51  ;;  %v5647_v21 = vrot.slane %v5476_v30, 2 }
0x106d   : > { %v5477_v6 = vunpack.c.l.b16 %v5445_v47  ;;  %v6821_v28 = vpop.f32.mrb[107].mxu0  ;;  %v5708_v63 = vsel %vm2790_vm6, %v5707_v3, %v5706_v59  ;;  %v5709_v48 = vrot.slane %v5476_v30, 4  ;;  %v5491_v36 = vrot.slane %v5475_v45, 6 }
0x106e   : > { %v5648_v26 = vsel %vm2793_vm7, %v5647_v21, %v5646_v33  ;;  %v5493_v56 = vrot.slane %v5476_v30, 5 }
0x106f   : > { %v5555_v19 = vrot.slane %v5477_v6, 6  ;;  %v5524_v10 = vrot.slane %v5477_v6, 5  ;;  %v5618_v35 = vsel %vm2796_vm8, %v5477_v6, %v5617_v18  ;;  %v5586_v40 = vrot.slane %v5477_v6, 7 }
0x1070   : > { %v5680_v7 = vrot.slane %v5477_v6, 2  ;;  %v5649_v14 = vrot.slane %v5477_v6, 1  ;;  %v5710_v49 = vsel %vm2793_vm7, %v5709_v48, %v5708_v63  ;;  %v5711_v39 = vrot.slane %v5477_v6, 3 }
0x1071   : > { %v5556_v11 = vsel %vm2796_vm8, %v5555_v19, %v5554_v16  ;;  %v5525_v17 = vsel %vm2796_vm8, %v5524_v10, %v5523_v12  ;;  %v5587_v43 = vsel %vm2796_vm8, %v5586_v40, %v5585_v20  ;;  %v5492_v45 = vsel %vm2790_vm6, %v5491_v36, %v5490_v52 }
0x1072   : > { %v4955_v38 = vpop.f32.mrb[132].mxu1  ;;  %v5003_v44 = vpop.f32.mrb[108].mxu0  ;;  %v5681_v22 = vsel %vm2796_vm8, %v5680_v7, %v5679_v34  ;;  %v5650_v23 = vsel %vm2796_vm8, %v5649_v14, %v5648_v26  ;;  %v5712_v41 = vsel %vm2796_vm8, %v5711_v39, %v5710_v49  ;;  %v5494_v55 = vsel %vm2793_vm7, %v5493_v56, %v5492_v45 }
0x1073   : > { %v5446_v58 = vpack.c.bf16 %v4955_v38, %v4955_v38  ;;  %v5447_v53 = vpack.c.bf16 %v5003_v44, %v5003_v44  ;;  %v6826_v8 = vpop.f32.mrb[133].mxu1  ;;  %v6832_v62 = vpop.f32.mrb[109].mxu0  ;;  %v5495_v51 = vrot.slane %v5477_v6, 4 }
0x1074   : > { %v4958_v59 = vpop.f32.mrb[134].mxu1  ;;  %v5006_v30 = vpop.f32.mrb[110].mxu0 }
0x1075   : > { %v9334_v9 = vunpack.c.l.b16 %v5446_v58  ;;  %v9336_v54 = vunpack.c.l.b16 %v5447_v53  ;;  %v6827_v2 = vpop.f32.mrb[135].mxu1  ;;  %v6833_v29 = vpop.f32.mrb[111].mxu0  ;;  %v9339_v42 = vsel %vm2796_vm8, %v5495_v51, %v5494_v55 }
0x1077   : > { %v5557_v60 = vrot.slane %v9334_v9, 5  ;;  %v5559_v15 = vrot.slane %v9336_v54, 4  ;;  %v5526_v3 = vrot.slane %v9334_v9, 4  ;;  %v5528_v25 = vrot.slane %v9336_v54, 3 }
0x1078   : > { %v5619_v31 = vrot.slane %v9334_v9, 7  ;;  %v5621_v37 = vrot.slane %v9336_v54, 6  ;;  %v5588_v46 = vrot.slane %v9334_v9, 6  ;;  %v5590_v1 = vrot.slane %v9336_v54, 5 }
0x1079   : > { %v5558_v27 = vsel %vm2799_vm9, %v5557_v60, %v5556_v11  ;;  %v5527_v4 = vsel %vm2799_vm9, %v5526_v3, %v5525_v17  ;;  %v5682_v0 = vrot.slane %v9334_v9, 1  ;;  %v5651_v61 = vsel %vm2799_vm9, %v9334_v9, %v5650_v23 }
0x107a   : > { %v5051_v47 = vpop.f32.mrb[136].mxu1  ;;  %v5099_v13 = vpop.f32.mrb[112].mxu0  ;;  %v5560_v16 = vsel %vm2802_vm10, %v5559_v15, %v5558_v27  ;;  %v5529_v12 = vsel %vm2802_vm10, %v5528_v25, %v5527_v4  ;;  %v5620_v20 = vsel %vm2799_vm9, %v5619_v31, %v5618_v35  ;;  %v5589_v5 = vsel %vm2799_vm9, %v5588_v46, %v5587_v43 }
0x107b   : > { %v5448_v18 = vpack.c.bf16 %v5051_v47, %v5051_v47  ;;  %v5449_v34 = vpack.c.bf16 %v5099_v13, %v5099_v13  ;;  %v6838_v33 = vpop.f32.mrb[137].mxu1  ;;  %v6844_v21 = vpop.f32.mrb[113].mxu0  ;;  %v5622_v6 = vsel %vm2802_vm10, %v5621_v37, %v5620_v20  ;;  %v5591_v28 = vsel %vm2802_vm10, %v5590_v1, %v5589_v5 }
0x107c   : > { %v5054_v63 = vpop.f32.mrb[138].mxu1  ;;  %v5102_v48 = vpop.f32.mrb[114].mxu0  ;;  %v5683_v36 = vsel %vm2799_vm9, %v5682_v0, %v5681_v22  ;;  %v5652_v26 = vrot.slane %v9336_v54, 7  ;;  %v5713_v52 = vrot.slane %v9334_v9, 2  ;;  %v5715_v11 = vrot.slane %v9336_v54, 1 }
0x107d   : > { %v9363_v56 = vunpack.c.l.b16 %v5448_v18  ;;  %v9365_v19 = vunpack.c.l.b16 %v5449_v34  ;;  %v6839_v10 = vpop.f32.mrb[139].mxu1  ;;  %v6845_v35 = vpop.f32.mrb[115].mxu0  ;;  %v5684_v40 = vsel %vm2802_vm10, %v9336_v54, %v5683_v36  ;;  %v5497_v45 = vrot.slane %v9334_v9, 3 }
0x107e   : > { %v5653_v7 = vsel %vm2802_vm10, %v5652_v26, %v5651_v61  ;;  %v5714_v14 = vsel %vm2799_vm9, %v5713_v52, %v5712_v41  ;;  %v5499_v38 = vrot.slane %v9336_v54, 2 }
0x107f   : > { %v5561_v49 = vrot.slane %v9363_v56, 3  ;;  %v5530_v39 = vrot.slane %v9363_v56, 2  ;;  %v5623_v17 = vrot.slane %v9363_v56, 5  ;;  %v5592_v43 = vrot.slane %v9363_v56, 4 }
0x1080   : > { %v5563_v22 = vrot.slane %v9365_v19, 2  ;;  %v5685_v41 = vrot.slane %v9363_v56, 7  ;;  %v5532_v53 = vrot.slane %v9365_v19, 1  ;;  %v5654_v51 = vrot.slane %v9363_v56, 6 }
0x1081   : > { %v9379_v44 = vsel %vm9643_vm0, %v5561_v49, %v5560_v16  ;;  %v9383_v23 = vsel %vm9644_vm3, %v5530_v39, %v5529_v12  ;;  %v9388_v8 = vsel %vm9645_vm4, %v5623_v17, %v5622_v6  ;;  %v9391_v62 = vsel %vm9646_vm11, %v5592_v43, %v5591_v28  ;;  %vm9647_vm3 = vmmov %vm9643_vm0 }
0x1082   : > { %v5147_v55 = vpop.f32.mrb[140].mxu1  ;;  %v5195_v58 = vpop.f32.mrb[116].mxu0  ;;  %v9395_v2 = vsel %vm9643_vm0, %v5685_v41, %v5684_v40  ;;  %v5716_v29 = vsel %vm2802_vm10, %v5715_v11, %v5714_v14  ;;  %v5625_v3 = vrot.slane %v9365_v19, 4  ;;  %v9400_v25 = vsel %vm9647_vm3, %v5654_v51, %v5653_v7  ;;  %vm9648_vm11 = vmmov %vm9643_vm0 }
0x1083   : > { %v5450_v59 = vpack.c.bf16 %v5147_v55, %v5147_v55  ;;  %v5451_v30 = vpack.c.bf16 %v5195_v58, %v5195_v58  ;;  %v6850_v9 = vpop.f32.mrb[141].mxu1  ;;  %v6856_v54 = vpop.f32.mrb[117].mxu0  ;;  %v9404_v31 = vsel %vm9648_vm11, %v9363_v56, %v5716_v29  ;;  %v5498_v37 = vsel %vm2799_vm9, %v5497_v45, %v9339_v42  ;;  %vm9649_vm4 = vmmov %vm9643_vm0 }
0x1084   : > { %v5150_v60 = vpop.f32.mrb[142].mxu1  ;;  %v5198_v15 = vpop.f32.mrb[118].mxu0  ;;  %v5594_v0 = vrot.slane %v9365_v19, 3  ;;  %v5500_v61 = vsel %vm2802_vm10, %v5499_v38, %v5498_v37  ;;  %v5687_v47 = vrot.slane %v9365_v19, 6  ;;  %v5656_v13 = vrot.slane %v9365_v19, 5  ;;  %vm9656_vm3 = vmmov %vm9643_vm0 }
0x1085   : > { %v5482_v46 = vunpack.c.l.b16 %v5450_v59  ;;  %v5483_v1 = vunpack.c.l.b16 %v5451_v30  ;;  %v6851_v27 = vpop.f32.mrb[143].mxu1  ;;  %v6857_v4 = vpop.f32.mrb[119].mxu0  ;;  %v5718_v16 = vrot.slane %v9365_v19, 7  ;;  %v5501_v12 = vrot.slane %v9363_v56, 1 }
0x1086   : > { %vm9657_vm11 = vcmask 916480  }
0x1087   : > { %v5564_v20 = vrot.slane %v5482_v46, 1  ;;  %v5533_v5 = vsel %vm2787_vm5, %v5482_v46, %v5532_v53  ;;  %v5534_v42 = vrot.slane %v5483_v1, 7  ;;  %v5626_v18 = vrot.slane %v5482_v46, 3 }
0x1088   : > { %v5628_v34 = vrot.slane %v5483_v1, 2  ;;  %v5595_v33 = vrot.slane %v5482_v46, 2  ;;  %v5597_v21 = vrot.slane %v5483_v1, 1  ;;  %v5688_v6 = vrot.slane %v5482_v46, 5 }
0x1089   : > { %v5565_v28 = vsel %vm2787_vm5, %v5564_v20, %v5563_v22  ;;  %v5535_v63 = vsel %vm2790_vm6, %v5534_v42, %v5533_v5  ;;  %v5627_v48 = vsel %vm2787_vm5, %v5626_v18, %v5625_v3  ;;  %v5690_v36 = vrot.slane %v5483_v1, 4 }
0x108a   : > { %v5243_v26 = vpop.f32.mrb[144].mxu1  ;;  %v5566_v52 = vsel %vm2790_vm6, %v5483_v1, %v5565_v28  ;;  %v5629_v56 = vsel %vm2790_vm6, %v5628_v34, %v5627_v48  ;;  %v5596_v10 = vsel %vm2787_vm5, %v5595_v33, %v5594_v0  ;;  %v5689_v35 = vsel %vm2787_vm5, %v5688_v6, %v5687_v47 }
0x108b   : > { %v5452_v40 = vpack.c.bf16 %v5243_v26, %v5243_v26  ;;  %v6862_v7 = vpop.f32.mrb[145].mxu1  ;;  %v5598_v14 = vsel %vm2790_vm6, %v5597_v21, %v5596_v10  ;;  %v5691_v49 = vsel %vm2790_vm6, %v5690_v36, %v5689_v35  ;;  %v5657_v39 = vrot.slane %v5482_v46, 4 }
0x108c   : > { %v5246_v11 = vpop.f32.mrb[146].mxu1  ;;  %v5659_v17 = vrot.slane %v5483_v1, 3  ;;  %v5719_v43 = vrot.slane %v5482_v46, 6  ;;  %v5721_v45 = vrot.slane %v5483_v1, 5  ;;  %v9425_v38 = vsel %vm9649_vm4, %v5501_v12, %v5500_v61 }
0x108d   : > { %v5484_v22 = vunpack.c.l.b16 %v5452_v40  ;;  %v6863_v41 = vpop.f32.mrb[147].mxu1  ;;  %v5658_v55 = vsel %vm2787_vm5, %v5657_v39, %v5656_v13  ;;  %v5503_v58 = vrot.slane %v5482_v46, 7  ;;  %v5505_v59 = vrot.slane %v5483_v1, 6 }
0x108e   : > { %v5660_v53 = vsel %vm2790_vm6, %v5659_v17, %v5658_v55  ;;  %v5720_v51 = vsel %vm2787_vm5, %v5719_v43, %v5718_v16 }
0x108f   : > { %v5567_v30 = vrot.slane %v5484_v22, 7  ;;  %v5536_v9 = vrot.slane %v5484_v22, 6  ;;  %v5630_v54 = vrot.slane %v5484_v22, 1  ;;  %v5599_v29 = vsel %vm2793_vm7, %v5484_v22, %v5598_v14 }
0x1090   : > { %v5692_v60 = vrot.slane %v5484_v22, 3  ;;  %v5661_v15 = vrot.slane %v5484_v22, 2  ;;  %v5722_v3 = vsel %vm2790_vm6, %v5721_v45, %v5720_v51  ;;  %v5723_v37 = vrot.slane %v5484_v22, 4 }
0x1091   : > { %v5568_v27 = vsel %vm2793_vm7, %v5567_v30, %v5566_v52  ;;  %v5537_v4 = vsel %vm2793_vm7, %v5536_v9, %v5535_v63  ;;  %v5631_v46 = vsel %vm2793_vm7, %v5630_v54, %v5629_v56  ;;  %v5504_v0 = vsel %vm2787_vm5, %v5503_v58, %v9365_v19  ;;  %vm9650_vm5 = vmmov %vm9643_vm0 }
0x1092   : > { %v5693_v1 = vsel %vm2793_vm7, %v5692_v60, %v5691_v49  ;;  %v5662_v61 = vsel %vm2793_vm7, %v5661_v15, %v5660_v53  ;;  %v5724_v47 = vsel %vm2793_vm7, %v5723_v37, %v5722_v3  ;;  %v5506_v13 = vsel %vm2790_vm6, %v5505_v59, %v5504_v0  ;;  %vm9651_vm6 = vmmov %vm9643_vm0 }
0x1093   : > { %v5507_v16 = vrot.slane %v5484_v22, 5 }
0x1095   : > { %v5508_v12 = vsel %vm2793_vm7, %v5507_v16, %v5506_v13  ;;  %vm9652_vm7 = vmmov %vm9643_vm0 }
0x10af   : > { %v5291_v20 = vpop.f32.mrb[120].mxu0 }
0x10b0   : > { %v5453_v5 = vpack.c.bf16 %v5291_v20, %v5291_v20  ;;  %v6868_v42 = vpop.f32.mrb[121].mxu0 }
0x10b1   : > { %v5294_v18 = vpop.f32.mrb[122].mxu0 }
0x10b2   : > { %v5485_v34 = vunpack.c.l.b16 %v5453_v5  ;;  %v6869_v33 = vpop.f32.mrb[123].mxu0 }
0x10b4   : > { %v5569_v21 = vrot.slane %v5485_v34, 6  ;;  %v5538_v6 = vrot.slane %v5485_v34, 5  ;;  %v5632_v19 = vsel %vm2796_vm8, %v5485_v34, %v5631_v46  ;;  %v5600_v28 = vrot.slane %v5485_v34, 7 }
0x10b5   : > { %v5694_v63 = vrot.slane %v5485_v34, 2  ;;  %v5663_v48 = vrot.slane %v5485_v34, 1  ;;  %v5725_v36 = vrot.slane %v5485_v34, 3  ;;  %v5509_v26 = vrot.slane %v5485_v34, 4 }
0x10b6   : > { %v5570_v52 = vsel %vm2796_vm8, %v5569_v21, %v5568_v27  ;;  %v5539_v56 = vsel %vm2796_vm8, %v5538_v6, %v5537_v4  ;;  %v5601_v10 = vsel %vm2796_vm8, %v5600_v28, %v5599_v29 }
0x10b7   : > { %v5387_v35 = vpop.f32.mrb[124].mxu0  ;;  %v5695_v40 = vsel %vm2796_vm8, %v5694_v63, %v5693_v1  ;;  %v5664_v7 = vsel %vm2796_vm8, %v5663_v48, %v5662_v61  ;;  %v5726_v14 = vsel %vm2796_vm8, %v5725_v36, %v5724_v47  ;;  %v5510_v49 = vsel %vm2796_vm8, %v5509_v26, %v5508_v12  ;;  %vm9653_vm8 = vmmov %vm9643_vm0 }
0x10b8   : > { %v5455_v39 = vpack.c.bf16 %v5387_v35, %v5387_v35  ;;  %v6880_v11 = vpop.f32.mrb[125].mxu0 }
0x10b9   : > { %v5339_v17 = vpop.f32.mrb[148].mxu1  ;;  %v5390_v43 = vpop.f32.mrb[126].mxu0 }
0x10ba   : > { %v5487_v45 = vunpack.c.l.b16 %v5455_v39  ;;  %v5454_v22 = vpack.c.bf16 %v5339_v17, %v5339_v17  ;;  %v6874_v41 = vpop.f32.mrb[149].mxu1  ;;  %v6881_v55 = vpop.f32.mrb[127].mxu0 }
0x10bb   : > { %v5342_v58 = vpop.f32.mrb[150].mxu1 }
0x10bc   : > { %v5486_v53 = vunpack.c.l.b16 %v5454_v22  ;;  %v6875_v51 = vpop.f32.mrb[151].mxu1  ;;  %v5573_v59 = vrot.slane %v5487_v45, 4  ;;  %v5542_v30 = vrot.slane %v5487_v45, 3  ;;  %v5635_v9 = vrot.slane %v5487_v45, 6 }
0x10bd   : > { %v5604_v54 = vrot.slane %v5487_v45, 5  ;;  %v5666_v29 = vrot.slane %v5487_v45, 7  ;;  %v5729_v60 = vrot.slane %v5487_v45, 1  ;;  %v5513_v15 = vrot.slane %v5487_v45, 2 }
0x10be   : > { %v5571_v3 = vrot.slane %v5486_v53, 5  ;;  %v5540_v37 = vrot.slane %v5486_v53, 4  ;;  %v5633_v27 = vrot.slane %v5486_v53, 7  ;;  %v5602_v4 = vrot.slane %v5486_v53, 6 }
0x10bf   : > { %v5696_v46 = vrot.slane %v5486_v53, 1  ;;  %v5665_v0 = vsel %vm2799_vm9, %v5486_v53, %v5664_v7  ;;  %v5727_v1 = vrot.slane %v5486_v53, 2  ;;  %v5511_v61 = vrot.slane %v5486_v53, 3 }
0x10c0   : > { %v5572_v47 = vsel %vm2799_vm9, %v5571_v3, %v5570_v52  ;;  %v5541_v13 = vsel %vm2799_vm9, %v5540_v37, %v5539_v56  ;;  %v5634_v16 = vsel %vm2799_vm9, %v5633_v27, %v5632_v19  ;;  %v5603_v12 = vsel %vm2799_vm9, %v5602_v4, %v5601_v10 }
0x10c1   : > { %v5574_v20 = vsel %vm2802_vm10, %v5573_v59, %v5572_v47  ;;  %v5543_v5 = vsel %vm2802_vm10, %v5542_v30, %v5541_v13  ;;  %v5636_v42 = vsel %vm2802_vm10, %v5635_v9, %v5634_v16  ;;  %v5605_v18 = vsel %vm2802_vm10, %v5604_v54, %v5603_v12  ;;  %v7338_v47 = vld [vmem:[#allocation11 + $0x8] sm:$0xff]   ;;  %v7339_v13 = vld [vmem:[#allocation11 + $0x50] sm:$0xff]   ;;  %v7341_v12 = vld [vmem:[#allocation11 + $0x58] sm:$0xff]  }
0x10c2   : > { %v5697_v34 = vsel %vm2799_vm9, %v5696_v46, %v5695_v40  ;;  %v5667_v33 = vsel %vm2802_vm10, %v5666_v29, %v5665_v0  ;;  %v5728_v21 = vsel %vm2799_vm9, %v5727_v1, %v5726_v14  ;;  %v5512_v6 = vsel %vm2799_vm9, %v5511_v61, %v5510_v49  ;;  %vm9654_vm9 = vmmov %vm9643_vm0  ;;  %v7336_v1 = vld [vmem:[#allocation11] sm:$0xff]   ;;  %v7337_v61 = vld [vmem:[#allocation11 + $0x48] sm:$0xff]  }
0x10c3   : > { %v5698_v19 = vsel %vm2802_vm10, %v5487_v45, %v5697_v34  ;;  %v5730_v28 = vsel %vm2802_vm10, %v5729_v60, %v5728_v21  ;;  %v5514_v63 = vsel %vm2802_vm10, %v5513_v15, %v5512_v6  ;;  %vm9655_vm10 = vmmov %vm9643_vm0  ;;  %v7340_v16 = vld [vmem:[#allocation11 + $0x10] sm:$0xff]   ;;  %v7346_v34 = vld [vmem:[#allocation11 + $0x28] sm:$0xff]  }
0x10c4   : > { %v7348_v21 = vld [vmem:[#allocation11 + $0x30] sm:$0xff]   ;;  %v7349_v6 = vld [vmem:[#allocation11 + $0x78] sm:$0xff]  }
0x10cd   : > { %v5435_v48 = vpop.f32.mrb[152].mxu1 }
0x10ce   : > { %v5456_v36 = vpack.c.bf16 %v5435_v48, %v5435_v48  ;;  %v6886_v26 = vpop.f32.mrb[153].mxu1 }
0x10cf   : > { %v5438_v52 = vpop.f32.mrb[154].mxu1 }
0x10d0   : > { %v5488_v56 = vunpack.c.l.b16 %v5456_v36  ;;  %v6887_v10 = vpop.f32.mrb[155].mxu1 }
0x10d2   : > { %v5575_v35 = vrot.slane %v5488_v56, 3  ;;  %v5544_v40 = vrot.slane %v5488_v56, 2  ;;  %v5637_v7 = vrot.slane %v5488_v56, 5  ;;  %v5606_v39 = vrot.slane %v5488_v56, 4 }
0x10d3   : > { %v5699_v11 = vrot.slane %v5488_v56, 7  ;;  %v5668_v14 = vrot.slane %v5488_v56, 6  ;;  %v5731_v49 = vsel %vm9650_vm5, %v5488_v56, %v5730_v28  ;;  %v5515_v17 = vrot.slane %v5488_v56, 1 }
0x10d4   : > { %v5576_v43 = vsel %vm9651_vm6, %v5575_v35, %v5574_v20  ;;  %v5545_v45 = vsel %vm9652_vm7, %v5544_v40, %v5543_v5  ;;  %v5638_v22 = vsel %vm9653_vm8, %v5637_v7, %v5636_v42  ;;  %v5607_v41 = vsel %vm9654_vm9, %v5606_v39, %v5605_v18  ;;  %v7342_v20 = vld [vmem:[#allocation11 + $0x18] sm:$0xff]   ;;  %v7343_v5 = vld [vmem:[#allocation11 + $0x60] sm:$0xff]   ;;  %v7345_v18 = vld [vmem:[#allocation11 + $0x68] sm:$0xff]  }
0x10d5   : > { %v5577_v55 = vpack.c.b16 %v5576_v43, %v9379_v44  ;;  %v5546_v58 = vpack.c.b16 %v5545_v45, %v9383_v23  ;;  %v5639_v53 = vpack.c.b16 %v5638_v22, %v9388_v8  ;;  %v5608_v51 = vpack.c.b16 %v5607_v41, %v9391_v62  ;;  %v7344_v42 = vld [vmem:[#allocation11 + $0x20] sm:$0xff]  }
0x10d6   : > { %v5700_v59 = vsel %vm9655_vm10, %v5699_v11, %v5698_v19  ;;  %v5669_v30 = vsel %vm9643_vm0, %v5668_v14, %v5667_v33  ;;  %v5732_v9 = vpack.c.b16 %v5731_v49, %v9404_v31  ;;  %v5516_v54 = vsel %vm9656_vm3, %v5515_v17, %v5514_v63  ;;  %v7347_v33 = vld [vmem:[#allocation11 + $0x70] sm:$0xff]   ;;  %v7350_v19 = vld [vmem:[#allocation11 + $0x38] sm:$0xff]  }
0x10d7   : > { %5578 = vrot.lane.b32.xlu0 %v5577_v55, %s7624_s24  ;;  %5547 = vrot.lane.b32.xlu1 %v5546_v58, %s9641_s22  ;;  %v5701_v44 = vpack.c.b16 %v5700_v59, %v9395_v2  ;;  %v5670_v23 = vpack.c.b16 %v5669_v30, %v9400_v25  ;;  %v5517_v8 = vpack.c.b16 %v5516_v54, %v9425_v38  ;;  %v7351_v63 = vld [vmem:[%s9577_s5] ss:$0 sm:$0xff]  ;;  %s9658_s24 = sshll.u32 %s7943_s28, 4 }
0x10d8   : > { %v7352_v30 = vld [vmem:[%s9578_s6] ss:$0 sm:$0xff] }
0x10db   : > { %5640 = vrot.lane.b32.xlu0 %v5639_v53, %s7625_s4  ;;  %5609 = vrot.lane.b32.xlu1 %v5608_v51, %s9642_s11  ;;  %s556_s4 = scalar_lea.vmem [#allocation13], %s9658_s24 }
0x10df   : > { %5702 = vrot.lane.b32.xlu0 %v5701_v44, %s7627_s14  ;;  %5671 = vrot.lane.b32.xlu1 %v5670_v23, %s7622_s18  ;;  %v7353_v44 = vld [vmem:[%s9579_s7] ss:$0 sm:$0xff]  ;;  %s5955_s14 = sshll.u32 %s556_s4, 4  ;;  %s7629_s18 = smov [#allocation13]   ;;  %s9528_s14 = int_to_ptr.vmem [resolvable:$true] %s5955_s14 }
0x10e0   : > { %s7527_s11 = scalar_lea.vmem %s9528_s14, 256  ;;  %s7531_s24 = sshll.u32 %s7629_s18, 4  ;;  %s7532_s24 = int_to_ptr.vmem [resolvable:$false] %s7531_s24 }
0x10e1   : > { %p7528_p11 = scmp.ne.s32.totalorder %s9528_s14, %s7527_s11  ;;  %s7533_s0 = scalar_lea.vmem %s7532_s24, 512 }
0x10e2   : > { %p7534_p4 = scmp.lt.s32.totalorder %s9528_s14, %s7532_s24  ;;  %p7535_p1 = scmp.lt.s32.totalorder %s7533_s0, %s7527_s11 }
0x10e3   : > { %5733 = vrot.lane.b32.xlu1 %v5732_v9, %s7623_s13  ;;  %s6235_s13 = sshll.u32 %s7728_s19, 8  ;;  %s5942_s19 = scalar_lea.sflag [#allocation4], %s7943_s28 }
0x10e4   : > { %s9526_s3 = scalar_lea.hbm %s9659_s2, %s6235_s13  ;;  %p7529_p5 = pnand %p7528_p11, %p9660_p13 }
0x10e5   : > { %p7536_p3 = por %p7535_p1, %p7534_p4 }
0x10e6   : > { %p7530_p7 = pneg %p7529_p5 }
0x10e8   : > { %p7537_p8 = pnand %p7536_p3, %p7530_p7 }
0x1149   : > { %v5579_v62 = vpop.permute.xlu0 %5578  ;;  %v5548_v31 = vpop.permute.xlu1 %5547 }
0x114a   : > { %v5737_v29 = vsel %vm921_vm2, %v5517_v8, %v5548_v31 }
0x114b   : > { %v5739_v25 = vsel %vm907_vm1, %v5737_v29, %v5579_v62 }
0x114d   : > { %v5641_v60 = vpop.permute.xlu0 %5640  ;;  %v5610_v2 = vpop.permute.xlu1 %5609 }
0x114e   : > { %v5741_v38 = vsel %vm3044_vm12, %v5739_v25, %v5610_v2 }
0x114f   : > { %v5743_v3 = vsel %vm3047_vm13, %v5741_v38, %v5641_v60 }
0x1151   : > { %v5672_v15 = vpop.permute.xlu1 %5671  ;;  %v5703_v37 = vpop.permute.xlu0 %5702 }
0x1152   : > { %v5745_v27 = vsel %vm3050_vm14, %v5743_v3, %v5672_v15 }
0x1153   : > { %v5747_v46 = vsel %vm3053_vm15, %v5745_v27, %v5703_v37 }
0x1155   : > { %v5734_v4 = vpop.permute.xlu1 %5733 }
0x1156   : > { %v5749_v0 = vsel %vm9657_vm11, %v5747_v46, %v5734_v4 }
0x1157   : > { %6905 = vmatmul.mubr.bf16.vlgmr.msra.gmra.mrb[128].mxu0 %v5749_v0 }
0x1158   : > { %6423 = vmatpush3.bf16.msra.mxu0 %v7336_v1 }
0x1159   : > { %6424 = vmatprep.subr.bf16.mxu0 %v7337_v61 }
0x115c   : > { %6425 = vmatpush3.bf16.msra.mxu0 %v7338_v47 }
0x115d   : > { %6426 = vmatprep.subr.bf16.mxu0 %v7339_v13 }
0x1160   : > { %6427 = vmatpush3.bf16.msra.mxu0 %v7340_v16 }
0x1161   : > { %6428 = vmatprep.subr.bf16.mxu0 %v7341_v12 }
0x1164   : > { %6429 = vmatpush3.bf16.msra.mxu0 %v7342_v20 }
0x1165   : > { %6430 = vmatprep.subr.bf16.mxu0 %v7343_v5 }
0x1168   : > { %6431 = vmatpush3.bf16.msra.mxu0 %v7344_v42 }
0x1169   : > { %6432 = vmatprep.subr.bf16.mxu0 %v7345_v18 }
0x116c   : > { %6433 = vmatpush3.bf16.msra.mxu0 %v7346_v34 }
0x116d   : > { %6434 = vmatprep.subr.bf16.mxu0 %v7347_v33 }
0x1170   : > { %6435 = vmatpush3.bf16.msra.mxu0 %v7348_v21 }
0x1171   : > { %6436 = vmatprep.subr.bf16.mxu0 %v7349_v6 }
0x1174   : > { %6437 = vmatpush3.bf16.msra.mxu0 %v7350_v19 }
0x122a   : > { %v5785_v28 = vpop.f32.mrb[128].mxu0 }
0x122b   : > { %v5786_v48 = vadd.f32 %v7351_v63, %v5785_v28  ;;  %v6906_v36 = vpop.f32.mrb[129].mxu0 }
0x122c   : > { %v5788_v26 = vpop.f32.mrb[130].mxu0 }
0x122d   : > { %v5792_v52 = vadd.f32 %v5786_v48, %v8782_v57  ;;  %v5789_v56 = vadd.f32 %v7351_v63, %v5788_v26  ;;  %v6907_v10 = vpop.f32.mrb[131].mxu0 }
0x122f   : > { %v5793_v35 = vadd.f32 %v5789_v56, %v8784_v32  ;;  %5794 = vadd.xlane.f32.xlu0 %v5792_v52 }
0x1231   : > { %5796 = vadd.xlane.f32.xlu1 %v5793_v35 }
0x12bc   : > { %v5795_v40 = vpop.xlane.xlu0 %5794 }
0x12bd   : > { %v5798_v7 = vmul.f32 0.0078125, %v5795_v40 }
0x12be   : > { %v5797_v39 = vpop.xlane.xlu1 %5796 }
0x12bf   : > { %v5800_v11 = vsub.f32 %v5792_v52, %v5798_v7  ;;  %v5799_v14 = vmul.f32 0.0078125, %v5797_v39 }
0x12c1   : > { %v5801_v49 = vsub.f32 %v5793_v35, %v5799_v14  ;;  %v5802_v17 = vmul.f32 %v5800_v11, %v5800_v11 }
0x12c3   : > { %5804 = vadd.xlane.f32.xlu0 %v5802_v17  ;;  %v5803_v43 = vmul.f32 %v5801_v49, %v5801_v49  ;;  %v7356_v17 = vld [vmem:[%s9640_s1] ss:$0 sm:$0xff] }
0x12c7   : > { %5806 = vadd.xlane.f32.xlu0 %v5803_v43 }
0x1350   : > { %v5805_v45 = vpop.xlane.xlu0 %5804 }
0x1351   : > { %v5808_v22 = vmul.f32 0.0078125, %v5805_v45 }
0x1353   : > { %v5810_v41 = vadd.f32 1e-05, %v5808_v22 }
0x1354   : > { %v5807_v57 = vpop.xlane.xlu0 %5806 }
0x1355   : > { %7279 = vrsqrt.f32 %v5810_v41  ;;  %v5809_v55 = vmul.f32 0.0078125, %v5807_v57 }
0x1357   : > { %v5811_v58 = vadd.f32 1e-05, %v5809_v55 }
0x1359   : > { %7281 = vrsqrt.f32 %v5811_v58 }
0x135f   : > { %v7280_v32 = vpop.eup %7279 }
0x1360   : > { %v5814_v53 = vmul.f32 %v7280_v32, %v5800_v11  ;;  %v7355_v11 = vld [vmem:[%s9639_s23] ss:$0 sm:$0xff] }
0x1362   : > { %v5816_v9 = vmul.f32 %v7352_v30, %v5814_v53 }
0x1363   : > { %v7282_v51 = vpop.eup %7281 }
0x1364   : > { %v5815_v59 = vmul.f32 %v7282_v51, %v5801_v49  ;;  %v5818_v23 = vadd.f32 %v7353_v44, %v5816_v9 }
0x1366   : > { %v5817_v54 = vmul.f32 %v7352_v30, %v5815_v59 }
0x1368   : > { %v5819_v8 = vadd.f32 %v7353_v44, %v5817_v54 }
0x136a   : > { %v5820_v62 = vpack.c.bf16 %v5819_v8, %v5818_v23 }
0x136c   : > { %5854 = vmatmul.mubr.bf16.vlgmr.msra.gmra.mrb[156].mxu1 %v5820_v62 }
0x143f   : > { %v5855_v31 = vpop.f32.mrb[156].mxu1 }
0x1440   : > { %v5856_v29 = vadd.f32 %v5855_v31, %v8751_v24  ;;  %v5857_v60 = vpop.f32.mrb[157].mxu1 }
0x1441   : > { %v5858_v2 = vadd.f32 %v5857_v60, %v8755_v50  ;;  %v5859_v25 = vpop.f32.mrb[158].mxu1 }
0x1442   : > { %v5860_v38 = vadd.f32 %v5859_v25, %v8751_v24  ;;  %v5861_v15 = vpop.f32.mrb[159].mxu1  ;;  %v5864_v37 = vmax.f32 %v5856_v29, 0.0  ;;  %v7354_v24 = vld [vmem:[%s9638_s20] ss:$0 sm:$0xff] }
0x1443   : > { %v5862_v3 = vadd.f32 %v5861_v15, %v8755_v50  ;;  %v5865_v4 = vmax.f32 %v5858_v2, 0.0 }
0x1444   : > { %v5866_v27 = vmax.f32 %v5860_v38, 0.0 }
0x1445   : > { %v5867_v46 = vmax.f32 %v5862_v3, 0.0 }
0x1446   : > { %v5868_v0 = vpack.c.bf16 %v5866_v27, %v5864_v37 }
0x1447   : > { %v5869_v1 = vpack.c.bf16 %v5867_v46, %v5865_v4 }
0x1449   : > { %5902 = vmatprep.mubr.bf16.mxu0 %v5869_v1 }
0x144a   : > { %5903 = vmatmul.mubr.bf16.vlgmr.msra.gmra.mrb[132].mxu0 %v5868_v0 }
0x151d   : > { %v6438_v61 = vpop.f32.mrb[132].mxu0 }
0x151e   : > { %v6439_v47 = vpop.f32.mrb[133].mxu0 }
0x151f   : > { %v6440_v13 = vadd.f32 %v6439_v47, %v6438_v61  ;;  %v6441_v16 = vpop.f32.mrb[134].mxu0 }
0x1520   : > { %v6442_v12 = vpop.f32.mrb[135].mxu0 }
0x1521   : > { %v5905_v20 = vadd.f32 %v7354_v24, %v6440_v13  ;;  %v6443_v5 = vadd.f32 %v6442_v12, %v6441_v16 }
0x1523   : > { %v5908_v50 = vadd.f32 %v7354_v24, %v6443_v5  ;;  %v5911_v42 = vadd.f32 %v5905_v20, %v5818_v23 }
0x1525   : > { %5913 = vadd.xlane.f32.xlu1 %v5911_v42  ;;  %v5912_v18 = vadd.f32 %v5908_v50, %v5819_v8 }
0x1527   : > { %5915 = vadd.xlane.f32.xlu0 %v5912_v18 }
0x15b2   : > { %v5914_v34 = vpop.xlane.xlu1 %5913 }
0x15b3   : > { %v5917_v33 = vmul.f32 0.0078125, %v5914_v34 }
0x15b4   : > { %v5916_v21 = vpop.xlane.xlu0 %5915 }
0x15b5   : > { %v5919_v6 = vsub.f32 %v5911_v42, %v5917_v33  ;;  %v5918_v19 = vmul.f32 0.0078125, %v5916_v21 }
0x15b7   : > { %v5920_v28 = vsub.f32 %v5912_v18, %v5918_v19  ;;  %v5921_v63 = vmul.f32 %v5919_v6, %v5919_v6 }
0x15b9   : > { %5923 = vadd.xlane.f32.xlu1 %v5921_v63  ;;  %v5922_v48 = vmul.f32 %v5920_v28, %v5920_v28 }
0x15bb   : > { %5925 = vadd.xlane.f32.xlu0 %v5922_v48 }
0x1646   : > { %v5924_v36 = vpop.xlane.xlu1 %5923 }
0x1647   : > { %v5927_v26 = vmul.f32 0.0078125, %v5924_v36 }
0x1648   : > { %v5926_v52 = vpop.xlane.xlu0 %5925 }
0x1649   : > { %v5929_v56 = vadd.f32 1e-05, %v5927_v26  ;;  %v5928_v10 = vmul.f32 0.0078125, %v5926_v52 }
0x164b   : > { %7283 = vrsqrt.f32 %v5929_v56  ;;  %v5930_v35 = vadd.f32 1e-05, %v5928_v10 }
0x164d   : > { %7285 = vrsqrt.f32 %v5930_v35 }
0x1655   : > { %v7284_v40 = vpop.eup %7283 }
0x1656   : > { %v5933_v7 = vmul.f32 %v7284_v40, %v5919_v6 }
0x1657   : > { %v7286_v39 = vpop.eup %7285 }
0x1658   : > { %v5935_v14 = vmul.f32 %v7355_v11, %v5933_v7  ;;  %v5934_v49 = vmul.f32 %v7286_v39, %v5920_v28 }
0x165a   : > { %v5937_v43 = vadd.f32 %v7356_v17, %v5935_v14  ;;  %v5936_v45 = vmul.f32 %v7355_v11, %v5934_v49 }
0x165c   : > { %v5938_v22 = vadd.f32 %v7356_v17, %v5936_v45  ;;  %5939 = vst [vmem:[%s556_s4] sm:$0xff] %v5937_v43 }
0x165e   : > { %5940 = vst [vmem:[%s556_s4 + $0x8] sm:$0xff] %v5938_v22 }
0x165f   : > { %7540 = shalt.err (!%p7537_p8)
}
0x1660   : > { %s7541_s13 = scalar_lea.hbm %s9526_s3, 256  ;;  %s7545_s17 = scalar_lea.hbm %s9659_s2, 512 }
0x1661   : > { %p7542_p6 = scmp.ne.s32.totalorder %s9526_s3, %s7541_s13  ;;  %p7546_p9 = scmp.lt.u32.totalorder %s9526_s3, %s9659_s2 }
0x1662   : > { %p7547_p10 = scmp.lt.u32.totalorder %s7545_s17, %s7541_s13  ;;  %p7549_p11 = scmp.lt.u32.totalorder %s7541_s13, %s9526_s3 }
0x1663   : > { %p7543_p0 = pnand %p7542_p6, %p9660_p13 }
0x1664   : > { %p7548_p12 = por %p7547_p10, %p7546_p9 }
0x1665   : > { %p7544_p2 = pneg %p7543_p0 }
0x1666   : > { %p7550_p5 = por %p7549_p11, %p7548_p12 }
0x1668   : > { %p7551_p7 = pnand %p7550_p5, %p7544_p2 }
0x166a   : > { %7554 = shalt.err (!%p7551_p7)
}
0x166b   : > { %s7630_s11 = smov 128   ;;  %s7631_s24 = smov 8  }
0x166c   : > { %6930 = dma.vmem_to_hbm [thread:$0]  (%p9660_p13), %s9528_s14, 256, %s9526_s3, %s5942_s19, %s7630_s11, %s7630_s11, %s7631_s24  }
0x166d PF: > { %s5970_s0 = sand.u32 1, %s7593_s29   ;;  %p9661_p4 = scmp.ne.s32.totalorder %s9625_s25, 0 }
0x166e   : > { %p9662_p1 = scmp.ge.s32.totalorder %s7605_s16, 2  ;;  %s5971_s13 = scalar_lea.sflag [#allocation4], %s5970_s0 }
0x1670   : > { %p6953_p3 = pnand %p9662_p1, %p9661_p4 }
0x1672   : > { %7588 = dma.done.wait (!%p6953_p3), %s5971_s13, 256  }
0x1673   : > { %7590 = vsyncadd (!%p6953_p3), %s5971_s13, 4294967040  ;;  %p30_p8 = scmp.ge.s32.totalorder %s7867_s21, 4   ;;  %s9663_s29 = smov %s7597_s30 }
0x1674   : > { %s9664_s30 = smov %s7601_s15  ;;  %s9665_s15 = smov %s7879_s26 }
0x1675   : > { %s9666_s16 = smov %s7867_s21  ;;  %32 = sbr.rel (!%p30_p8) target bundleno = 18 (0x12), region = 141 }
0x167c   :  { %5976 = vsyncpa [#allocation3], 1 }
0x167d   :  { %5978 = vsyncpa [#allocation3 + $0x1], 1 }
0x167e   :  { %5979 = vsyncpa [#allocation6], 1 }
0x167f   :  { %5980 = vsyncpa [#allocation9], 1 }
0x1680   :  { %5981 = vsyncpa [#allocation12], 1 }
0x1681   :  { %5982 = vsyncpa [#allocation4], 1 }
0x1682   :  { %5984 = vsyncpa [#allocation4 + $0x1], 1 }

</bundles_post_ra>
